<compile_context>
chip_gen: v6e
topology: v6e:2x2x1
jax: 0.10.0
libtpu: 0.0.40
codegen_flags: <defaults>
</compile_context>

<pallas_src>
import jax
import jax.numpy as jnp
import numpy as np
from jax import lax
from jax.experimental import pallas as pl
from jax.experimental.pallas import tpu as pltpu

# ---------------- config (matches a small SeqDx instantiation) ----------------
OBS_DIM = 16        # obs_dim
ACT_DIM = 16        # action_dim
ENC_HID = 32        # xu_enc_hidden_dim  (xu_enc_hidden_depth = 1)
DEC_HID = 32        # x_dec_hidden_dim   (x_dec_hidden_depth = 1)
LATENT = 32         # rec_latent_dim
NUM_LAYERS = 2      # rec_num_layers, rec_type = 'LSTM'
BATCH = 8
T = 8               # us.shape[0] (sequence length fed to forward)


def seqdx_kernel(x0_ref, us_ref,
                 enc_w1x_ref, enc_w1u_ref, enc_b1_ref, enc_w2_ref, enc_b2_ref,
                 wih_ref, whh_ref, lstm_b_ref,
                 dec_w1_ref, dec_b1_ref, dec_w2_ref, dec_b2_ref,
                 out_ref):
    # --- load weights once; biases broadcast-hoisted outside the T loop -------
    w1x = enc_w1x_ref[...]                                     # (OBS, ENC_HID)
    w1u = enc_w1u_ref[...]                                     # (ACT, ENC_HID)
    b1 = jnp.broadcast_to(enc_b1_ref[...], (BATCH, ENC_HID))
    w2 = enc_w2_ref[...]                                       # (ENC_HID, LATENT)
    b2 = jnp.broadcast_to(enc_b2_ref[...], (BATCH, LATENT))
    wih = [wih_ref[l] for l in range(NUM_LAYERS)]              # (LATENT, 4L)
    whh = [whh_ref[l] for l in range(NUM_LAYERS)]              # (LATENT, 4L)
    lb = [jnp.broadcast_to(lstm_b_ref[l], (BATCH, 4 * LATENT))
          for l in range(NUM_LAYERS)]
    dw1 = dec_w1_ref[...]                                      # (LATENT, DEC_HID)
    db1 = jnp.broadcast_to(dec_b1_ref[...], (BATCH, DEC_HID))
    dw2 = dec_w2_ref[...]                                      # (DEC_HID, OBS)
    db2 = jnp.broadcast_to(dec_b2_ref[...], (BATCH, OBS_DIM))

    def step(t, carry):
        xt, hs, cs = carry
        ut = us_ref[t]                                         # (B, ACT)

        # xu_enc MLP: Linear -> ReLU -> Linear (no lane-axis concat: split W)
        h1 = jnp.maximum(
            jnp.dot(xt, w1x, preferred_element_type=jnp.float32)
            + jnp.dot(ut, w1u, preferred_element_type=jnp.float32)
            + b1, 0.0)
        inp = jnp.dot(h1, w2, preferred_element_type=jnp.float32) + b2

        # stacked LSTM cells; gate columns pre-reordered to [i, f, o, g]
        new_hs, new_cs = [], []
        for l in range(NUM_LAYERS):
            gates = (jnp.dot(inp, wih[l], preferred_element_type=jnp.float32)
                     + jnp.dot(hs[l], whh[l], preferred_element_type=jnp.float32)
                     + lb[l])                                  # (B, 4*LATENT)
            sg = jax.nn.sigmoid(gates)            # one EUP pass over full vreg
            i_g = sg[:, 0 * LATENT:1 * LATENT]
            f_g = sg[:, 1 * LATENT:2 * LATENT]
            o_g = sg[:, 2 * LATENT:3 * LATENT]
            g_g = jnp.tanh(gates[:, 3 * LATENT:4 * LATENT])
            c_new = f_g * cs[l] + i_g * g_g
            h_new = o_g * jnp.tanh(c_new)
            new_hs.append(h_new)
            new_cs.append(c_new)
            inp = h_new

        # x_dec MLP: Linear -> ReLU -> Linear, then residual add
        d1 = jnp.maximum(
            jnp.dot(inp, dw1, preferred_element_type=jnp.float32) + db1, 0.0)
        xtp1 = (xt
                + jnp.dot(d1, dw2, preferred_element_type=jnp.float32)
                + db2)

        out_ref[t] = xtp1            # VMEM store; single HBM writeback at end
        return (xtp1, tuple(new_hs), tuple(new_cs))

    xt0 = x0_ref[...]
    h0 = tuple(jnp.zeros((BATCH, LATENT), jnp.float32) for _ in range(NUM_LAYERS))
    c0 = tuple(jnp.zeros((BATCH, LATENT), jnp.float32) for _ in range(NUM_LAYERS))
    lax.fori_loop(0, T, step, (xt0, h0, c0), unroll=True)


def _full_spec(a):
    rank = a.ndim
    return pl.BlockSpec(a.shape, lambda i, _r=rank: (0,) * _r)


def _prepare_params(params):
    """Setup-time weight transforms (outside the kernel)."""
    (enc_w1, enc_b1, enc_w2, enc_b2,
     wih, whh, lstm_b,
     dec_w1, dec_b1, dec_w2, dec_b2) = params
    # split encoder first-layer weight to avoid in-kernel lane concat
    enc_w1x = enc_w1[:OBS_DIM]
    enc_w1u = enc_w1[OBS_DIM:]

    # reorder LSTM gate columns from PyTorch [i, f, g, o] -> kernel [i, f, o, g]
    def reorder(w):
        i, f, g, o = jnp.split(w, 4, axis=-1)
        return jnp.concatenate([i, f, o, g], axis=-1)

    return (enc_w1x, enc_w1u, enc_b1, enc_w2, enc_b2,
            reorder(wih), reorder(whh), reorder(lstm_b),
            dec_w1, dec_b1, dec_w2, dec_b2)


def seqdx_forward(x0, us, params):
    kparams = _prepare_params(params)
    inputs = (x0, us) + kparams

    grid_spec = pltpu.PrefetchScalarGridSpec(
        num_scalar_prefetch=0,
        grid=(1,),                               # whole recurrence in one step
        in_specs=[_full_spec(a) for a in inputs],
        out_specs=pl.BlockSpec((T, BATCH, OBS_DIM), lambda i: (0, 0, 0)),
    )
    return pl.pallas_call(
        seqdx_kernel,
        out_shape=jax.ShapeDtypeStruct((T, BATCH, OBS_DIM), jnp.float32),
        grid_spec=grid_spec,
        compiler_params=pltpu.CompilerParams(
            dimension_semantics=("arbitrary",)),
    )(*inputs)


# ------------------------- pure-JAX reference ---------------------------------
def seqdx_ref(x0, us, params):
    (enc_w1, enc_b1, enc_w2, enc_b2,
     wih, whh, lstm_b,
     dec_w1, dec_b1, dec_w2, dec_b2) = params
    xt = x0
    h = jnp.zeros((NUM_LAYERS, BATCH, LATENT), jnp.float32)
    c = jnp.zeros((NUM_LAYERS, BATCH, LATENT), jnp.float32)
    preds = []
    for t in range(T):
        xut = jnp.concatenate([xt, us[t]], axis=1)
        h1 = jnp.maximum(xut @ enc_w1 + enc_b1, 0.0)
        inp = h1 @ enc_w2 + enc_b2
        h_list, c_list = [], []
        for l in range(NUM_LAYERS):
            gates = inp @ wih[l] + h[l] @ whh[l] + lstm_b[l]
            i_g = jax.nn.sigmoid(gates[:, 0 * LATENT:1 * LATENT])
            f_g = jax.nn.sigmoid(gates[:, 1 * LATENT:2 * LATENT])
            g_g = jnp.tanh(gates[:, 2 * LATENT:3 * LATENT])
            o_g = jax.nn.sigmoid(gates[:, 3 * LATENT:4 * LATENT])
            c_new = f_g * c[l] + i_g * g_g
            h_new = o_g * jnp.tanh(c_new)
            h_list.append(h_new)
            c_list.append(c_new)
            inp = h_new
        h = jnp.stack(h_list)
        c = jnp.stack(c_list)
        d1 = jnp.maximum(inp @ dec_w1 + dec_b1, 0.0)
        xt = xt + (d1 @ dec_w2 + dec_b2)
        preds.append(xt)
    return jnp.stack(preds)


# ------------------------------ parameter init --------------------------------
def make_params(key):
    ks = jax.random.split(key, 11)
    s = 0.2
    enc_w1 = jax.random.normal(ks[0], (OBS_DIM + ACT_DIM, ENC_HID), jnp.float32) * s
    enc_b1 = jax.random.normal(ks[1], (1, ENC_HID), jnp.float32) * s
    enc_w2 = jax.random.normal(ks[2], (ENC_HID, LATENT), jnp.float32) * s
    enc_b2 = jax.random.normal(ks[3], (1, LATENT), jnp.float32) * s
    # LSTM: stacked per-layer weights, stored (in, 4*latent); gate order i,f,g,o.
    wih = jax.random.normal(ks[4], (NUM_LAYERS, LATENT, 4 * LATENT), jnp.float32) * s
    whh = jax.random.normal(ks[5], (NUM_LAYERS, LATENT, 4 * LATENT), jnp.float32) * s
    lstm_b = jax.random.normal(ks[6], (NUM_LAYERS, 1, 4 * LATENT), jnp.float32) * s  # b_ih + b_hh folded
    dec_w1 = jax.random.normal(ks[7], (LATENT, DEC_HID), jnp.float32) * s
    dec_b1 = jax.random.normal(ks[8], (1, DEC_HID), jnp.float32) * s
    dec_w2 = jax.random.normal(ks[9], (DEC_HID, OBS_DIM), jnp.float32) * s
    dec_b2 = jax.random.normal(ks[10], (1, OBS_DIM), jnp.float32) * s
    return (enc_w1, enc_b1, enc_w2, enc_b2, wih, whh, lstm_b,
            dec_w1, dec_b1, dec_w2, dec_b2)


if __name__ == "__main__":
    key = jax.random.PRNGKey(0)
    k_x, k_u, k_p = jax.random.split(key, 3)
    x0 = jax.random.normal(k_x, (BATCH, OBS_DIM), jnp.float32)
    us = jax.random.normal(k_u, (T, BATCH, ACT_DIM), jnp.float32)
    params = make_params(k_p)

    out = seqdx_forward(x0, us, params)
    out = jax.block_until_ready(out)

    ref = seqdx_ref(x0, us, params)
    np.testing.assert_allclose(np.asarray(out), np.asarray(ref),
                               rtol=2e-2, atol=2e-2)
    print("KERNEL_OK")
</pallas_src>

<mosaic_0001>
module attributes {stable_mosaic.version = 11 : i64} {
  func.func @seqdx_kernel(%arg0: i32, %arg1: memref<8x16xf32, #tpu.memory_space<vmem>>, %arg2: memref<8x8x16xf32, #tpu.memory_space<vmem>>, %arg3: memref<16x32xf32, #tpu.memory_space<vmem>>, %arg4: memref<16x32xf32, #tpu.memory_space<vmem>>, %arg5: memref<1x32xf32, #tpu.memory_space<vmem>>, %arg6: memref<32x32xf32, #tpu.memory_space<vmem>>, %arg7: memref<1x32xf32, #tpu.memory_space<vmem>>, %arg8: memref<2x32x128xf32, #tpu.memory_space<vmem>>, %arg9: memref<2x32x128xf32, #tpu.memory_space<vmem>>, %arg10: memref<2x1x128xf32, #tpu.memory_space<vmem>>, %arg11: memref<32x32xf32, #tpu.memory_space<vmem>>, %arg12: memref<1x32xf32, #tpu.memory_space<vmem>>, %arg13: memref<32x16xf32, #tpu.memory_space<vmem>>, %arg14: memref<1x16xf32, #tpu.memory_space<vmem>>, %arg15: memref<8x8x16xf32, #tpu.memory_space<vmem>>) attributes {dimension_semantics = [#tpu.dimension_semantics<arbitrary>], iteration_bounds = array<i64: 1>, scalar_prefetch = 0 : i64, scratch_operands = 0 : i64, tpu.core_type = #tpu.core_type<tc>, window_params = [{pipeline_mode = #tpu.pipeline_mode<synchronous>, transform_indices = @transform_0, window_bounds = array<i64: 8, 16>}, {pipeline_mode = #tpu.pipeline_mode<synchronous>, transform_indices = @transform_1, window_bounds = array<i64: 8, 8, 16>}, {pipeline_mode = #tpu.pipeline_mode<synchronous>, transform_indices = @transform_2, window_bounds = array<i64: 16, 32>}, {pipeline_mode = #tpu.pipeline_mode<synchronous>, transform_indices = @transform_3, window_bounds = array<i64: 16, 32>}, {pipeline_mode = #tpu.pipeline_mode<synchronous>, transform_indices = @transform_4, window_bounds = array<i64: 1, 32>}, {pipeline_mode = #tpu.pipeline_mode<synchronous>, transform_indices = @transform_5, window_bounds = array<i64: 32, 32>}, {pipeline_mode = #tpu.pipeline_mode<synchronous>, transform_indices = @transform_6, window_bounds = array<i64: 1, 32>}, {pipeline_mode = #tpu.pipeline_mode<synchronous>, transform_indices = @transform_7, window_bounds = array<i64: 2, 32, 128>}, {pipeline_mode = #tpu.pipeline_mode<synchronous>, transform_indices = @transform_8, window_bounds = array<i64: 2, 32, 128>}, {pipeline_mode = #tpu.pipeline_mode<synchronous>, transform_indices = @transform_9, window_bounds = array<i64: 2, 1, 128>}, {pipeline_mode = #tpu.pipeline_mode<synchronous>, transform_indices = @transform_10, window_bounds = array<i64: 32, 32>}, {pipeline_mode = #tpu.pipeline_mode<synchronous>, transform_indices = @transform_11, window_bounds = array<i64: 1, 32>}, {pipeline_mode = #tpu.pipeline_mode<synchronous>, transform_indices = @transform_12, window_bounds = array<i64: 32, 16>}, {pipeline_mode = #tpu.pipeline_mode<synchronous>, transform_indices = @transform_13, window_bounds = array<i64: 1, 16>}, {pipeline_mode = #tpu.pipeline_mode<synchronous>, transform_indices = @transform_14, window_bounds = array<i64: 8, 8, 16>}]} {
    %c0 = arith.constant 0 : index
    %c0_0 = arith.constant 0 : index
    %0 = vector.load %arg3[%c0, %c0_0] : memref<16x32xf32, #tpu.memory_space<vmem>>, vector<16x32xf32>
    %c0_1 = arith.constant 0 : index
    %c0_2 = arith.constant 0 : index
    %1 = vector.load %arg4[%c0_1, %c0_2] : memref<16x32xf32, #tpu.memory_space<vmem>>, vector<16x32xf32>
    %c0_3 = arith.constant 0 : index
    %c0_4 = arith.constant 0 : index
    %2 = vector.load %arg5[%c0_3, %c0_4] : memref<1x32xf32, #tpu.memory_space<vmem>>, vector<1x32xf32>
    %3 = vector.shape_cast %2 : vector<1x32xf32> to vector<1x32xf32>
    %4 = vector.broadcast %3 : vector<1x32xf32> to vector<8x32xf32>
    %c0_5 = arith.constant 0 : index
    %c0_6 = arith.constant 0 : index
    %5 = vector.load %arg6[%c0_5, %c0_6] : memref<32x32xf32, #tpu.memory_space<vmem>>, vector<32x32xf32>
    %c0_7 = arith.constant 0 : index
    %c0_8 = arith.constant 0 : index
    %6 = vector.load %arg7[%c0_7, %c0_8] : memref<1x32xf32, #tpu.memory_space<vmem>>, vector<1x32xf32>
    %7 = vector.shape_cast %6 : vector<1x32xf32> to vector<1x32xf32>
    %8 = vector.broadcast %7 : vector<1x32xf32> to vector<8x32xf32>
    %c0_9 = arith.constant 0 : index
    %c0_10 = arith.constant 0 : index
    %c0_11 = arith.constant 0 : index
    %9 = vector.load %arg8[%c0_9, %c0_10, %c0_11] : memref<2x32x128xf32, #tpu.memory_space<vmem>>, vector<1x32x128xf32>
    %10 = vector.shape_cast %9 : vector<1x32x128xf32> to vector<32x128xf32>
    %c1 = arith.constant 1 : index
    %c0_12 = arith.constant 0 : index
    %c0_13 = arith.constant 0 : index
    %11 = vector.load %arg8[%c1, %c0_12, %c0_13] : memref<2x32x128xf32, #tpu.memory_space<vmem>>, vector<1x32x128xf32>
    %12 = vector.shape_cast %11 : vector<1x32x128xf32> to vector<32x128xf32>
    %c0_14 = arith.constant 0 : index
    %c0_15 = arith.constant 0 : index
    %c0_16 = arith.constant 0 : index
    %13 = vector.load %arg9[%c0_14, %c0_15, %c0_16] : memref<2x32x128xf32, #tpu.memory_space<vmem>>, vector<1x32x128xf32>
    %14 = vector.shape_cast %13 : vector<1x32x128xf32> to vector<32x128xf32>
    %c1_17 = arith.constant 1 : index
    %c0_18 = arith.constant 0 : index
    %c0_19 = arith.constant 0 : index
    %15 = vector.load %arg9[%c1_17, %c0_18, %c0_19] : memref<2x32x128xf32, #tpu.memory_space<vmem>>, vector<1x32x128xf32>
    %16 = vector.shape_cast %15 : vector<1x32x128xf32> to vector<32x128xf32>
    %c0_20 = arith.constant 0 : index
    %c0_21 = arith.constant 0 : index
    %c0_22 = arith.constant 0 : index
    %17 = vector.load %arg10[%c0_20, %c0_21, %c0_22] : memref<2x1x128xf32, #tpu.memory_space<vmem>>, vector<1x1x128xf32>
    %18 = vector.shape_cast %17 : vector<1x1x128xf32> to vector<1x128xf32>
    %19 = vector.shape_cast %18 : vector<1x128xf32> to vector<1x128xf32>
    %20 = vector.broadcast %19 : vector<1x128xf32> to vector<8x128xf32>
    %c1_23 = arith.constant 1 : index
    %c0_24 = arith.constant 0 : index
    %c0_25 = arith.constant 0 : index
    %21 = vector.load %arg10[%c1_23, %c0_24, %c0_25] : memref<2x1x128xf32, #tpu.memory_space<vmem>>, vector<1x1x128xf32>
    %22 = vector.shape_cast %21 : vector<1x1x128xf32> to vector<1x128xf32>
    %23 = vector.shape_cast %22 : vector<1x128xf32> to vector<1x128xf32>
    %24 = vector.broadcast %23 : vector<1x128xf32> to vector<8x128xf32>
    %c0_26 = arith.constant 0 : index
    %c0_27 = arith.constant 0 : index
    %25 = vector.load %arg11[%c0_26, %c0_27] : memref<32x32xf32, #tpu.memory_space<vmem>>, vector<32x32xf32>
    %c0_28 = arith.constant 0 : index
    %c0_29 = arith.constant 0 : index
    %26 = vector.load %arg12[%c0_28, %c0_29] : memref<1x32xf32, #tpu.memory_space<vmem>>, vector<1x32xf32>
    %27 = vector.shape_cast %26 : vector<1x32xf32> to vector<1x32xf32>
    %28 = vector.broadcast %27 : vector<1x32xf32> to vector<8x32xf32>
    %c0_30 = arith.constant 0 : index
    %c0_31 = arith.constant 0 : index
    %29 = vector.load %arg13[%c0_30, %c0_31] : memref<32x16xf32, #tpu.memory_space<vmem>>, vector<32x16xf32>
    %c0_32 = arith.constant 0 : index
    %c0_33 = arith.constant 0 : index
    %30 = vector.load %arg14[%c0_32, %c0_33] : memref<1x16xf32, #tpu.memory_space<vmem>>, vector<1x16xf32>
    %31 = vector.shape_cast %30 : vector<1x16xf32> to vector<1x16xf32>
    %32 = vector.broadcast %31 : vector<1x16xf32> to vector<8x16xf32>
    %c0_34 = arith.constant 0 : index
    %c0_35 = arith.constant 0 : index
    %33 = vector.load %arg1[%c0_34, %c0_35] : memref<8x16xf32, #tpu.memory_space<vmem>>, vector<8x16xf32>
    %cst = arith.constant 0.000000e+00 : f32
    %34 = vector.broadcast %cst : f32 to vector<8x32xf32>
    %cst_36 = arith.constant 0.000000e+00 : f32
    %35 = vector.broadcast %cst_36 : f32 to vector<8x32xf32>
    %cst_37 = arith.constant 0.000000e+00 : f32
    %36 = vector.broadcast %cst_37 : f32 to vector<8x32xf32>
    %cst_38 = arith.constant 0.000000e+00 : f32
    %37 = vector.broadcast %cst_38 : f32 to vector<8x32xf32>
    %c0_i32 = arith.constant 0 : i32
    %38 = arith.index_cast %c0_i32 : i32 to index
    %c0_39 = arith.constant 0 : index
    %c0_40 = arith.constant 0 : index
    %39 = vector.load %arg2[%38, %c0_39, %c0_40] : memref<8x8x16xf32, #tpu.memory_space<vmem>>, vector<1x8x16xf32>
    %40 = vector.shape_cast %39 : vector<1x8x16xf32> to vector<8x16xf32>
    %cst_41 = arith.constant dense<0.000000e+00> : vector<8x32xf32>
    %41 = tpu.matmul %33, %0, %cst_41 {dimension_numbers = #tpu.dot_dimension_numbers<[1], [0], [0], [1], [0, 0, 1, 1], [], []>} : vector<8x16xf32>, vector<16x32xf32>, vector<8x32xf32> -> vector<8x32xf32>
    %cst_42 = arith.constant dense<0.000000e+00> : vector<8x32xf32>
    %42 = tpu.matmul %40, %1, %cst_42 {dimension_numbers = #tpu.dot_dimension_numbers<[1], [0], [0], [1], [0, 0, 1, 1], [], []>} : vector<8x16xf32>, vector<16x32xf32>, vector<8x32xf32> -> vector<8x32xf32>
    %43 = arith.addf %41, %42 : vector<8x32xf32>
    %44 = arith.addf %43, %4 : vector<8x32xf32>
    %cst_43 = arith.constant 0.000000e+00 : f32
    %45 = vector.broadcast %cst_43 : f32 to vector<8x32xf32>
    %46 = arith.maximumf %44, %45 : vector<8x32xf32>
    %cst_44 = arith.constant dense<0.000000e+00> : vector<8x32xf32>
    %47 = tpu.matmul %46, %5, %cst_44 {dimension_numbers = #tpu.dot_dimension_numbers<[1], [0], [0], [1], [0, 0, 1, 1], [], []>} : vector<8x32xf32>, vector<32x32xf32>, vector<8x32xf32> -> vector<8x32xf32>
    %48 = arith.addf %47, %8 : vector<8x32xf32>
    %cst_45 = arith.constant dense<0.000000e+00> : vector<8x128xf32>
    %49 = tpu.matmul %48, %10, %cst_45 {dimension_numbers = #tpu.dot_dimension_numbers<[1], [0], [0], [1], [0, 0, 1, 1], [], []>} : vector<8x32xf32>, vector<32x128xf32>, vector<8x128xf32> -> vector<8x128xf32>
    %cst_46 = arith.constant dense<0.000000e+00> : vector<8x128xf32>
    %50 = tpu.matmul %34, %14, %cst_46 {dimension_numbers = #tpu.dot_dimension_numbers<[1], [0], [0], [1], [0, 0, 1, 1], [], []>} : vector<8x32xf32>, vector<32x128xf32>, vector<8x128xf32> -> vector<8x128xf32>
    %51 = arith.addf %49, %50 : vector<8x128xf32>
    %52 = arith.addf %51, %20 : vector<8x128xf32>
    %53 = arith.negf %52 : vector<8x128xf32>
    %54 = math.exp %53 : vector<8x128xf32>
    %cst_47 = arith.constant 1.000000e+00 : f32
    %55 = vector.broadcast %cst_47 : f32 to vector<8x128xf32>
    %56 = arith.addf %55, %54 : vector<8x128xf32>
    %57 = arith.divf %55, %56 : vector<8x128xf32>
    %58 = vector.extract_strided_slice %57 {offsets = [0, 0], sizes = [8, 32], strides = [1, 1]} : vector<8x128xf32> to vector<8x32xf32>
    %59 = vector.extract_strided_slice %57 {offsets = [0, 32], sizes = [8, 32], strides = [1, 1]} : vector<8x128xf32> to vector<8x32xf32>
    %60 = vector.extract_strided_slice %57 {offsets = [0, 64], sizes = [8, 32], strides = [1, 1]} : vector<8x128xf32> to vector<8x32xf32>
    %61 = vector.extract_strided_slice %52 {offsets = [0, 96], sizes = [8, 32], strides = [1, 1]} : vector<8x128xf32> to vector<8x32xf32>
    %62 = math.tanh %61 : vector<8x32xf32>
    %63 = arith.mulf %59, %36 : vector<8x32xf32>
    %64 = arith.mulf %58, %62 : vector<8x32xf32>
    %65 = arith.addf %63, %64 : vector<8x32xf32>
    %66 = math.tanh %65 : vector<8x32xf32>
    %67 = arith.mulf %60, %66 : vector<8x32xf32>
    %cst_48 = arith.constant dense<0.000000e+00> : vector<8x128xf32>
    %68 = tpu.matmul %67, %12, %cst_48 {dimension_numbers = #tpu.dot_dimension_numbers<[1], [0], [0], [1], [0, 0, 1, 1], [], []>} : vector<8x32xf32>, vector<32x128xf32>, vector<8x128xf32> -> vector<8x128xf32>
    %cst_49 = arith.constant dense<0.000000e+00> : vector<8x128xf32>
    %69 = tpu.matmul %35, %16, %cst_49 {dimension_numbers = #tpu.dot_dimension_numbers<[1], [0], [0], [1], [0, 0, 1, 1], [], []>} : vector<8x32xf32>, vector<32x128xf32>, vector<8x128xf32> -> vector<8x128xf32>
    %70 = arith.addf %68, %69 : vector<8x128xf32>
    %71 = arith.addf %70, %24 : vector<8x128xf32>
    %72 = arith.negf %71 : vector<8x128xf32>
    %73 = math.exp %72 : vector<8x128xf32>
    %cst_50 = arith.constant 1.000000e+00 : f32
    %74 = vector.broadcast %cst_50 : f32 to vector<8x128xf32>
    %75 = arith.addf %74, %73 : vector<8x128xf32>
    %76 = arith.divf %74, %75 : vector<8x128xf32>
    %77 = vector.extract_strided_slice %76 {offsets = [0, 0], sizes = [8, 32], strides = [1, 1]} : vector<8x128xf32> to vector<8x32xf32>
    %78 = vector.extract_strided_slice %76 {offsets = [0, 32], sizes = [8, 32], strides = [1, 1]} : vector<8x128xf32> to vector<8x32xf32>
    %79 = vector.extract_strided_slice %76 {offsets = [0, 64], sizes = [8, 32], strides = [1, 1]} : vector<8x128xf32> to vector<8x32xf32>
    %80 = vector.extract_strided_slice %71 {offsets = [0, 96], sizes = [8, 32], strides = [1, 1]} : vector<8x128xf32> to vector<8x32xf32>
    %81 = math.tanh %80 : vector<8x32xf32>
    %82 = arith.mulf %78, %37 : vector<8x32xf32>
    %83 = arith.mulf %77, %81 : vector<8x32xf32>
    %84 = arith.addf %82, %83 : vector<8x32xf32>
    %85 = math.tanh %84 : vector<8x32xf32>
    %86 = arith.mulf %79, %85 : vector<8x32xf32>
    %cst_51 = arith.constant dense<0.000000e+00> : vector<8x32xf32>
    %87 = tpu.matmul %86, %25, %cst_51 {dimension_numbers = #tpu.dot_dimension_numbers<[1], [0], [0], [1], [0, 0, 1, 1], [], []>} : vector<8x32xf32>, vector<32x32xf32>, vector<8x32xf32> -> vector<8x32xf32>
    %88 = arith.addf %87, %28 : vector<8x32xf32>
    %cst_52 = arith.constant 0.000000e+00 : f32
    %89 = vector.broadcast %cst_52 : f32 to vector<8x32xf32>
    %90 = arith.maximumf %88, %89 : vector<8x32xf32>
    %cst_53 = arith.constant dense<0.000000e+00> : vector<8x16xf32>
    %91 = tpu.matmul %90, %29, %cst_53 {dimension_numbers = #tpu.dot_dimension_numbers<[1], [0], [0], [1], [0, 0, 1, 1], [], []>} : vector<8x32xf32>, vector<32x16xf32>, vector<8x16xf32> -> vector<8x16xf32>
    %92 = arith.addf %33, %91 : vector<8x16xf32>
    %93 = arith.addf %92, %32 : vector<8x16xf32>
    %94 = arith.index_cast %c0_i32 : i32 to index
    %c0_54 = arith.constant 0 : index
    %c0_55 = arith.constant 0 : index
    %95 = vector.load %arg15[%94, %c0_54, %c0_55] : memref<8x8x16xf32, #tpu.memory_space<vmem>>, vector<1x8x16xf32>
    %96 = vector.shape_cast %95 : vector<1x8x16xf32> to vector<8x16xf32>
    %97 = vector.shape_cast %93 : vector<8x16xf32> to vector<1x8x16xf32>
    tpu.vector_store %arg15[%94, %c0_54, %c0_55], %97 {strides = array<i32>} : memref<8x8x16xf32, #tpu.memory_space<vmem>>, vector<1x8x16xf32>,
    %c1_i32 = arith.constant 1 : i32
    %98 = arith.index_cast %c1_i32 : i32 to index
    %c0_56 = arith.constant 0 : index
    %c0_57 = arith.constant 0 : index
    %99 = vector.load %arg2[%98, %c0_56, %c0_57] : memref<8x8x16xf32, #tpu.memory_space<vmem>>, vector<1x8x16xf32>
    %100 = vector.shape_cast %99 : vector<1x8x16xf32> to vector<8x16xf32>
    %cst_58 = arith.constant dense<0.000000e+00> : vector<8x32xf32>
    %101 = tpu.matmul %93, %0, %cst_58 {dimension_numbers = #tpu.dot_dimension_numbers<[1], [0], [0], [1], [0, 0, 1, 1], [], []>} : vector<8x16xf32>, vector<16x32xf32>, vector<8x32xf32> -> vector<8x32xf32>
    %cst_59 = arith.constant dense<0.000000e+00> : vector<8x32xf32>
    %102 = tpu.matmul %100, %1, %cst_59 {dimension_numbers = #tpu.dot_dimension_numbers<[1], [0], [0], [1], [0, 0, 1, 1], [], []>} : vector<8x16xf32>, vector<16x32xf32>, vector<8x32xf32> -> vector<8x32xf32>
    %103 = arith.addf %101, %102 : vector<8x32xf32>
    %104 = arith.addf %103, %4 : vector<8x32xf32>
    %cst_60 = arith.constant 0.000000e+00 : f32
    %105 = vector.broadcast %cst_60 : f32 to vector<8x32xf32>
    %106 = arith.maximumf %104, %105 : vector<8x32xf32>
    %cst_61 = arith.constant dense<0.000000e+00> : vector<8x32xf32>
    %107 = tpu.matmul %106, %5, %cst_61 {dimension_numbers = #tpu.dot_dimension_numbers<[1], [0], [0], [1], [0, 0, 1, 1], [], []>} : vector<8x32xf32>, vector<32x32xf32>, vector<8x32xf32> -> vector<8x32xf32>
    %108 = arith.addf %107, %8 : vector<8x32xf32>
    %cst_62 = arith.constant dense<0.000000e+00> : vector<8x128xf32>
    %109 = tpu.matmul %108, %10, %cst_62 {dimension_numbers = #tpu.dot_dimension_numbers<[1], [0], [0], [1], [0, 0, 1, 1], [], []>} : vector<8x32xf32>, vector<32x128xf32>, vector<8x128xf32> -> vector<8x128xf32>
    %cst_63 = arith.constant dense<0.000000e+00> : vector<8x128xf32>
    %110 = tpu.matmul %67, %14, %cst_63 {dimension_numbers = #tpu.dot_dimension_numbers<[1], [0], [0], [1], [0, 0, 1, 1], [], []>} : vector<8x32xf32>, vector<32x128xf32>, vector<8x128xf32> -> vector<8x128xf32>
    %111 = arith.addf %109, %110 : vector<8x128xf32>
    %112 = arith.addf %111, %20 : vector<8x128xf32>
    %113 = arith.negf %112 : vector<8x128xf32>
    %114 = math.exp %113 : vector<8x128xf32>
    %cst_64 = arith.constant 1.000000e+00 : f32
    %115 = vector.broadcast %cst_64 : f32 to vector<8x128xf32>
    %116 = arith.addf %115, %114 : vector<8x128xf32>
    %117 = arith.divf %115, %116 : vector<8x128xf32>
    %118 = vector.extract_strided_slice %117 {offsets = [0, 0], sizes = [8, 32], strides = [1, 1]} : vector<8x128xf32> to vector<8x32xf32>
    %119 = vector.extract_strided_slice %117 {offsets = [0, 32], sizes = [8, 32], strides = [1, 1]} : vector<8x128xf32> to vector<8x32xf32>
    %120 = vector.extract_strided_slice %117 {offsets = [0, 64], sizes = [8, 32], strides = [1, 1]} : vector<8x128xf32> to vector<8x32xf32>
    %121 = vector.extract_strided_slice %112 {offsets = [0, 96], sizes = [8, 32], strides = [1, 1]} : vector<8x128xf32> to vector<8x32xf32>
    %122 = math.tanh %121 : vector<8x32xf32>
    %123 = arith.mulf %119, %65 : vector<8x32xf32>
    %124 = arith.mulf %118, %122 : vector<8x32xf32>
    %125 = arith.addf %123, %124 : vector<8x32xf32>
    %126 = math.tanh %125 : vector<8x32xf32>
    %127 = arith.mulf %120, %126 : vector<8x32xf32>
    %cst_65 = arith.constant dense<0.000000e+00> : vector<8x128xf32>
    %128 = tpu.matmul %127, %12, %cst_65 {dimension_numbers = #tpu.dot_dimension_numbers<[1], [0], [0], [1], [0, 0, 1, 1], [], []>} : vector<8x32xf32>, vector<32x128xf32>, vector<8x128xf32> -> vector<8x128xf32>
    %cst_66 = arith.constant dense<0.000000e+00> : vector<8x128xf32>
    %129 = tpu.matmul %86, %16, %cst_66 {dimension_numbers = #tpu.dot_dimension_numbers<[1], [0], [0], [1], [0, 0, 1, 1], [], []>} : vector<8x32xf32>, vector<32x128xf32>, vector<8x128xf32> -> vector<8x128xf32>
    %130 = arith.addf %128, %129 : vector<8x128xf32>
    %131 = arith.addf %130, %24 : vector<8x128xf32>
    %132 = arith.negf %131 : vector<8x128xf32>
    %133 = math.exp %132 : vector<8x128xf32>
    %cst_67 = arith.constant 1.000000e+00 : f32
    %134 = vector.broadcast %cst_67 : f32 to vector<8x128xf32>
    %135 = arith.addf %134, %133 : vector<8x128xf32>
    %136 = arith.divf %134, %135 : vector<8x128xf32>
    %137 = vector.extract_strided_slice %136 {offsets = [0, 0], sizes = [8, 32], strides = [1, 1]} : vector<8x128xf32> to vector<8x32xf32>
    %138 = vector.extract_strided_slice %136 {offsets = [0, 32], sizes = [8, 32], strides = [1, 1]} : vector<8x128xf32> to vector<8x32xf32>
    %139 = vector.extract_strided_slice %136 {offsets = [0, 64], sizes = [8, 32], strides = [1, 1]} : vector<8x128xf32> to vector<8x32xf32>
    %140 = vector.extract_strided_slice %131 {offsets = [0, 96], sizes = [8, 32], strides = [1, 1]} : vector<8x128xf32> to vector<8x32xf32>
    %141 = math.tanh %140 : vector<8x32xf32>
    %142 = arith.mulf %138, %84 : vector<8x32xf32>
    %143 = arith.mulf %137, %141 : vector<8x32xf32>
    %144 = arith.addf %142, %143 : vector<8x32xf32>
    %145 = math.tanh %144 : vector<8x32xf32>
    %146 = arith.mulf %139, %145 : vector<8x32xf32>
    %cst_68 = arith.constant dense<0.000000e+00> : vector<8x32xf32>
    %147 = tpu.matmul %146, %25, %cst_68 {dimension_numbers = #tpu.dot_dimension_numbers<[1], [0], [0], [1], [0, 0, 1, 1], [], []>} : vector<8x32xf32>, vector<32x32xf32>, vector<8x32xf32> -> vector<8x32xf32>
    %148 = arith.addf %147, %28 : vector<8x32xf32>
    %cst_69 = arith.constant 0.000000e+00 : f32
    %149 = vector.broadcast %cst_69 : f32 to vector<8x32xf32>
    %150 = arith.maximumf %148, %149 : vector<8x32xf32>
    %cst_70 = arith.constant dense<0.000000e+00> : vector<8x16xf32>
    %151 = tpu.matmul %150, %29, %cst_70 {dimension_numbers = #tpu.dot_dimension_numbers<[1], [0], [0], [1], [0, 0, 1, 1], [], []>} : vector<8x32xf32>, vector<32x16xf32>, vector<8x16xf32> -> vector<8x16xf32>
    %152 = arith.addf %93, %151 : vector<8x16xf32>
    %153 = arith.addf %152, %32 : vector<8x16xf32>
    %154 = arith.index_cast %c1_i32 : i32 to index
    %c0_71 = arith.constant 0 : index
    %c0_72 = arith.constant 0 : index
    %155 = vector.load %arg15[%154, %c0_71, %c0_72] : memref<8x8x16xf32, #tpu.memory_space<vmem>>, vector<1x8x16xf32>
    %156 = vector.shape_cast %155 : vector<1x8x16xf32> to vector<8x16xf32>
    %157 = vector.shape_cast %153 : vector<8x16xf32> to vector<1x8x16xf32>
    tpu.vector_store %arg15[%154, %c0_71, %c0_72], %157 {strides = array<i32>} : memref<8x8x16xf32, #tpu.memory_space<vmem>>, vector<1x8x16xf32>,
    %c2_i32 = arith.constant 2 : i32
    %158 = arith.index_cast %c2_i32 : i32 to index
    %c0_73 = arith.constant 0 : index
    %c0_74 = arith.constant 0 : index
    %159 = vector.load %arg2[%158, %c0_73, %c0_74] : memref<8x8x16xf32, #tpu.memory_space<vmem>>, vector<1x8x16xf32>
    %160 = vector.shape_cast %159 : vector<1x8x16xf32> to vector<8x16xf32>
    %cst_75 = arith.constant dense<0.000000e+00> : vector<8x32xf32>
    %161 = tpu.matmul %153, %0, %cst_75 {dimension_numbers = #tpu.dot_dimension_numbers<[1], [0], [0], [1], [0, 0, 1, 1], [], []>} : vector<8x16xf32>, vector<16x32xf32>, vector<8x32xf32> -> vector<8x32xf32>
    %cst_76 = arith.constant dense<0.000000e+00> : vector<8x32xf32>
    %162 = tpu.matmul %160, %1, %cst_76 {dimension_numbers = #tpu.dot_dimension_numbers<[1], [0], [0], [1], [0, 0, 1, 1], [], []>} : vector<8x16xf32>, vector<16x32xf32>, vector<8x32xf32> -> vector<8x32xf32>
    %163 = arith.addf %161, %162 : vector<8x32xf32>
    %164 = arith.addf %163, %4 : vector<8x32xf32>
    %cst_77 = arith.constant 0.000000e+00 : f32
    %165 = vector.broadcast %cst_77 : f32 to vector<8x32xf32>
    %166 = arith.maximumf %164, %165 : vector<8x32xf32>
    %cst_78 = arith.constant dense<0.000000e+00> : vector<8x32xf32>
    %167 = tpu.matmul %166, %5, %cst_78 {dimension_numbers = #tpu.dot_dimension_numbers<[1], [0], [0], [1], [0, 0, 1, 1], [], []>} : vector<8x32xf32>, vector<32x32xf32>, vector<8x32xf32> -> vector<8x32xf32>
    %168 = arith.addf %167, %8 : vector<8x32xf32>
    %cst_79 = arith.constant dense<0.000000e+00> : vector<8x128xf32>
    %169 = tpu.matmul %168, %10, %cst_79 {dimension_numbers = #tpu.dot_dimension_numbers<[1], [0], [0], [1], [0, 0, 1, 1], [], []>} : vector<8x32xf32>, vector<32x128xf32>, vector<8x128xf32> -> vector<8x128xf32>
    %cst_80 = arith.constant dense<0.000000e+00> : vector<8x128xf32>
    %170 = tpu.matmul %127, %14, %cst_80 {dimension_numbers = #tpu.dot_dimension_numbers<[1], [0], [0], [1], [0, 0, 1, 1], [], []>} : vector<8x32xf32>, vector<32x128xf32>, vector<8x128xf32> -> vector<8x128xf32>
    %171 = arith.addf %169, %170 : vector<8x128xf32>
    %172 = arith.addf %171, %20 : vector<8x128xf32>
    %173 = arith.negf %172 : vector<8x128xf32>
    %174 = math.exp %173 : vector<8x128xf32>
    %cst_81 = arith.constant 1.000000e+00 : f32
    %175 = vector.broadcast %cst_81 : f32 to vector<8x128xf32>
    %176 = arith.addf %175, %174 : vector<8x128xf32>
    %177 = arith.divf %175, %176 : vector<8x128xf32>
    %178 = vector.extract_strided_slice %177 {offsets = [0, 0], sizes = [8, 32], strides = [1, 1]} : vector<8x128xf32> to vector<8x32xf32>
    %179 = vector.extract_strided_slice %177 {offsets = [0, 32], sizes = [8, 32], strides = [1, 1]} : vector<8x128xf32> to vector<8x32xf32>
    %180 = vector.extract_strided_slice %177 {offsets = [0, 64], sizes = [8, 32], strides = [1, 1]} : vector<8x128xf32> to vector<8x32xf32>
    %181 = vector.extract_strided_slice %172 {offsets = [0, 96], sizes = [8, 32], strides = [1, 1]} : vector<8x128xf32> to vector<8x32xf32>
    %182 = math.tanh %181 : vector<8x32xf32>
    %183 = arith.mulf %179, %125 : vector<8x32xf32>
    %184 = arith.mulf %178, %182 : vector<8x32xf32>
    %185 = arith.addf %183, %184 : vector<8x32xf32>
    %186 = math.tanh %185 : vector<8x32xf32>
    %187 = arith.mulf %180, %186 : vector<8x32xf32>
    %cst_82 = arith.constant dense<0.000000e+00> : vector<8x128xf32>
    %188 = tpu.matmul %187, %12, %cst_82 {dimension_numbers = #tpu.dot_dimension_numbers<[1], [0], [0], [1], [0, 0, 1, 1], [], []>} : vector<8x32xf32>, vector<32x128xf32>, vector<8x128xf32> -> vector<8x128xf32>
    %cst_83 = arith.constant dense<0.000000e+00> : vector<8x128xf32>
    %189 = tpu.matmul %146, %16, %cst_83 {dimension_numbers = #tpu.dot_dimension_numbers<[1], [0], [0], [1], [0, 0, 1, 1], [], []>} : vector<8x32xf32>, vector<32x128xf32>, vector<8x128xf32> -> vector<8x128xf32>
    %190 = arith.addf %188, %189 : vector<8x128xf32>
    %191 = arith.addf %190, %24 : vector<8x128xf32>
    %192 = arith.negf %191 : vector<8x128xf32>
    %193 = math.exp %192 : vector<8x128xf32>
    %cst_84 = arith.constant 1.000000e+00 : f32
    %194 = vector.broadcast %cst_84 : f32 to vector<8x128xf32>
    %195 = arith.addf %194, %193 : vector<8x128xf32>
    %196 = arith.divf %194, %195 : vector<8x128xf32>
    %197 = vector.extract_strided_slice %196 {offsets = [0, 0], sizes = [8, 32], strides = [1, 1]} : vector<8x128xf32> to vector<8x32xf32>
    %198 = vector.extract_strided_slice %196 {offsets = [0, 32], sizes = [8, 32], strides = [1, 1]} : vector<8x128xf32> to vector<8x32xf32>
    %199 = vector.extract_strided_slice %196 {offsets = [0, 64], sizes = [8, 32], strides = [1, 1]} : vector<8x128xf32> to vector<8x32xf32>
    %200 = vector.extract_strided_slice %191 {offsets = [0, 96], sizes = [8, 32], strides = [1, 1]} : vector<8x128xf32> to vector<8x32xf32>
    %201 = math.tanh %200 : vector<8x32xf32>
    %202 = arith.mulf %198, %144 : vector<8x32xf32>
    %203 = arith.mulf %197, %201 : vector<8x32xf32>
    %204 = arith.addf %202, %203 : vector<8x32xf32>
    %205 = math.tanh %204 : vector<8x32xf32>
    %206 = arith.mulf %199, %205 : vector<8x32xf32>
    %cst_85 = arith.constant dense<0.000000e+00> : vector<8x32xf32>
    %207 = tpu.matmul %206, %25, %cst_85 {dimension_numbers = #tpu.dot_dimension_numbers<[1], [0], [0], [1], [0, 0, 1, 1], [], []>} : vector<8x32xf32>, vector<32x32xf32>, vector<8x32xf32> -> vector<8x32xf32>
    %208 = arith.addf %207, %28 : vector<8x32xf32>
    %cst_86 = arith.constant 0.000000e+00 : f32
    %209 = vector.broadcast %cst_86 : f32 to vector<8x32xf32>
    %210 = arith.maximumf %208, %209 : vector<8x32xf32>
    %cst_87 = arith.constant dense<0.000000e+00> : vector<8x16xf32>
    %211 = tpu.matmul %210, %29, %cst_87 {dimension_numbers = #tpu.dot_dimension_numbers<[1], [0], [0], [1], [0, 0, 1, 1], [], []>} : vector<8x32xf32>, vector<32x16xf32>, vector<8x16xf32> -> vector<8x16xf32>
    %212 = arith.addf %153, %211 : vector<8x16xf32>
    %213 = arith.addf %212, %32 : vector<8x16xf32>
    %214 = arith.index_cast %c2_i32 : i32 to index
    %c0_88 = arith.constant 0 : index
    %c0_89 = arith.constant 0 : index
    %215 = vector.load %arg15[%214, %c0_88, %c0_89] : memref<8x8x16xf32, #tpu.memory_space<vmem>>, vector<1x8x16xf32>
    %216 = vector.shape_cast %215 : vector<1x8x16xf32> to vector<8x16xf32>
    %217 = vector.shape_cast %213 : vector<8x16xf32> to vector<1x8x16xf32>
    tpu.vector_store %arg15[%214, %c0_88, %c0_89], %217 {strides = array<i32>} : memref<8x8x16xf32, #tpu.memory_space<vmem>>, vector<1x8x16xf32>,
    %c3_i32 = arith.constant 3 : i32
    %218 = arith.index_cast %c3_i32 : i32 to index
    %c0_90 = arith.constant 0 : index
    %c0_91 = arith.constant 0 : index
    %219 = vector.load %arg2[%218, %c0_90, %c0_91] : memref<8x8x16xf32, #tpu.memory_space<vmem>>, vector<1x8x16xf32>
    %220 = vector.shape_cast %219 : vector<1x8x16xf32> to vector<8x16xf32>
    %cst_92 = arith.constant dense<0.000000e+00> : vector<8x32xf32>
    %221 = tpu.matmul %213, %0, %cst_92 {dimension_numbers = #tpu.dot_dimension_numbers<[1], [0], [0], [1], [0, 0, 1, 1], [], []>} : vector<8x16xf32>, vector<16x32xf32>, vector<8x32xf32> -> vector<8x32xf32>
    %cst_93 = arith.constant dense<0.000000e+00> : vector<8x32xf32>
    %222 = tpu.matmul %220, %1, %cst_93 {dimension_numbers = #tpu.dot_dimension_numbers<[1], [0], [0], [1], [0, 0, 1, 1], [], []>} : vector<8x16xf32>, vector<16x32xf32>, vector<8x32xf32> -> vector<8x32xf32>
    %223 = arith.addf %221, %222 : vector<8x32xf32>
    %224 = arith.addf %223, %4 : vector<8x32xf32>
    %cst_94 = arith.constant 0.000000e+00 : f32
    %225 = vector.broadcast %cst_94 : f32 to vector<8x32xf32>
    %226 = arith.maximumf %224, %225 : vector<8x32xf32>
    %cst_95 = arith.constant dense<0.000000e+00> : vector<8x32xf32>
    %227 = tpu.matmul %226, %5, %cst_95 {dimension_numbers = #tpu.dot_dimension_numbers<[1], [0], [0], [1], [0, 0, 1, 1], [], []>} : vector<8x32xf32>, vector<32x32xf32>, vector<8x32xf32> -> vector<8x32xf32>
    %228 = arith.addf %227, %8 : vector<8x32xf32>
    %cst_96 = arith.constant dense<0.000000e+00> : vector<8x128xf32>
    %229 = tpu.matmul %228, %10, %cst_96 {dimension_numbers = #tpu.dot_dimension_numbers<[1], [0], [0], [1], [0, 0, 1, 1], [], []>} : vector<8x32xf32>, vector<32x128xf32>, vector<8x128xf32> -> vector<8x128xf32>
    %cst_97 = arith.constant dense<0.000000e+00> : vector<8x128xf32>
    %230 = tpu.matmul %187, %14, %cst_97 {dimension_numbers = #tpu.dot_dimension_numbers<[1], [0], [0], [1], [0, 0, 1, 1], [], []>} : vector<8x32xf32>, vector<32x128xf32>, vector<8x128xf32> -> vector<8x128xf32>
    %231 = arith.addf %229, %230 : vector<8x128xf32>
    %232 = arith.addf %231, %20 : vector<8x128xf32>
    %233 = arith.negf %232 : vector<8x128xf32>
    %234 = math.exp %233 : vector<8x128xf32>
    %cst_98 = arith.constant 1.000000e+00 : f32
    %235 = vector.broadcast %cst_98 : f32 to vector<8x128xf32>
    %236 = arith.addf %235, %234 : vector<8x128xf32>
    %237 = arith.divf %235, %236 : vector<8x128xf32>
    %238 = vector.extract_strided_slice %237 {offsets = [0, 0], sizes = [8, 32], strides = [1, 1]} : vector<8x128xf32> to vector<8x32xf32>
    %239 = vector.extract_strided_slice %237 {offsets = [0, 32], sizes = [8, 32], strides = [1, 1]} : vector<8x128xf32> to vector<8x32xf32>
    %240 = vector.extract_strided_slice %237 {offsets = [0, 64], sizes = [8, 32], strides = [1, 1]} : vector<8x128xf32> to vector<8x32xf32>
    %241 = vector.extract_strided_slice %232 {offsets = [0, 96], sizes = [8, 32], strides = [1, 1]} : vector<8x128xf32> to vector<8x32xf32>
    %242 = math.tanh %241 : vector<8x32xf32>
    %243 = arith.mulf %239, %185 : vector<8x32xf32>
    %244 = arith.mulf %238, %242 : vector<8x32xf32>
    %245 = arith.addf %243, %244 : vector<8x32xf32>
    %246 = math.tanh %245 : vector<8x32xf32>
    %247 = arith.mulf %240, %246 : vector<8x32xf32>
    %cst_99 = arith.constant dense<0.000000e+00> : vector<8x128xf32>
    %248 = tpu.matmul %247, %12, %cst_99 {dimension_numbers = #tpu.dot_dimension_numbers<[1], [0], [0], [1], [0, 0, 1, 1], [], []>} : vector<8x32xf32>, vector<32x128xf32>, vector<8x128xf32> -> vector<8x128xf32>
    %cst_100 = arith.constant dense<0.000000e+00> : vector<8x128xf32>
    %249 = tpu.matmul %206, %16, %cst_100 {dimension_numbers = #tpu.dot_dimension_numbers<[1], [0], [0], [1], [0, 0, 1, 1], [], []>} : vector<8x32xf32>, vector<32x128xf32>, vector<8x128xf32> -> vector<8x128xf32>
    %250 = arith.addf %248, %249 : vector<8x128xf32>
    %251 = arith.addf %250, %24 : vector<8x128xf32>
    %252 = arith.negf %251 : vector<8x128xf32>
    %253 = math.exp %252 : vector<8x128xf32>
    %cst_101 = arith.constant 1.000000e+00 : f32
    %254 = vector.broadcast %cst_101 : f32 to vector<8x128xf32>
    %255 = arith.addf %254, %253 : vector<8x128xf32>
    %256 = arith.divf %254, %255 : vector<8x128xf32>
    %257 = vector.extract_strided_slice %256 {offsets = [0, 0], sizes = [8, 32], strides = [1, 1]} : vector<8x128xf32> to vector<8x32xf32>
    %258 = vector.extract_strided_slice %256 {offsets = [0, 32], sizes = [8, 32], strides = [1, 1]} : vector<8x128xf32> to vector<8x32xf32>
    %259 = vector.extract_strided_slice %256 {offsets = [0, 64], sizes = [8, 32], strides = [1, 1]} : vector<8x128xf32> to vector<8x32xf32>
    %260 = vector.extract_strided_slice %251 {offsets = [0, 96], sizes = [8, 32], strides = [1, 1]} : vector<8x128xf32> to vector<8x32xf32>
    %261 = math.tanh %260 : vector<8x32xf32>
    %262 = arith.mulf %258, %204 : vector<8x32xf32>
    %263 = arith.mulf %257, %261 : vector<8x32xf32>
    %264 = arith.addf %262, %263 : vector<8x32xf32>
    %265 = math.tanh %264 : vector<8x32xf32>
    %266 = arith.mulf %259, %265 : vector<8x32xf32>
    %cst_102 = arith.constant dense<0.000000e+00> : vector<8x32xf32>
    %267 = tpu.matmul %266, %25, %cst_102 {dimension_numbers = #tpu.dot_dimension_numbers<[1], [0], [0], [1], [0, 0, 1, 1], [], []>} : vector<8x32xf32>, vector<32x32xf32>, vector<8x32xf32> -> vector<8x32xf32>
    %268 = arith.addf %267, %28 : vector<8x32xf32>
    %cst_103 = arith.constant 0.000000e+00 : f32
    %269 = vector.broadcast %cst_103 : f32 to vector<8x32xf32>
    %270 = arith.maximumf %268, %269 : vector<8x32xf32>
    %cst_104 = arith.constant dense<0.000000e+00> : vector<8x16xf32>
    %271 = tpu.matmul %270, %29, %cst_104 {dimension_numbers = #tpu.dot_dimension_numbers<[1], [0], [0], [1], [0, 0, 1, 1], [], []>} : vector<8x32xf32>, vector<32x16xf32>, vector<8x16xf32> -> vector<8x16xf32>
    %272 = arith.addf %213, %271 : vector<8x16xf32>
    %273 = arith.addf %272, %32 : vector<8x16xf32>
    %274 = arith.index_cast %c3_i32 : i32 to index
    %c0_105 = arith.constant 0 : index
    %c0_106 = arith.constant 0 : index
    %275 = vector.load %arg15[%274, %c0_105, %c0_106] : memref<8x8x16xf32, #tpu.memory_space<vmem>>, vector<1x8x16xf32>
    %276 = vector.shape_cast %275 : vector<1x8x16xf32> to vector<8x16xf32>
    %277 = vector.shape_cast %273 : vector<8x16xf32> to vector<1x8x16xf32>
    tpu.vector_store %arg15[%274, %c0_105, %c0_106], %277 {strides = array<i32>} : memref<8x8x16xf32, #tpu.memory_space<vmem>>, vector<1x8x16xf32>,
    %c4_i32 = arith.constant 4 : i32
    %278 = arith.index_cast %c4_i32 : i32 to index
    %c0_107 = arith.constant 0 : index
    %c0_108 = arith.constant 0 : index
    %279 = vector.load %arg2[%278, %c0_107, %c0_108] : memref<8x8x16xf32, #tpu.memory_space<vmem>>, vector<1x8x16xf32>
    %280 = vector.shape_cast %279 : vector<1x8x16xf32> to vector<8x16xf32>
    %cst_109 = arith.constant dense<0.000000e+00> : vector<8x32xf32>
    %281 = tpu.matmul %273, %0, %cst_109 {dimension_numbers = #tpu.dot_dimension_numbers<[1], [0], [0], [1], [0, 0, 1, 1], [], []>} : vector<8x16xf32>, vector<16x32xf32>, vector<8x32xf32> -> vector<8x32xf32>
    %cst_110 = arith.constant dense<0.000000e+00> : vector<8x32xf32>
    %282 = tpu.matmul %280, %1, %cst_110 {dimension_numbers = #tpu.dot_dimension_numbers<[1], [0], [0], [1], [0, 0, 1, 1], [], []>} : vector<8x16xf32>, vector<16x32xf32>, vector<8x32xf32> -> vector<8x32xf32>
    %283 = arith.addf %281, %282 : vector<8x32xf32>
    %284 = arith.addf %283, %4 : vector<8x32xf32>
    %cst_111 = arith.constant 0.000000e+00 : f32
    %285 = vector.broadcast %cst_111 : f32 to vector<8x32xf32>
    %286 = arith.maximumf %284, %285 : vector<8x32xf32>
    %cst_112 = arith.constant dense<0.000000e+00> : vector<8x32xf32>
    %287 = tpu.matmul %286, %5, %cst_112 {dimension_numbers = #tpu.dot_dimension_numbers<[1], [0], [0], [1], [0, 0, 1, 1], [], []>} : vector<8x32xf32>, vector<32x32xf32>, vector<8x32xf32> -> vector<8x32xf32>
    %288 = arith.addf %287, %8 : vector<8x32xf32>
    %cst_113 = arith.constant dense<0.000000e+00> : vector<8x128xf32>
    %289 = tpu.matmul %288, %10, %cst_113 {dimension_numbers = #tpu.dot_dimension_numbers<[1], [0], [0], [1], [0, 0, 1, 1], [], []>} : vector<8x32xf32>, vector<32x128xf32>, vector<8x128xf32> -> vector<8x128xf32>
    %cst_114 = arith.constant dense<0.000000e+00> : vector<8x128xf32>
    %290 = tpu.matmul %247, %14, %cst_114 {dimension_numbers = #tpu.dot_dimension_numbers<[1], [0], [0], [1], [0, 0, 1, 1], [], []>} : vector<8x32xf32>, vector<32x128xf32>, vector<8x128xf32> -> vector<8x128xf32>
    %291 = arith.addf %289, %290 : vector<8x128xf32>
    %292 = arith.addf %291, %20 : vector<8x128xf32>
    %293 = arith.negf %292 : vector<8x128xf32>
    %294 = math.exp %293 : vector<8x128xf32>
    %cst_115 = arith.constant 1.000000e+00 : f32
    %295 = vector.broadcast %cst_115 : f32 to vector<8x128xf32>
    %296 = arith.addf %295, %294 : vector<8x128xf32>
    %297 = arith.divf %295, %296 : vector<8x128xf32>
    %298 = vector.extract_strided_slice %297 {offsets = [0, 0], sizes = [8, 32], strides = [1, 1]} : vector<8x128xf32> to vector<8x32xf32>
    %299 = vector.extract_strided_slice %297 {offsets = [0, 32], sizes = [8, 32], strides = [1, 1]} : vector<8x128xf32> to vector<8x32xf32>
    %300 = vector.extract_strided_slice %297 {offsets = [0, 64], sizes = [8, 32], strides = [1, 1]} : vector<8x128xf32> to vector<8x32xf32>
    %301 = vector.extract_strided_slice %292 {offsets = [0, 96], sizes = [8, 32], strides = [1, 1]} : vector<8x128xf32> to vector<8x32xf32>
    %302 = math.tanh %301 : vector<8x32xf32>
    %303 = arith.mulf %299, %245 : vector<8x32xf32>
    %304 = arith.mulf %298, %302 : vector<8x32xf32>
    %305 = arith.addf %303, %304 : vector<8x32xf32>
    %306 = math.tanh %305 : vector<8x32xf32>
    %307 = arith.mulf %300, %306 : vector<8x32xf32>
    %cst_116 = arith.constant dense<0.000000e+00> : vector<8x128xf32>
    %308 = tpu.matmul %307, %12, %cst_116 {dimension_numbers = #tpu.dot_dimension_numbers<[1], [0], [0], [1], [0, 0, 1, 1], [], []>} : vector<8x32xf32>, vector<32x128xf32>, vector<8x128xf32> -> vector<8x128xf32>
    %cst_117 = arith.constant dense<0.000000e+00> : vector<8x128xf32>
    %309 = tpu.matmul %266, %16, %cst_117 {dimension_numbers = #tpu.dot_dimension_numbers<[1], [0], [0], [1], [0, 0, 1, 1], [], []>} : vector<8x32xf32>, vector<32x128xf32>, vector<8x128xf32> -> vector<8x128xf32>
    %310 = arith.addf %308, %309 : vector<8x128xf32>
    %311 = arith.addf %310, %24 : vector<8x128xf32>
    %312 = arith.negf %311 : vector<8x128xf32>
    %313 = math.exp %312 : vector<8x128xf32>
    %cst_118 = arith.constant 1.000000e+00 : f32
    %314 = vector.broadcast %cst_118 : f32 to vector<8x128xf32>
    %315 = arith.addf %314, %313 : vector<8x128xf32>
    %316 = arith.divf %314, %315 : vector<8x128xf32>
    %317 = vector.extract_strided_slice %316 {offsets = [0, 0], sizes = [8, 32], strides = [1, 1]} : vector<8x128xf32> to vector<8x32xf32>
    %318 = vector.extract_strided_slice %316 {offsets = [0, 32], sizes = [8, 32], strides = [1, 1]} : vector<8x128xf32> to vector<8x32xf32>
    %319 = vector.extract_strided_slice %316 {offsets = [0, 64], sizes = [8, 32], strides = [1, 1]} : vector<8x128xf32> to vector<8x32xf32>
    %320 = vector.extract_strided_slice %311 {offsets = [0, 96], sizes = [8, 32], strides = [1, 1]} : vector<8x128xf32> to vector<8x32xf32>
    %321 = math.tanh %320 : vector<8x32xf32>
    %322 = arith.mulf %318, %264 : vector<8x32xf32>
    %323 = arith.mulf %317, %321 : vector<8x32xf32>
    %324 = arith.addf %322, %323 : vector<8x32xf32>
    %325 = math.tanh %324 : vector<8x32xf32>
    %326 = arith.mulf %319, %325 : vector<8x32xf32>
    %cst_119 = arith.constant dense<0.000000e+00> : vector<8x32xf32>
    %327 = tpu.matmul %326, %25, %cst_119 {dimension_numbers = #tpu.dot_dimension_numbers<[1], [0], [0], [1], [0, 0, 1, 1], [], []>} : vector<8x32xf32>, vector<32x32xf32>, vector<8x32xf32> -> vector<8x32xf32>
    %328 = arith.addf %327, %28 : vector<8x32xf32>
    %cst_120 = arith.constant 0.000000e+00 : f32
    %329 = vector.broadcast %cst_120 : f32 to vector<8x32xf32>
    %330 = arith.maximumf %328, %329 : vector<8x32xf32>
    %cst_121 = arith.constant dense<0.000000e+00> : vector<8x16xf32>
    %331 = tpu.matmul %330, %29, %cst_121 {dimension_numbers = #tpu.dot_dimension_numbers<[1], [0], [0], [1], [0, 0, 1, 1], [], []>} : vector<8x32xf32>, vector<32x16xf32>, vector<8x16xf32> -> vector<8x16xf32>
    %332 = arith.addf %273, %331 : vector<8x16xf32>
    %333 = arith.addf %332, %32 : vector<8x16xf32>
    %334 = arith.index_cast %c4_i32 : i32 to index
    %c0_122 = arith.constant 0 : index
    %c0_123 = arith.constant 0 : index
    %335 = vector.load %arg15[%334, %c0_122, %c0_123] : memref<8x8x16xf32, #tpu.memory_space<vmem>>, vector<1x8x16xf32>
    %336 = vector.shape_cast %335 : vector<1x8x16xf32> to vector<8x16xf32>
    %337 = vector.shape_cast %333 : vector<8x16xf32> to vector<1x8x16xf32>
    tpu.vector_store %arg15[%334, %c0_122, %c0_123], %337 {strides = array<i32>} : memref<8x8x16xf32, #tpu.memory_space<vmem>>, vector<1x8x16xf32>,
    %c5_i32 = arith.constant 5 : i32
    %338 = arith.index_cast %c5_i32 : i32 to index
    %c0_124 = arith.constant 0 : index
    %c0_125 = arith.constant 0 : index
    %339 = vector.load %arg2[%338, %c0_124, %c0_125] : memref<8x8x16xf32, #tpu.memory_space<vmem>>, vector<1x8x16xf32>
    %340 = vector.shape_cast %339 : vector<1x8x16xf32> to vector<8x16xf32>
    %cst_126 = arith.constant dense<0.000000e+00> : vector<8x32xf32>
    %341 = tpu.matmul %333, %0, %cst_126 {dimension_numbers = #tpu.dot_dimension_numbers<[1], [0], [0], [1], [0, 0, 1, 1], [], []>} : vector<8x16xf32>, vector<16x32xf32>, vector<8x32xf32> -> vector<8x32xf32>
    %cst_127 = arith.constant dense<0.000000e+00> : vector<8x32xf32>
    %342 = tpu.matmul %340, %1, %cst_127 {dimension_numbers = #tpu.dot_dimension_numbers<[1], [0], [0], [1], [0, 0, 1, 1], [], []>} : vector<8x16xf32>, vector<16x32xf32>, vector<8x32xf32> -> vector<8x32xf32>
    %343 = arith.addf %341, %342 : vector<8x32xf32>
    %344 = arith.addf %343, %4 : vector<8x32xf32>
    %cst_128 = arith.constant 0.000000e+00 : f32
    %345 = vector.broadcast %cst_128 : f32 to vector<8x32xf32>
    %346 = arith.maximumf %344, %345 : vector<8x32xf32>
    %cst_129 = arith.constant dense<0.000000e+00> : vector<8x32xf32>
    %347 = tpu.matmul %346, %5, %cst_129 {dimension_numbers = #tpu.dot_dimension_numbers<[1], [0], [0], [1], [0, 0, 1, 1], [], []>} : vector<8x32xf32>, vector<32x32xf32>, vector<8x32xf32> -> vector<8x32xf32>
    %348 = arith.addf %347, %8 : vector<8x32xf32>
    %cst_130 = arith.constant dense<0.000000e+00> : vector<8x128xf32>
    %349 = tpu.matmul %348, %10, %cst_130 {dimension_numbers = #tpu.dot_dimension_numbers<[1], [0], [0], [1], [0, 0, 1, 1], [], []>} : vector<8x32xf32>, vector<32x128xf32>, vector<8x128xf32> -> vector<8x128xf32>
    %cst_131 = arith.constant dense<0.000000e+00> : vector<8x128xf32>
    %350 = tpu.matmul %307, %14, %cst_131 {dimension_numbers = #tpu.dot_dimension_numbers<[1], [0], [0], [1], [0, 0, 1, 1], [], []>} : vector<8x32xf32>, vector<32x128xf32>, vector<8x128xf32> -> vector<8x128xf32>
    %351 = arith.addf %349, %350 : vector<8x128xf32>
    %352 = arith.addf %351, %20 : vector<8x128xf32>
    %353 = arith.negf %352 : vector<8x128xf32>
    %354 = math.exp %353 : vector<8x128xf32>
    %cst_132 = arith.constant 1.000000e+00 : f32
    %355 = vector.broadcast %cst_132 : f32 to vector<8x128xf32>
    %356 = arith.addf %355, %354 : vector<8x128xf32>
    %357 = arith.divf %355, %356 : vector<8x128xf32>
    %358 = vector.extract_strided_slice %357 {offsets = [0, 0], sizes = [8, 32], strides = [1, 1]} : vector<8x128xf32> to vector<8x32xf32>
    %359 = vector.extract_strided_slice %357 {offsets = [0, 32], sizes = [8, 32], strides = [1, 1]} : vector<8x128xf32> to vector<8x32xf32>
    %360 = vector.extract_strided_slice %357 {offsets = [0, 64], sizes = [8, 32], strides = [1, 1]} : vector<8x128xf32> to vector<8x32xf32>
    %361 = vector.extract_strided_slice %352 {offsets = [0, 96], sizes = [8, 32], strides = [1, 1]} : vector<8x128xf32> to vector<8x32xf32>
    %362 = math.tanh %361 : vector<8x32xf32>
    %363 = arith.mulf %359, %305 : vector<8x32xf32>
    %364 = arith.mulf %358, %362 : vector<8x32xf32>
    %365 = arith.addf %363, %364 : vector<8x32xf32>
    %366 = math.tanh %365 : vector<8x32xf32>
    %367 = arith.mulf %360, %366 : vector<8x32xf32>
    %cst_133 = arith.constant dense<0.000000e+00> : vector<8x128xf32>
    %368 = tpu.matmul %367, %12, %cst_133 {dimension_numbers = #tpu.dot_dimension_numbers<[1], [0], [0], [1], [0, 0, 1, 1], [], []>} : vector<8x32xf32>, vector<32x128xf32>, vector<8x128xf32> -> vector<8x128xf32>
    %cst_134 = arith.constant dense<0.000000e+00> : vector<8x128xf32>
    %369 = tpu.matmul %326, %16, %cst_134 {dimension_numbers = #tpu.dot_dimension_numbers<[1], [0], [0], [1], [0, 0, 1, 1], [], []>} : vector<8x32xf32>, vector<32x128xf32>, vector<8x128xf32> -> vector<8x128xf32>
    %370 = arith.addf %368, %369 : vector<8x128xf32>
    %371 = arith.addf %370, %24 : vector<8x128xf32>
    %372 = arith.negf %371 : vector<8x128xf32>
    %373 = math.exp %372 : vector<8x128xf32>
    %cst_135 = arith.constant 1.000000e+00 : f32
    %374 = vector.broadcast %cst_135 : f32 to vector<8x128xf32>
    %375 = arith.addf %374, %373 : vector<8x128xf32>
    %376 = arith.divf %374, %375 : vector<8x128xf32>
    %377 = vector.extract_strided_slice %376 {offsets = [0, 0], sizes = [8, 32], strides = [1, 1]} : vector<8x128xf32> to vector<8x32xf32>
    %378 = vector.extract_strided_slice %376 {offsets = [0, 32], sizes = [8, 32], strides = [1, 1]} : vector<8x128xf32> to vector<8x32xf32>
    %379 = vector.extract_strided_slice %376 {offsets = [0, 64], sizes = [8, 32], strides = [1, 1]} : vector<8x128xf32> to vector<8x32xf32>
    %380 = vector.extract_strided_slice %371 {offsets = [0, 96], sizes = [8, 32], strides = [1, 1]} : vector<8x128xf32> to vector<8x32xf32>
    %381 = math.tanh %380 : vector<8x32xf32>
    %382 = arith.mulf %378, %324 : vector<8x32xf32>
    %383 = arith.mulf %377, %381 : vector<8x32xf32>
    %384 = arith.addf %382, %383 : vector<8x32xf32>
    %385 = math.tanh %384 : vector<8x32xf32>
    %386 = arith.mulf %379, %385 : vector<8x32xf32>
    %cst_136 = arith.constant dense<0.000000e+00> : vector<8x32xf32>
    %387 = tpu.matmul %386, %25, %cst_136 {dimension_numbers = #tpu.dot_dimension_numbers<[1], [0], [0], [1], [0, 0, 1, 1], [], []>} : vector<8x32xf32>, vector<32x32xf32>, vector<8x32xf32> -> vector<8x32xf32>
    %388 = arith.addf %387, %28 : vector<8x32xf32>
    %cst_137 = arith.constant 0.000000e+00 : f32
    %389 = vector.broadcast %cst_137 : f32 to vector<8x32xf32>
    %390 = arith.maximumf %388, %389 : vector<8x32xf32>
    %cst_138 = arith.constant dense<0.000000e+00> : vector<8x16xf32>
    %391 = tpu.matmul %390, %29, %cst_138 {dimension_numbers = #tpu.dot_dimension_numbers<[1], [0], [0], [1], [0, 0, 1, 1], [], []>} : vector<8x32xf32>, vector<32x16xf32>, vector<8x16xf32> -> vector<8x16xf32>
    %392 = arith.addf %333, %391 : vector<8x16xf32>
    %393 = arith.addf %392, %32 : vector<8x16xf32>
    %394 = arith.index_cast %c5_i32 : i32 to index
    %c0_139 = arith.constant 0 : index
    %c0_140 = arith.constant 0 : index
    %395 = vector.load %arg15[%394, %c0_139, %c0_140] : memref<8x8x16xf32, #tpu.memory_space<vmem>>, vector<1x8x16xf32>
    %396 = vector.shape_cast %395 : vector<1x8x16xf32> to vector<8x16xf32>
    %397 = vector.shape_cast %393 : vector<8x16xf32> to vector<1x8x16xf32>
    tpu.vector_store %arg15[%394, %c0_139, %c0_140], %397 {strides = array<i32>} : memref<8x8x16xf32, #tpu.memory_space<vmem>>, vector<1x8x16xf32>,
    %c6_i32 = arith.constant 6 : i32
    %398 = arith.index_cast %c6_i32 : i32 to index
    %c0_141 = arith.constant 0 : index
    %c0_142 = arith.constant 0 : index
    %399 = vector.load %arg2[%398, %c0_141, %c0_142] : memref<8x8x16xf32, #tpu.memory_space<vmem>>, vector<1x8x16xf32>
    %400 = vector.shape_cast %399 : vector<1x8x16xf32> to vector<8x16xf32>
    %cst_143 = arith.constant dense<0.000000e+00> : vector<8x32xf32>
    %401 = tpu.matmul %393, %0, %cst_143 {dimension_numbers = #tpu.dot_dimension_numbers<[1], [0], [0], [1], [0, 0, 1, 1], [], []>} : vector<8x16xf32>, vector<16x32xf32>, vector<8x32xf32> -> vector<8x32xf32>
    %cst_144 = arith.constant dense<0.000000e+00> : vector<8x32xf32>
    %402 = tpu.matmul %400, %1, %cst_144 {dimension_numbers = #tpu.dot_dimension_numbers<[1], [0], [0], [1], [0, 0, 1, 1], [], []>} : vector<8x16xf32>, vector<16x32xf32>, vector<8x32xf32> -> vector<8x32xf32>
    %403 = arith.addf %401, %402 : vector<8x32xf32>
    %404 = arith.addf %403, %4 : vector<8x32xf32>
    %cst_145 = arith.constant 0.000000e+00 : f32
    %405 = vector.broadcast %cst_145 : f32 to vector<8x32xf32>
    %406 = arith.maximumf %404, %405 : vector<8x32xf32>
    %cst_146 = arith.constant dense<0.000000e+00> : vector<8x32xf32>
    %407 = tpu.matmul %406, %5, %cst_146 {dimension_numbers = #tpu.dot_dimension_numbers<[1], [0], [0], [1], [0, 0, 1, 1], [], []>} : vector<8x32xf32>, vector<32x32xf32>, vector<8x32xf32> -> vector<8x32xf32>
    %408 = arith.addf %407, %8 : vector<8x32xf32>
    %cst_147 = arith.constant dense<0.000000e+00> : vector<8x128xf32>
    %409 = tpu.matmul %408, %10, %cst_147 {dimension_numbers = #tpu.dot_dimension_numbers<[1], [0], [0], [1], [0, 0, 1, 1], [], []>} : vector<8x32xf32>, vector<32x128xf32>, vector<8x128xf32> -> vector<8x128xf32>
    %cst_148 = arith.constant dense<0.000000e+00> : vector<8x128xf32>
    %410 = tpu.matmul %367, %14, %cst_148 {dimension_numbers = #tpu.dot_dimension_numbers<[1], [0], [0], [1], [0, 0, 1, 1], [], []>} : vector<8x32xf32>, vector<32x128xf32>, vector<8x128xf32> -> vector<8x128xf32>
    %411 = arith.addf %409, %410 : vector<8x128xf32>
    %412 = arith.addf %411, %20 : vector<8x128xf32>
    %413 = arith.negf %412 : vector<8x128xf32>
    %414 = math.exp %413 : vector<8x128xf32>
    %cst_149 = arith.constant 1.000000e+00 : f32
    %415 = vector.broadcast %cst_149 : f32 to vector<8x128xf32>
    %416 = arith.addf %415, %414 : vector<8x128xf32>
    %417 = arith.divf %415, %416 : vector<8x128xf32>
    %418 = vector.extract_strided_slice %417 {offsets = [0, 0], sizes = [8, 32], strides = [1, 1]} : vector<8x128xf32> to vector<8x32xf32>
    %419 = vector.extract_strided_slice %417 {offsets = [0, 32], sizes = [8, 32], strides = [1, 1]} : vector<8x128xf32> to vector<8x32xf32>
    %420 = vector.extract_strided_slice %417 {offsets = [0, 64], sizes = [8, 32], strides = [1, 1]} : vector<8x128xf32> to vector<8x32xf32>
    %421 = vector.extract_strided_slice %412 {offsets = [0, 96], sizes = [8, 32], strides = [1, 1]} : vector<8x128xf32> to vector<8x32xf32>
    %422 = math.tanh %421 : vector<8x32xf32>
    %423 = arith.mulf %419, %365 : vector<8x32xf32>
    %424 = arith.mulf %418, %422 : vector<8x32xf32>
    %425 = arith.addf %423, %424 : vector<8x32xf32>
    %426 = math.tanh %425 : vector<8x32xf32>
    %427 = arith.mulf %420, %426 : vector<8x32xf32>
    %cst_150 = arith.constant dense<0.000000e+00> : vector<8x128xf32>
    %428 = tpu.matmul %427, %12, %cst_150 {dimension_numbers = #tpu.dot_dimension_numbers<[1], [0], [0], [1], [0, 0, 1, 1], [], []>} : vector<8x32xf32>, vector<32x128xf32>, vector<8x128xf32> -> vector<8x128xf32>
    %cst_151 = arith.constant dense<0.000000e+00> : vector<8x128xf32>
    %429 = tpu.matmul %386, %16, %cst_151 {dimension_numbers = #tpu.dot_dimension_numbers<[1], [0], [0], [1], [0, 0, 1, 1], [], []>} : vector<8x32xf32>, vector<32x128xf32>, vector<8x128xf32> -> vector<8x128xf32>
    %430 = arith.addf %428, %429 : vector<8x128xf32>
    %431 = arith.addf %430, %24 : vector<8x128xf32>
    %432 = arith.negf %431 : vector<8x128xf32>
    %433 = math.exp %432 : vector<8x128xf32>
    %cst_152 = arith.constant 1.000000e+00 : f32
    %434 = vector.broadcast %cst_152 : f32 to vector<8x128xf32>
    %435 = arith.addf %434, %433 : vector<8x128xf32>
    %436 = arith.divf %434, %435 : vector<8x128xf32>
    %437 = vector.extract_strided_slice %436 {offsets = [0, 0], sizes = [8, 32], strides = [1, 1]} : vector<8x128xf32> to vector<8x32xf32>
    %438 = vector.extract_strided_slice %436 {offsets = [0, 32], sizes = [8, 32], strides = [1, 1]} : vector<8x128xf32> to vector<8x32xf32>
    %439 = vector.extract_strided_slice %436 {offsets = [0, 64], sizes = [8, 32], strides = [1, 1]} : vector<8x128xf32> to vector<8x32xf32>
    %440 = vector.extract_strided_slice %431 {offsets = [0, 96], sizes = [8, 32], strides = [1, 1]} : vector<8x128xf32> to vector<8x32xf32>
    %441 = math.tanh %440 : vector<8x32xf32>
    %442 = arith.mulf %438, %384 : vector<8x32xf32>
    %443 = arith.mulf %437, %441 : vector<8x32xf32>
    %444 = arith.addf %442, %443 : vector<8x32xf32>
    %445 = math.tanh %444 : vector<8x32xf32>
    %446 = arith.mulf %439, %445 : vector<8x32xf32>
    %cst_153 = arith.constant dense<0.000000e+00> : vector<8x32xf32>
    %447 = tpu.matmul %446, %25, %cst_153 {dimension_numbers = #tpu.dot_dimension_numbers<[1], [0], [0], [1], [0, 0, 1, 1], [], []>} : vector<8x32xf32>, vector<32x32xf32>, vector<8x32xf32> -> vector<8x32xf32>
    %448 = arith.addf %447, %28 : vector<8x32xf32>
    %cst_154 = arith.constant 0.000000e+00 : f32
    %449 = vector.broadcast %cst_154 : f32 to vector<8x32xf32>
    %450 = arith.maximumf %448, %449 : vector<8x32xf32>
    %cst_155 = arith.constant dense<0.000000e+00> : vector<8x16xf32>
    %451 = tpu.matmul %450, %29, %cst_155 {dimension_numbers = #tpu.dot_dimension_numbers<[1], [0], [0], [1], [0, 0, 1, 1], [], []>} : vector<8x32xf32>, vector<32x16xf32>, vector<8x16xf32> -> vector<8x16xf32>
    %452 = arith.addf %393, %451 : vector<8x16xf32>
    %453 = arith.addf %452, %32 : vector<8x16xf32>
    %454 = arith.index_cast %c6_i32 : i32 to index
    %c0_156 = arith.constant 0 : index
    %c0_157 = arith.constant 0 : index
    %455 = vector.load %arg15[%454, %c0_156, %c0_157] : memref<8x8x16xf32, #tpu.memory_space<vmem>>, vector<1x8x16xf32>
    %456 = vector.shape_cast %455 : vector<1x8x16xf32> to vector<8x16xf32>
    %457 = vector.shape_cast %453 : vector<8x16xf32> to vector<1x8x16xf32>
    tpu.vector_store %arg15[%454, %c0_156, %c0_157], %457 {strides = array<i32>} : memref<8x8x16xf32, #tpu.memory_space<vmem>>, vector<1x8x16xf32>,
    %c7_i32 = arith.constant 7 : i32
    %458 = arith.index_cast %c7_i32 : i32 to index
    %c0_158 = arith.constant 0 : index
    %c0_159 = arith.constant 0 : index
    %459 = vector.load %arg2[%458, %c0_158, %c0_159] : memref<8x8x16xf32, #tpu.memory_space<vmem>>, vector<1x8x16xf32>
    %460 = vector.shape_cast %459 : vector<1x8x16xf32> to vector<8x16xf32>
    %cst_160 = arith.constant dense<0.000000e+00> : vector<8x32xf32>
    %461 = tpu.matmul %453, %0, %cst_160 {dimension_numbers = #tpu.dot_dimension_numbers<[1], [0], [0], [1], [0, 0, 1, 1], [], []>} : vector<8x16xf32>, vector<16x32xf32>, vector<8x32xf32> -> vector<8x32xf32>
    %cst_161 = arith.constant dense<0.000000e+00> : vector<8x32xf32>
    %462 = tpu.matmul %460, %1, %cst_161 {dimension_numbers = #tpu.dot_dimension_numbers<[1], [0], [0], [1], [0, 0, 1, 1], [], []>} : vector<8x16xf32>, vector<16x32xf32>, vector<8x32xf32> -> vector<8x32xf32>
    %463 = arith.addf %461, %462 : vector<8x32xf32>
    %464 = arith.addf %463, %4 : vector<8x32xf32>
    %cst_162 = arith.constant 0.000000e+00 : f32
    %465 = vector.broadcast %cst_162 : f32 to vector<8x32xf32>
    %466 = arith.maximumf %464, %465 : vector<8x32xf32>
    %cst_163 = arith.constant dense<0.000000e+00> : vector<8x32xf32>
    %467 = tpu.matmul %466, %5, %cst_163 {dimension_numbers = #tpu.dot_dimension_numbers<[1], [0], [0], [1], [0, 0, 1, 1], [], []>} : vector<8x32xf32>, vector<32x32xf32>, vector<8x32xf32> -> vector<8x32xf32>
    %468 = arith.addf %467, %8 : vector<8x32xf32>
    %cst_164 = arith.constant dense<0.000000e+00> : vector<8x128xf32>
    %469 = tpu.matmul %468, %10, %cst_164 {dimension_numbers = #tpu.dot_dimension_numbers<[1], [0], [0], [1], [0, 0, 1, 1], [], []>} : vector<8x32xf32>, vector<32x128xf32>, vector<8x128xf32> -> vector<8x128xf32>
    %cst_165 = arith.constant dense<0.000000e+00> : vector<8x128xf32>
    %470 = tpu.matmul %427, %14, %cst_165 {dimension_numbers = #tpu.dot_dimension_numbers<[1], [0], [0], [1], [0, 0, 1, 1], [], []>} : vector<8x32xf32>, vector<32x128xf32>, vector<8x128xf32> -> vector<8x128xf32>
    %471 = arith.addf %469, %470 : vector<8x128xf32>
    %472 = arith.addf %471, %20 : vector<8x128xf32>
    %473 = arith.negf %472 : vector<8x128xf32>
    %474 = math.exp %473 : vector<8x128xf32>
    %cst_166 = arith.constant 1.000000e+00 : f32
    %475 = vector.broadcast %cst_166 : f32 to vector<8x128xf32>
    %476 = arith.addf %475, %474 : vector<8x128xf32>
    %477 = arith.divf %475, %476 : vector<8x128xf32>
    %478 = vector.extract_strided_slice %477 {offsets = [0, 0], sizes = [8, 32], strides = [1, 1]} : vector<8x128xf32> to vector<8x32xf32>
    %479 = vector.extract_strided_slice %477 {offsets = [0, 32], sizes = [8, 32], strides = [1, 1]} : vector<8x128xf32> to vector<8x32xf32>
    %480 = vector.extract_strided_slice %477 {offsets = [0, 64], sizes = [8, 32], strides = [1, 1]} : vector<8x128xf32> to vector<8x32xf32>
    %481 = vector.extract_strided_slice %472 {offsets = [0, 96], sizes = [8, 32], strides = [1, 1]} : vector<8x128xf32> to vector<8x32xf32>
    %482 = math.tanh %481 : vector<8x32xf32>
    %483 = arith.mulf %479, %425 : vector<8x32xf32>
    %484 = arith.mulf %478, %482 : vector<8x32xf32>
    %485 = arith.addf %483, %484 : vector<8x32xf32>
    %486 = math.tanh %485 : vector<8x32xf32>
    %487 = arith.mulf %480, %486 : vector<8x32xf32>
    %cst_167 = arith.constant dense<0.000000e+00> : vector<8x128xf32>
    %488 = tpu.matmul %487, %12, %cst_167 {dimension_numbers = #tpu.dot_dimension_numbers<[1], [0], [0], [1], [0, 0, 1, 1], [], []>} : vector<8x32xf32>, vector<32x128xf32>, vector<8x128xf32> -> vector<8x128xf32>
    %cst_168 = arith.constant dense<0.000000e+00> : vector<8x128xf32>
    %489 = tpu.matmul %446, %16, %cst_168 {dimension_numbers = #tpu.dot_dimension_numbers<[1], [0], [0], [1], [0, 0, 1, 1], [], []>} : vector<8x32xf32>, vector<32x128xf32>, vector<8x128xf32> -> vector<8x128xf32>
    %490 = arith.addf %488, %489 : vector<8x128xf32>
    %491 = arith.addf %490, %24 : vector<8x128xf32>
    %492 = arith.negf %491 : vector<8x128xf32>
    %493 = math.exp %492 : vector<8x128xf32>
    %cst_169 = arith.constant 1.000000e+00 : f32
    %494 = vector.broadcast %cst_169 : f32 to vector<8x128xf32>
    %495 = arith.addf %494, %493 : vector<8x128xf32>
    %496 = arith.divf %494, %495 : vector<8x128xf32>
    %497 = vector.extract_strided_slice %496 {offsets = [0, 0], sizes = [8, 32], strides = [1, 1]} : vector<8x128xf32> to vector<8x32xf32>
    %498 = vector.extract_strided_slice %496 {offsets = [0, 32], sizes = [8, 32], strides = [1, 1]} : vector<8x128xf32> to vector<8x32xf32>
    %499 = vector.extract_strided_slice %496 {offsets = [0, 64], sizes = [8, 32], strides = [1, 1]} : vector<8x128xf32> to vector<8x32xf32>
    %500 = vector.extract_strided_slice %491 {offsets = [0, 96], sizes = [8, 32], strides = [1, 1]} : vector<8x128xf32> to vector<8x32xf32>
    %501 = math.tanh %500 : vector<8x32xf32>
    %502 = arith.mulf %498, %444 : vector<8x32xf32>
    %503 = arith.mulf %497, %501 : vector<8x32xf32>
    %504 = arith.addf %502, %503 : vector<8x32xf32>
    %505 = math.tanh %504 : vector<8x32xf32>
    %506 = arith.mulf %499, %505 : vector<8x32xf32>
    %cst_170 = arith.constant dense<0.000000e+00> : vector<8x32xf32>
    %507 = tpu.matmul %506, %25, %cst_170 {dimension_numbers = #tpu.dot_dimension_numbers<[1], [0], [0], [1], [0, 0, 1, 1], [], []>} : vector<8x32xf32>, vector<32x32xf32>, vector<8x32xf32> -> vector<8x32xf32>
    %508 = arith.addf %507, %28 : vector<8x32xf32>
    %cst_171 = arith.constant 0.000000e+00 : f32
    %509 = vector.broadcast %cst_171 : f32 to vector<8x32xf32>
    %510 = arith.maximumf %508, %509 : vector<8x32xf32>
    %cst_172 = arith.constant dense<0.000000e+00> : vector<8x16xf32>
    %511 = tpu.matmul %510, %29, %cst_172 {dimension_numbers = #tpu.dot_dimension_numbers<[1], [0], [0], [1], [0, 0, 1, 1], [], []>} : vector<8x32xf32>, vector<32x16xf32>, vector<8x16xf32> -> vector<8x16xf32>
    %512 = arith.addf %453, %511 : vector<8x16xf32>
    %513 = arith.addf %512, %32 : vector<8x16xf32>
    %514 = arith.index_cast %c7_i32 : i32 to index
    %c0_173 = arith.constant 0 : index
    %c0_174 = arith.constant 0 : index
    %515 = vector.load %arg15[%514, %c0_173, %c0_174] : memref<8x8x16xf32, #tpu.memory_space<vmem>>, vector<1x8x16xf32>
    %516 = vector.shape_cast %515 : vector<1x8x16xf32> to vector<8x16xf32>
    %517 = vector.shape_cast %513 : vector<8x16xf32> to vector<1x8x16xf32>
    tpu.vector_store %arg15[%514, %c0_173, %c0_174], %517 {strides = array<i32>} : memref<8x8x16xf32, #tpu.memory_space<vmem>>, vector<1x8x16xf32>,
    %c8_i32 = arith.constant 8 : i32
    return
  }
  func.func @transform_0(%arg0: i32) -> (i32, i32) {
    %c0_i32 = arith.constant 0 : i32
    %c0_i32_0 = arith.constant 0 : i32
    %c0_i32_1 = arith.constant 0 : i32
    return %c0_i32, %c0_i32_0 : i32, i32
  }
  func.func @transform_1(%arg0: i32) -> (i32, i32, i32) {
    %c0_i32 = arith.constant 0 : i32
    %c0_i32_0 = arith.constant 0 : i32
    %c0_i32_1 = arith.constant 0 : i32
    %c0_i32_2 = arith.constant 0 : i32
    return %c0_i32, %c0_i32_0, %c0_i32_1 : i32, i32, i32
  }
  func.func @transform_2(%arg0: i32) -> (i32, i32) {
    %c0_i32 = arith.constant 0 : i32
    %c0_i32_0 = arith.constant 0 : i32
    %c0_i32_1 = arith.constant 0 : i32
    return %c0_i32, %c0_i32_0 : i32, i32
  }
  func.func @transform_3(%arg0: i32) -> (i32, i32) {
    %c0_i32 = arith.constant 0 : i32
    %c0_i32_0 = arith.constant 0 : i32
    %c0_i32_1 = arith.constant 0 : i32
    return %c0_i32, %c0_i32_0 : i32, i32
  }
  func.func @transform_4(%arg0: i32) -> (i32, i32) {
    %c0_i32 = arith.constant 0 : i32
    %c0_i32_0 = arith.constant 0 : i32
    %c0_i32_1 = arith.constant 0 : i32
    return %c0_i32, %c0_i32_0 : i32, i32
  }
  func.func @transform_5(%arg0: i32) -> (i32, i32) {
    %c0_i32 = arith.constant 0 : i32
    %c0_i32_0 = arith.constant 0 : i32
    %c0_i32_1 = arith.constant 0 : i32
    return %c0_i32, %c0_i32_0 : i32, i32
  }
  func.func @transform_6(%arg0: i32) -> (i32, i32) {
    %c0_i32 = arith.constant 0 : i32
    %c0_i32_0 = arith.constant 0 : i32
    %c0_i32_1 = arith.constant 0 : i32
    return %c0_i32, %c0_i32_0 : i32, i32
  }
  func.func @transform_7(%arg0: i32) -> (i32, i32, i32) {
    %c0_i32 = arith.constant 0 : i32
    %c0_i32_0 = arith.constant 0 : i32
    %c0_i32_1 = arith.constant 0 : i32
    %c0_i32_2 = arith.constant 0 : i32
    return %c0_i32, %c0_i32_0, %c0_i32_1 : i32, i32, i32
  }
  func.func @transform_8(%arg0: i32) -> (i32, i32, i32) {
    %c0_i32 = arith.constant 0 : i32
    %c0_i32_0 = arith.constant 0 : i32
    %c0_i32_1 = arith.constant 0 : i32
    %c0_i32_2 = arith.constant 0 : i32
    return %c0_i32, %c0_i32_0, %c0_i32_1 : i32, i32, i32
  }
  func.func @transform_9(%arg0: i32) -> (i32, i32, i32) {
    %c0_i32 = arith.constant 0 : i32
    %c0_i32_0 = arith.constant 0 : i32
    %c0_i32_1 = arith.constant 0 : i32
    %c0_i32_2 = arith.constant 0 : i32
    return %c0_i32, %c0_i32_0, %c0_i32_1 : i32, i32, i32
  }
  func.func @transform_10(%arg0: i32) -> (i32, i32) {
    %c0_i32 = arith.constant 0 : i32
    %c0_i32_0 = arith.constant 0 : i32
    %c0_i32_1 = arith.constant 0 : i32
    return %c0_i32, %c0_i32_0 : i32, i32
  }
  func.func @transform_11(%arg0: i32) -> (i32, i32) {
    %c0_i32 = arith.constant 0 : i32
    %c0_i32_0 = arith.constant 0 : i32
    %c0_i32_1 = arith.constant 0 : i32
    return %c0_i32, %c0_i32_0 : i32, i32
  }
  func.func @transform_12(%arg0: i32) -> (i32, i32) {
    %c0_i32 = arith.constant 0 : i32
    %c0_i32_0 = arith.constant 0 : i32
    %c0_i32_1 = arith.constant 0 : i32
    return %c0_i32, %c0_i32_0 : i32, i32
  }
  func.func @transform_13(%arg0: i32) -> (i32, i32) {
    %c0_i32 = arith.constant 0 : i32
    %c0_i32_0 = arith.constant 0 : i32
    %c0_i32_1 = arith.constant 0 : i32
    return %c0_i32, %c0_i32_0 : i32, i32
  }
  func.func @transform_14(%arg0: i32) -> (i32, i32, i32) {
    %c0_i32 = arith.constant 0 : i32
    %c0_i32_0 = arith.constant 0 : i32
    %c0_i32_1 = arith.constant 0 : i32
    %c0_i32_2 = arith.constant 0 : i32
    return %c0_i32, %c0_i32_0, %c0_i32_1 : i32, i32, i32
  }
}

</mosaic_0001>

<bundles_post_ra>
// kernel: tpu_custom_call.1
= control target key start
LH: loop header
LB: loop body
LE: loop exit
PB: predicated region body
PF: predicated region fallthrough
CT: control target
= control target key end

     0   :  { %19 = vsyncpa [#allocation3], 0  ;;  %s8878_s0 = inlined_call_operand.hbm [shape: f32[8,16], index: 0, kind: input, shape index: {}]   ;;  %s8879_s1 = inlined_call_operand.hbm [shape: f32[8,8,16], index: 1, kind: input, shape index: {}]   ;;  %s8880_s2 = inlined_call_operand.hbm [shape: f32[16,32], index: 2, kind: input, shape index: {}]   ;;  %s8881_s3 = inlined_call_operand.hbm [shape: f32[16,32], index: 3, kind: input, shape index: {}]   ;;  %s8882_s4 = inlined_call_operand.hbm [shape: f32[1,32], index: 4, kind: input, shape index: {}]   ;;  %s8883_s5 = inlined_call_operand.vmem [shape: f32[32,32], index: 5, kind: input, shape index: {}]   ;;  %s8884_s6 = inlined_call_operand.hbm [shape: f32[1,32], index: 6, kind: input, shape index: {}]   ;;  %s8885_s7 = inlined_call_operand.hbm [shape: f32[2,32,128], index: 7, kind: input, shape index: {}]   ;;  %s8886_s8 = inlined_call_operand.hbm [shape: f32[2,32,128], index: 8, kind: input, shape index: {}]   ;;  %s8887_s9 = inlined_call_operand.hbm [shape: f32[2,1,128], index: 9, kind: input, shape index: {}]   ;;  %s8888_s10 = inlined_call_operand.vmem [shape: f32[32,32], index: 10, kind: input, shape index: {}]   ;;  %s8889_s11 = inlined_call_operand.vmem [shape: f32[1,32], index: 11, kind: input, shape index: {}]   ;;  %s8890_s12 = inlined_call_operand.vmem [shape: f32[32,16], index: 12, kind: input, shape index: {}]   ;;  %s8891_s13 = inlined_call_operand.vmem [shape: f32[1,16], index: 13, kind: input, shape index: {}]   ;;  %s8892_s14 = inlined_call_operand.hbm [shape: f32[8,8,16], index: 14, kind: output, shape index: {}]  }
   0x1   :  { %20 = vsyncpa [#allocation6], 0 }
   0x2   :  { %21 = vsyncpa [#allocation9], 0 }
   0x3   :  { %22 = vsyncpa [#allocation12], 0 }
   0x4   :  { %23 = vsyncpa [#allocation15], 0 }
   0x5   :  { %24 = vsyncpa [#allocation4], 0  ;;  %s7531_s29 = smov [#allocation5]  }
   0x6   :  { %s40_s30 = sshll.u32 %s7531_s29, 4  ;;  %s41_s30 = int_to_ptr.vmem [resolvable:$true] %s40_s30 }
   0x7   :  { %s7327_s15 = scalar_lea.vmem %s41_s30, 1024  ;;  %p7332_p1 = scmp.lt.s32.totalorder %s41_s30, %s41_s30 }
   0x8   :  { %p7328_p0 = scmp.ne.s32.totalorder %s41_s30, %s7327_s15  ;;  %p7333_p2 = scmp.lt.s32.totalorder %s7327_s15, %s7327_s15 }
   0xa   :  { %p7334_p3 = por %p7333_p2, %p7332_p1 }
   0xc   :  { %p7335_p4 = pnand %p7334_p3, %p7328_p0 }
   0xe   :  { %7338 = shalt.err (!%p7335_p4)
}
   0xf   :  { %s7532_s16 = smov 128   ;;  %s7533_s17 = smov 8  }
  0x10   :  { %46 = dma.hbm_to_vmem [thread:$0]  %s8879_s1, 1024, %s41_s30, [#allocation6], %s7532_s16, %s7532_s16, %s7533_s17  }
  0x11   :  { %s7534_s20 = smov [#allocation8]   ;;  %s7535_s22 = smov [#allocation11]  }
  0x12   :  { %s64_s21 = sshll.u32 %s7534_s20, 4  ;;  %s89_s23 = sshll.u32 %s7535_s22, 4  ;;  %s65_s21 = int_to_ptr.vmem [resolvable:$true] %s64_s21  ;;  %s90_s23 = int_to_ptr.vmem [resolvable:$true] %s89_s23 }
  0x13   :  { %s7347_s24 = scalar_lea.vmem %s65_s21, 256  ;;  %p7352_p6 = scmp.lt.s32.totalorder %s65_s21, %s65_s21 }
  0x14   :  { %p7348_p5 = scmp.ne.s32.totalorder %s65_s21, %s7347_s24  ;;  %p7353_p7 = scmp.lt.s32.totalorder %s7347_s24, %s7347_s24 }
  0x16   :  { %p7354_p8 = por %p7353_p7, %p7352_p6 }
  0x18   :  { %p7355_p9 = pnand %p7354_p8, %p7348_p5 }
  0x1a   :  { %7358 = shalt.err (!%p7355_p9)
}
  0x1b   :  { %70 = dma.hbm_to_vmem [thread:$0]  %s8881_s3, 256, %s65_s21, [#allocation9], %s7532_s16, %s7532_s16, %s7533_s17  }
  0x1c   :  { %s7367_s1 = scalar_lea.vmem %s90_s23, 16  ;;  %s7371_s27 = scalar_lea.vmem %s90_s23, 32 }
  0x1d   :  { %p7368_p10 = scmp.ne.s32.totalorder %s90_s23, %s7367_s1  ;;  %p7372_p11 = scmp.lt.s32.totalorder %s90_s23, %s90_s23 }
  0x1e   :  { %p7373_p12 = scmp.lt.s32.totalorder %s7371_s27, %s7367_s1 }
  0x20   :  { %p7374_p13 = por %p7373_p12, %p7372_p11 }
  0x22   :  { %p7375_p0 = pnand %p7374_p13, %p7368_p10 }
  0x24   :  { %7378 = shalt.err (!%p7375_p0)
}
  0x25   :  { %92 = dma.hbm_to_vmem [thread:$0]  %s8884_s6, 16, %s90_s23, [#allocation12]  }
  0x26   :  { %s7536_s30 = smov [#allocation14]   ;;  %s7537_s18 = smov [#allocation2]  }
  0x27   :  { %s110_s15 = sshll.u32 %s7536_s30, 4  ;;  %s31_s19 = sshll.u32 %s7537_s18, 4  ;;  %s111_s15 = int_to_ptr.vmem [resolvable:$true] %s110_s15  ;;  %s32_s19 = int_to_ptr.vmem [resolvable:$true] %s31_s19 }
  0x28   :  { %s7387_s20 = scalar_lea.vmem %s111_s15, 1024  ;;  %p7392_p2 = scmp.lt.s32.totalorder %s111_s15, %s111_s15 }
  0x29   :  { %p7388_p1 = scmp.ne.s32.totalorder %s111_s15, %s7387_s20  ;;  %p7393_p3 = scmp.lt.s32.totalorder %s7387_s20, %s7387_s20 }
  0x2b   :  { %p7394_p4 = por %p7393_p3, %p7392_p2 }
  0x2d   :  { %p7395_p5 = pnand %p7394_p4, %p7388_p1 }
  0x2f   :  { %7398 = shalt.err (!%p7395_p5)
}
  0x30   :  { %116 = dma.hbm_to_vmem [thread:$0]  %s8886_s8, 1024, %s111_s15, [#allocation15], %s7532_s16, %s7532_s16, %s7533_s17  }
  0x31   :  { %s7407_s6 = scalar_lea.vmem %s32_s19, 128  ;;  %p7412_p7 = scmp.lt.s32.totalorder %s32_s19, %s32_s19 }
  0x32   :  { %p7408_p6 = scmp.ne.s32.totalorder %s32_s19, %s7407_s6  ;;  %p7413_p8 = scmp.lt.s32.totalorder %s7407_s6, %s7407_s6 }
  0x34   :  { %p7414_p9 = por %p7413_p8, %p7412_p7 }
  0x36   :  { %p7415_p10 = pnand %p7414_p9, %p7408_p6 }
  0x38   :  { %7418 = shalt.err (!%p7415_p10)
}
  0x39   :  { %34 = dma.hbm_to_vmem [thread:$0]  %s8878_s0, 128, %s32_s19, [#allocation3]  }
  0x3a   :  { %s7538_s24 = smov [#allocation7]   ;;  %s7539_s26 = smov [#allocation10]  }
  0x3b   :  { %s52_s25 = sshll.u32 %s7538_s24, 4  ;;  %s77_s1 = sshll.u32 %s7539_s26, 4  ;;  %s53_s25 = int_to_ptr.vmem [resolvable:$true] %s52_s25  ;;  %s78_s1 = int_to_ptr.vmem [resolvable:$true] %s77_s1 }
  0x3c   :  { %s7427_s27 = scalar_lea.vmem %s53_s25, 256  ;;  %p7432_p12 = scmp.lt.s32.totalorder %s53_s25, %s53_s25 }
  0x3d   :  { %p7428_p11 = scmp.ne.s32.totalorder %s53_s25, %s7427_s27  ;;  %p7433_p13 = scmp.lt.s32.totalorder %s7427_s27, %s7427_s27 }
  0x3f   :  { %p7434_p0 = por %p7433_p13, %p7432_p12 }
  0x41   :  { %p7435_p1 = pnand %p7434_p0, %p7428_p11 }
  0x43   :  { %7438 = shalt.err (!%p7435_p1)
}
  0x44   :  { %58 = dma.hbm_to_vmem [thread:$0]  %s8880_s2, 256, %s53_s25, [#allocation6], %s7532_s16, %s7532_s16, %s7533_s17  }
  0x45   :  { %s7447_s0 = scalar_lea.vmem %s78_s1, 16  ;;  %s7451_s29 = scalar_lea.vmem %s78_s1, 32 }
  0x46   :  { %p7448_p2 = scmp.ne.s32.totalorder %s78_s1, %s7447_s0  ;;  %p7452_p3 = scmp.lt.s32.totalorder %s78_s1, %s78_s1 }
  0x47   :  { %p7453_p4 = scmp.lt.s32.totalorder %s7451_s29, %s7447_s0 }
  0x49   :  { %p7454_p5 = por %p7453_p4, %p7452_p3 }
  0x4b   :  { %p7455_p6 = pnand %p7454_p5, %p7448_p2 }
  0x4d   :  { %7458 = shalt.err (!%p7455_p6)
}
  0x4e   :  { %80 = dma.hbm_to_vmem [thread:$0]  %s8882_s4, 16, %s78_s1, [#allocation9]  }
  0x4f   :  { %s7540_s18 = smov [#allocation13]   ;;  %s7541_s20 = smov [#allocation16]  }
  0x50   :  { %s98_s19 = sshll.u32 %s7540_s18, 4  ;;  %s122_s3 = sshll.u32 %s7541_s20, 4  ;;  %s99_s19 = int_to_ptr.vmem [resolvable:$true] %s98_s19  ;;  %s123_s3 = int_to_ptr.vmem [resolvable:$true] %s122_s3 }
  0x51   :  { %s7467_s21 = scalar_lea.vmem %s99_s19, 1024  ;;  %p7472_p8 = scmp.lt.s32.totalorder %s99_s19, %s99_s19 }
  0x52   :  { %p7468_p7 = scmp.ne.s32.totalorder %s99_s19, %s7467_s21  ;;  %p7473_p9 = scmp.lt.s32.totalorder %s7467_s21, %s7467_s21 }
  0x54   :  { %p7474_p10 = por %p7473_p9, %p7472_p8 }
  0x56   :  { %p7475_p11 = pnand %p7474_p10, %p7468_p7 }
  0x58   :  { %7478 = shalt.err (!%p7475_p11)
}
  0x59   :  { %104 = dma.hbm_to_vmem [thread:$0]  %s8885_s7, 1024, %s99_s19, [#allocation12], %s7532_s16, %s7532_s16, %s7533_s17  }
  0x5a   :  { %s7487_s4 = scalar_lea.vmem %s123_s3, 32  ;;  %p7492_p13 = scmp.lt.s32.totalorder %s123_s3, %s123_s3 }
  0x5b   :  { %p7488_p12 = scmp.ne.s32.totalorder %s123_s3, %s7487_s4  ;;  %p7493_p0 = scmp.lt.s32.totalorder %s7487_s4, %s7487_s4 }
  0x5d   :  { %p7494_p1 = por %p7493_p0, %p7492_p13 }
  0x5f   :  { %p7495_p2 = pnand %p7494_p1, %p7488_p12 }
  0x61   :  { %7498 = shalt.err (!%p7495_p2)
}
  0x62   :  { %s7542_s22 = smov 16   ;;  %s7543_s23 = smov 1  }
  0x63   :  { %128 = dma.hbm_to_vmem [thread:$0]  %s8887_s9, 32, %s123_s3, [#allocation15], %s7542_s22, %s7542_s22, %s7543_s23  }
  0x64   :  { %7519 = dma.done.wait [#allocation3], 128  }
  0x65   :  { %7520 = vsyncadd [#allocation3], 4294967168 }
  0x66   :  { %7521 = dma.done.wait [#allocation6], 1280  }
  0x67   :  { %7522 = vsyncadd [#allocation6], 4294966016 }
  0x68   :  { %7523 = dma.done.wait [#allocation9], 272  }
  0x69   :  { %7524 = vsyncadd [#allocation9], 4294967024 }
  0x6a   :  { %7525 = dma.done.wait [#allocation12], 1040  }
  0x6b   :  { %7526 = vsyncadd [#allocation12], 4294966256 }
  0x6c   :  { %7527 = dma.done.wait [#allocation15], 1056  }
  0x6d   :  { %7528 = vsyncadd [#allocation15], 4294966240  ;;  %v7544_v0 = vmov 0.0   ;;  %vm7545_vm0 = vmmov 0   ;;  %v7672_v1 = vld [vmem:[#allocation8 + $0x8] sm:$0xff]  ;;  %v7674_v2 = vld [vmem:[#allocation8] sm:$0xff] }
  0x6e   :  { %6398 = vmatprep.subr.mxu1 %v7544_v0  ;;  %6402 = vmatprep.mubr.msk.f32.mxu1 %vm7545_vm0, %v7544_v0  ;;  %v242_v3 = vld [vmem:[#allocation5] sm:$0xff]  ;;  %vm243_vm1 = vcmask 130048   ;;  %v7678_v4 = vld [vmem:[#allocation7 + $0x8] sm:$0xff]  ;;  %v7688_v6 = vld [vmem:[#allocation2] sm:$0xff]  ;;  %vm392_vm2 = vcmask 261120   ;;  %s7546_s29 = smov 32  }
  0x6f   :  { %6412 = vmatprep.subr.mxu0 %v7544_v0  ;;  %6420 = vmatprep.mubr.msk.f32.mxu0 %vm7545_vm0, %v7544_v0  ;;  %v7683_v5 = vld [vmem:[#allocation7] sm:$0xff]  ;;  %v7700_v7 = vld [vmem:[%s8883_s5 + $0x18] sm:$0xff]  ;;  %v7707_v8 = vld [vmem:[%s8883_s5 + $0x10] sm:$0xff]  ;;  %s7547_s30 = smov 64  }
  0x70   :  { %6399 = vmatpush3.msra.mxu1 %v7672_v1  ;;  %6413 = vmatpush3.msra.mxu0 %v7700_v7  ;;  %v7714_v9 = vld [vmem:[%s8883_s5 + $0x8] sm:$0xff]  ;;  %v7721_v10 = vld [vmem:[%s8883_s5] sm:$0xff]  ;;  %v7732_v13 = vld [vmem:[#allocation14 + $0x8] sm:$0xff] }
  0x71   :  { %6400 = vmatprep.subr.mxu1 %v7544_v0  ;;  %6414 = vmatprep.subr.mxu0 %v7544_v0  ;;  %v7724_v11 = vld [vmem:[#allocation14 + $0x18] sm:$0xff]  ;;  %v7728_v12 = vld [vmem:[#allocation14 + $0x10] sm:$0xff]  ;;  %v7751_v24 = vld [vmem:[#allocation13 + $0x8] sm:$0xff] }
  0x72   :  { %6401 = vmatpush3.msra.mxu1 %v7674_v2  ;;  %6415 = vmatpush3.msra.mxu0 %v7707_v8  ;;  %v7737_v16 = vld [vmem:[#allocation10] ss:$0 sm:$0xff]  ;;  %v7743_v23 = vld [vmem:[#allocation13 + $0x10] sm:$0xff]  ;;  %v7753_v25 = vld [vmem:[#allocation14] sm:$0xff] }
  0x73   :  { %6403 = vmatmul.mubr.msk.f32.vlgmr.msra.gmra.mxu1 %vm243_vm1, %v242_v3  ;;  %6405 = vmatprep.subr.mxu1 %v7544_v0  ;;  %v7740_v22 = vld [vmem:[#allocation13 + $0x18] sm:$0xff]  ;;  %v7759_v26 = vld [vmem:[#allocation13] sm:$0xff]  ;;  %v7784_v50 = vld [vmem:[#allocation14 + $0x30] sm:$0xff] }
  0x74   :  { %6406 = vmatpush3.msra.mxu1 %v7678_v4  ;;  %6409 = vmatprep.mubr.msk.f32.mxu1 %vm7545_vm0, %v7544_v0  ;;  %v7766_v27 = vld [vmem:[#allocation11] ss:$0 sm:$0xff]  ;;  %v7772_v33 = vld [vmem:[#allocation16] ss:$0 sm:$0xff]  ;;  %v7788_v51 = vld [vmem:[#allocation13 + $0x30] sm:$0xff] }
  0x75   :  { %6407 = vmatprep.subr.mxu1 %v7544_v0  ;;  %6416 = vmatprep.subr.mxu0 %v7544_v0  ;;  %v7780_v48 = vld [vmem:[#allocation14 + $0x38] sm:$0xff]  ;;  %v7792_v52 = vld [vmem:[#allocation14 + $0x28] sm:$0xff]  ;;  %v7800_v54 = vld [vmem:[#allocation14 + $0x20] sm:$0xff] }
  0x76   :  { %6408 = vmatpush3.msra.mxu1 %v7683_v5  ;;  %6417 = vmatpush3.msra.mxu0 %v7714_v9  ;;  %v7782_v49 = vld [vmem:[#allocation13 + $0x38] sm:$0xff]  ;;  %v7794_v53 = vld [vmem:[#allocation13 + $0x28] sm:$0xff]  ;;  %v7802_v55 = vld [vmem:[#allocation13 + $0x20] sm:$0xff] }
  0x77   :  { %6410 = vmatmul.mubr.msk.f32.vlgmr.msra.gmra.mxu1 %vm243_vm1, %v7688_v6  ;;  %6423 = vmatprep.subr.mxu1 %v7544_v0  ;;  %v7823_v62 = vld [vmem:[#allocation16 + $0x1] ss:$0 sm:$0xff] }
  0x78   :  { %6431 = vmatprep.mubr.msk.f32.mxu1 %vm7545_vm0, %v7544_v0  ;;  %6418 = vmatprep.subr.mxu0 %v7544_v0 }
  0x79   :  { %6419 = vmatpush3.msra.mxu0 %v7721_v10  ;;  %6424 = vmatpush3.msra.mxu1 %v7724_v11 }
  0x7a   :  { %6434 = vmatprep.subr.mxu0 %v7544_v0  ;;  %6425 = vmatprep.subr.mxu1 %v7544_v0 }
  0x7b   :  { %6426 = vmatpush3.msra.mxu1 %v7728_v12 }
  0x7c   :  { %6427 = vmatprep.subr.mxu1 %v7544_v0 }
  0x7d   :  { %6428 = vmatpush3.msra.mxu1 %v7732_v13 }
  0x7e   :  { %6429 = vmatprep.subr.mxu1 %v7544_v0 }
  0x7f   :  { %6430 = vmatpush3.msra.mxu1 %v7753_v25 }
  0x80   :  { %6432 = vmatmul.mubr.f32.vlgmr.msra.gmra.mxu1 %v7544_v0  ;;  %6445 = vmatprep.subr.mxu1 %v7544_v0 }
  0x81   :  { %6453 = vmatprep.mubr.msk.f32.mxu1 %vm7545_vm0, %v7544_v0  ;;  %6446 = vmatpush3.msra.mxu1 %v7780_v48 }
  0x82   :  { %6447 = vmatprep.subr.mxu1 %v7544_v0 }
  0x83   :  { %6448 = vmatpush3.msra.mxu1 %v7784_v50 }
  0x84   :  { %6449 = vmatprep.subr.mxu1 %v7544_v0 }
  0x85   :  { %6450 = vmatpush3.msra.mxu1 %v7792_v52 }
  0x86   :  { %6451 = vmatprep.subr.mxu1 %v7544_v0 }
  0x87   :  { %6452 = vmatpush3.msra.mxu1 %v7800_v54 }
  0x88   :  { %6454 = vmatmul.mubr.f32.vlgmr.msra.gmra.mxu1 %v7544_v0  ;;  %6467 = vmatprep.subr.mxu1 %v7544_v0 }
  0x89   :  { %6475 = vmatprep.mubr.msk.f32.mxu1 %vm7545_vm0, %v7544_v0 }
 0x133   :  { %v313_v14 = vpop.f32.mrf.mxu1 }
 0x135   :  { %v6404_v15 = vpop.f32.mrf.mxu1 }
 0x137   :  { %v386_v17 = vpop.f32.mrf.mxu1 }
 0x138   :  { %v387_v18 = vadd.f32 %v386_v17, %v313_v14 }
 0x139   :  { %v6411_v19 = vpop.f32.mrf.mxu1 }
 0x13a   :  { %v390_v20 = vadd.f32 %v7737_v16, %v387_v18 }
 0x13c   :  { %v391_v21 = vmax.f32 %v390_v20, 0.0 }
 0x13e   :  { %6421 = vmatmul.mubr.msk.f32.vlgmr.msra.gmra.mxu0 %vm392_vm2, %v391_v21 }
 0x13f   :  { %6435 = vmatpush3.msra.mxu0 %v7740_v22  ;;  %6442 = vmatprep.mubr.msk.f32.mxu0 %vm7545_vm0, %v7544_v0 }
 0x140   :  { %6436 = vmatprep.subr.mxu0 %v7544_v0  ;;  %v535_v31 = vpop.f32.mrf.mxu1 }
 0x141   :  { %6437 = vmatpush3.msra.mxu0 %v7743_v23 }
 0x142   :  { %6438 = vmatprep.subr.mxu0 %v7544_v0  ;;  %v6433_v32 = vpop.f32.mrf.mxu1 }
 0x143   :  { %6439 = vmatpush3.msra.mxu0 %v7751_v24 }
 0x144   :  { %6440 = vmatprep.subr.mxu0 %v7544_v0 }
 0x145   :  { %6441 = vmatpush3.msra.mxu0 %v7759_v26 }
 0x146   :  { %6456 = vmatprep.subr.mxu0 %v7544_v0 }
 0x148   :  { %v703_v59 = vpop.f32.mrf.mxu1 }
 0x14a   :  { %v6455_v60 = vpop.f32.mrf.mxu1 }
 0x14b   :  { %v960_v60 = vld [vmem:[#allocation5 + $0x8] sm:$0xff] }
 0x1fe   :  { %v462_v28 = vpop.f32.mrf.mxu0 }
 0x1ff   :  { %v463_v29 = vadd.f32 %v7766_v27, %v462_v28 }
 0x200   :  { %v6422_v30 = vpop.f32.mrf.mxu0 }
 0x201   :  { %6443 = vmatmul.mubr.msk.f32.vlgmr.msra.gmra.mxu0 %vm392_vm2, %v463_v29 }
 0x202   :  { %6464 = vmatprep.mubr.msk.f32.mxu0 %vm7545_vm0, %v7544_v0  ;;  %6457 = vmatpush3.msra.mxu0 %v7782_v49 }
 0x203   :  { %6458 = vmatprep.subr.mxu0 %v7544_v0 }
 0x204   :  { %6459 = vmatpush3.msra.mxu0 %v7788_v51 }
 0x205   :  { %6460 = vmatprep.subr.mxu0 %v7544_v0 }
 0x206   :  { %6461 = vmatpush3.msra.mxu0 %v7794_v53 }
 0x207   :  { %6462 = vmatprep.subr.mxu0 %v7544_v0 }
 0x208   :  { %6463 = vmatpush3.msra.mxu0 %v7802_v55 }
 0x209   :  { %6478 = vmatprep.subr.mxu0 %v7544_v0 }
 0x2c1   :  { %v608_v34 = vpop.f32.mrf.mxu0 }
 0x2c2   :  { %v609_v35 = vadd.f32 %v608_v34, %v535_v31  ;;  %v7834_v34 = vld [vmem:[%s8888_s10 + $0x18] sm:$0xff] }
 0x2c3   :  { %v6444_v36 = vpop.f32.mrf.mxu0  ;;  %6468 = vmatpush3.msra.mxu1 %v7834_v34 }
 0x2c4   :  { %v612_v37 = vadd.f32 %v7772_v33, %v609_v35  ;;  %v7839_v35 = vld [vmem:[%s8888_s10 + $0x10] sm:$0xff]  ;;  %6469 = vmatprep.subr.mxu1 %v7544_v0  ;;  %v7846_v36 = vld [vmem:[%s8888_s10 + $0x8] sm:$0xff] }
 0x2c5   :  { %6470 = vmatpush3.msra.mxu1 %v7839_v35 }
 0x2c6   :  { %7144 = vtanh.f32 %v612_v37  ;;  %v5988_v39 = vmul.f32 -1.442695, %v612_v37  ;;  %6471 = vmatprep.subr.mxu1 %v7544_v0  ;;  %v7853_v37 = vld [vmem:[%s8888_s10] sm:$0xff] }
 0x2c7   :  { %6472 = vmatpush3.msra.mxu1 %v7846_v36 }
 0x2c8   :  { %7146 = vpow2.f32 %v5988_v39  ;;  %6473 = vmatprep.subr.mxu1 %v7544_v0  ;;  %v7863_v39 = vld [vmem:[%s8890_s12 + $0x18] sm:$0xff] }
 0x2c9   :  { %6474 = vmatpush3.msra.mxu1 %v7853_v37 }
 0x2ca   :  { %6489 = vmatprep.subr.mxu1 %v7544_v0 }
 0x2d3   :  { %v7145_v38 = vpop.eup %7144 }
 0x2d4   :  { %622 = vrot.lane.b32.xlu0 %v7145_v38, %s7546_s29 }
 0x2d5   :  { %v7147_v40 = vpop.eup %7146 }
 0x2d6   :  { %v616_v41 = vadd.f32 1.0, %v7147_v40 }
 0x2d8   :  { %7148 = vrcp.f32 %v616_v41 }
 0x2e5   :  { %v7149_v42 = vpop.eup %7148 }
 0x2e6   :  { %v620_v45 = vmul.f32 0.0, %v7149_v42 }
 0x346   :  { %v623_v43 = vpop.permute.xlu0 %622 }
 0x347   :  { %v625_v44 = vmul.f32 %v7149_v42, %v623_v43  ;;  %v7881_v43 = vld [vmem:[%s8890_s12 + $0x10] sm:$0xff] }
 0x349   :  { %627 = vrot.lane.b32.xlu0 %v625_v44, %s7546_s29  ;;  %v7888_v44 = vld [vmem:[%s8890_s12 + $0x8] sm:$0xff] }
 0x3bb   :  { %v628_v46 = vpop.permute.xlu0 %627 }
 0x3bc   :  { %v7777_v47 = vadd.f32 %v628_v46, %v620_v45  ;;  %v7895_v45 = vld [vmem:[%s8890_s12] sm:$0xff] }
 0x3bd   :  { %v7902_v46 = vld [vmem:[%s8889_s11] ss:$0 sm:$0xff] }
 0x3be   :  { %7150 = vtanh.f32 %v7777_v47 }
 0x3cb   :  { %v7151_v56 = vpop.eup %7150 }
 0x3cc   :  { %633 = vrot.lane.b32.xlu1 %v7151_v56, %s7546_s29 }
 0x43e   :  { %v634_v57 = vpop.permute.xlu1 %633 }
 0x43f   :  { %v636_v58 = vmul.f32 %v7149_v42, %v634_v57 }
 0x441   :  { %708 = vrot.lane.b32.xlu1 %v636_v58, %s7547_s30 }
 0x4b3   :  { %v7817_v61 = vpop.permute.xlu1 %708 }
 0x4b4   :  { %6465 = vmatmul.mubr.msk.f32.vlgmr.msra.gmra.mxu0 %vm392_vm2, %v7817_v61 }
 0x4b5   :  { %6486 = vmatprep.mubr.msk.f32.mxu0 %vm7545_vm0, %v7544_v0  ;;  %6479 = vmatpush3.msra.mxu0 %v7863_v39 }
 0x4b6   :  { %6480 = vmatprep.subr.mxu0 %v7544_v0 }
 0x4b7   :  { %6481 = vmatpush3.msra.mxu0 %v7881_v43 }
 0x4b8   :  { %6482 = vmatprep.subr.mxu0 %v7544_v0 }
 0x4b9   :  { %6483 = vmatpush3.msra.mxu0 %v7888_v44 }
 0x4ba   :  { %6484 = vmatprep.subr.mxu0 %v7544_v0 }
 0x4bb   :  { %6485 = vmatpush3.msra.mxu0 %v7895_v45 }
 0x4bc   :  { %6503 = vmatprep.subr.mxu0 %v7544_v0 }
 0x574   :  { %v778_v63 = vpop.f32.mrf.mxu0 }
 0x575   :  { %v779_v3 = vadd.f32 %v778_v63, %v703_v59  ;;  %v7926_v63 = vld [vmem:[%s8891_s13] ss:$0 sm:$0xff] }
 0x576   :  { %v6466_v14 = vpop.f32.mrf.mxu0 }
 0x577   :  { %v782_v15 = vadd.f32 %v7823_v62, %v779_v3 }
 0x579   :  { %7152 = vtanh.f32 %v782_v15  ;;  %v5990_v18 = vmul.f32 -1.442695, %v782_v15 }
 0x57b   :  { %7154 = vpow2.f32 %v5990_v18 }
 0x586   :  { %v7153_v17 = vpop.eup %7152 }
 0x587   :  { %792 = vrot.lane.b32.xlu0 %v7153_v17, %s7546_s29 }
 0x588   :  { %v7155_v19 = vpop.eup %7154 }
 0x589   :  { %v786_v20 = vadd.f32 1.0, %v7155_v19 }
 0x58b   :  { %7156 = vrcp.f32 %v786_v20 }
 0x598   :  { %v7157_v21 = vpop.eup %7156 }
 0x599   :  { %v790_v30 = vmul.f32 0.0, %v7157_v21 }
 0x5f9   :  { %v793_v28 = vpop.permute.xlu0 %792 }
 0x5fa   :  { %v795_v29 = vmul.f32 %v7157_v21, %v793_v28 }
 0x5fc   :  { %797 = vrot.lane.b32.xlu1 %v795_v29, %s7546_s29 }
 0x66e   :  { %v798_v31 = vpop.permute.xlu1 %797 }
 0x66f   :  { %v7828_v32 = vadd.f32 %v798_v31, %v790_v30 }
 0x671   :  { %7158 = vtanh.f32 %v7828_v32 }
 0x67e   :  { %v7159_v38 = vpop.eup %7158 }
 0x67f   :  { %803 = vrot.lane.b32.xlu0 %v7159_v38, %s7546_s29 }
 0x6f1   :  { %v804_v40 = vpop.permute.xlu0 %803 }
 0x6f2   :  { %v806_v41 = vmul.f32 %v7157_v21, %v804_v40 }
 0x6f4   :  { %808 = vrot.lane.b32.xlu1 %v806_v41, %s7547_s30 }
 0x766   :  { %v7868_v42 = vpop.permute.xlu1 %808 }
 0x767   :  { %6476 = vmatmul.mubr.msk.f32.vlgmr.msra.gmra.mxu1 %vm392_vm2, %v7868_v42 }
 0x768   :  { %6490 = vmatpush3.msra.mxu1 %v7672_v1  ;;  %6493 = vmatprep.mubr.msk.f32.mxu1 %vm7545_vm0, %v7544_v0 }
 0x769   :  { %6491 = vmatprep.subr.mxu1 %v7544_v0 }
 0x76a   :  { %6492 = vmatpush3.msra.mxu1 %v7674_v2 }
 0x76b   :  { %6496 = vmatprep.subr.mxu1 %v7544_v0  ;;  %6494 = vmatmul.mubr.msk.f32.vlgmr.msra.gmra.mxu1 %vm243_vm1, %v960_v60 }
 0x76c   :  { %6497 = vmatpush3.msra.mxu1 %v7678_v4  ;;  %6500 = vmatprep.mubr.msk.f32.mxu1 %vm7545_vm0, %v7544_v0 }
 0x76d   :  { %6498 = vmatprep.subr.mxu1 %v7544_v0 }
 0x76e   :  { %6499 = vmatpush3.msra.mxu1 %v7683_v5 }
 0x76f   :  { %6514 = vmatprep.subr.mxu1 %v7544_v0 }
 0x827   :  { %v878_v56 = vpop.f32.mrf.mxu1 }
 0x828   :  { %v879_v57 = vadd.f32 %v7902_v46, %v878_v56 }
 0x829   :  { %v6477_v58 = vpop.f32.mrf.mxu1 }
 0x82a   :  { %v882_v59 = vmax.f32 %v879_v57, 0.0 }
 0x82c   :  { %6487 = vmatmul.mubr.msk.f32.vlgmr.msra.gmra.mxu0 %vm392_vm2, %v882_v59 }
 0x82d   :  { %6504 = vmatpush3.msra.mxu0 %v7700_v7  ;;  %6511 = vmatprep.mubr.msk.f32.mxu0 %vm7545_vm0, %v7544_v0 }
 0x82e   :  { %6505 = vmatprep.subr.mxu0 %v7544_v0 }
 0x82f   :  { %6506 = vmatpush3.msra.mxu0 %v7707_v8 }
 0x830   :  { %6507 = vmatprep.subr.mxu0 %v7544_v0 }
 0x831   :  { %6508 = vmatpush3.msra.mxu0 %v7714_v9 }
 0x832   :  { %6509 = vmatprep.subr.mxu0 %v7544_v0 }
 0x833   :  { %6510 = vmatpush3.msra.mxu0 %v7721_v10 }
 0x834   :  { %6525 = vmatprep.subr.mxu0 %v7544_v0 }
 0x8ec   :  { %v952_v3 = vpop.f32.mrf.mxu0 }
 0x8ed   :  { %v956_v14 = vadd.f32 %v952_v3, %v7688_v6  ;;  %v1030_v6 = vpop.f32.mrf.mxu1 }
 0x8ee   :  { %v6488_v15 = vpop.f32.mrf.mxu0 }
 0x8ef   :  { %v7930_v17 = vadd.f32 %v7926_v63, %v956_v14 }
 0x8f1   :  { %958 = vst.msk [vmem:[#allocation17] sm:$0xff] %vm243_vm1, %v7930_v17  ;;  %6501 = vmatmul.mubr.msk.f32.vlgmr.msra.gmra.mxu1 %vm243_vm1, %v7930_v17 }
 0x8f2   :  { %6515 = vmatpush3.msra.mxu1 %v7724_v11  ;;  %6522 = vmatprep.mubr.msk.f32.mxu1 %vm7545_vm0, %v7544_v0 }
 0x8f3   :  { %6516 = vmatprep.subr.mxu1 %v7544_v0 }
 0x8f4   :  { %6517 = vmatpush3.msra.mxu1 %v7728_v12 }
 0x8f5   :  { %6518 = vmatprep.subr.mxu1 %v7544_v0 }
 0x8f6   :  { %6519 = vmatpush3.msra.mxu1 %v7732_v13 }
 0x8f7   :  { %6520 = vmatprep.subr.mxu1 %v7544_v0 }
 0x8f8   :  { %6521 = vmatpush3.msra.mxu1 %v7753_v25 }
 0x8f9   :  { %6523 = vmatmul.mubr.msk.f32.vlgmr.msra.gmra.mxu1 %vm392_vm2, %v7817_v61  ;;  %6536 = vmatprep.subr.mxu1 %v7544_v0  ;;  %v6495_v61 = vpop.f32.mrf.mxu1 }
 0x8fa   :  { %6537 = vmatpush3.msra.mxu1 %v7780_v48  ;;  %6544 = vmatprep.mubr.msk.f32.mxu1 %vm7545_vm0, %v7544_v0 }
 0x8fb   :  { %6538 = vmatprep.subr.mxu1 %v7544_v0 }
 0x8fc   :  { %6539 = vmatpush3.msra.mxu1 %v7784_v50 }
 0x8fd   :  { %6540 = vmatprep.subr.mxu1 %v7544_v0 }
 0x8fe   :  { %6541 = vmatpush3.msra.mxu1 %v7792_v52 }
 0x8ff   :  { %6542 = vmatprep.subr.mxu1 %v7544_v0 }
 0x900   :  { %6543 = vmatpush3.msra.mxu1 %v7800_v54 }
 0x901   :  { %6545 = vmatmul.mubr.msk.f32.vlgmr.msra.gmra.mxu1 %vm392_vm2, %v7868_v42  ;;  %6558 = vmatprep.subr.mxu1 %v7544_v0 }
 0x902   :  { %6559 = vmatpush3.msra.mxu1 %v7834_v34  ;;  %6566 = vmatprep.mubr.msk.f32.mxu1 %vm7545_vm0, %v7544_v0 }
 0x903   :  { %6560 = vmatprep.subr.mxu1 %v7544_v0 }
 0x904   :  { %6561 = vmatpush3.msra.mxu1 %v7839_v35 }
 0x905   :  { %6562 = vmatprep.subr.mxu1 %v7544_v0 }
 0x906   :  { %6563 = vmatpush3.msra.mxu1 %v7846_v36 }
 0x907   :  { %6564 = vmatprep.subr.mxu1 %v7544_v0 }
 0x908   :  { %6565 = vmatpush3.msra.mxu1 %v7853_v37 }
 0x909   :  { %6580 = vmatprep.subr.mxu1 %v7544_v0 }
 0x9b1   :  { %v1103_v18 = vpop.f32.mrf.mxu1 }
 0x9b2   :  { %v1104_v19 = vadd.f32 %v1103_v18, %v1030_v6 }
 0x9b3   :  { %v6502_v20 = vpop.f32.mrf.mxu1 }
 0x9b4   :  { %v1107_v21 = vadd.f32 %v7737_v16, %v1104_v19 }
 0x9b6   :  { %v1108_v28 = vmax.f32 %v1107_v21, 0.0 }
 0x9b8   :  { %6512 = vmatmul.mubr.msk.f32.vlgmr.msra.gmra.mxu0 %vm392_vm2, %v1108_v28 }
 0x9b9   :  { %v1248_v29 = vpop.f32.mrf.mxu1  ;;  %6526 = vmatpush3.msra.mxu0 %v7740_v22  ;;  %6533 = vmatprep.mubr.msk.f32.mxu0 %vm7545_vm0, %v7544_v0 }
 0x9ba   :  { %6527 = vmatprep.subr.mxu0 %v7544_v0 }
 0x9bb   :  { %v6524_v30 = vpop.f32.mrf.mxu1  ;;  %6528 = vmatpush3.msra.mxu0 %v7743_v23 }
 0x9bc   :  { %6529 = vmatprep.subr.mxu0 %v7544_v0 }
 0x9bd   :  { %6530 = vmatpush3.msra.mxu0 %v7751_v24 }
 0x9be   :  { %6531 = vmatprep.subr.mxu0 %v7544_v0 }
 0x9bf   :  { %6532 = vmatpush3.msra.mxu0 %v7759_v26 }
 0x9c0   :  { %6547 = vmatprep.subr.mxu0 %v7544_v0 }
 0x9c1   :  { %v1416_v31 = vpop.f32.mrf.mxu1 }
 0x9c3   :  { %v6546_v38 = vpop.f32.mrf.mxu1 }
 0xa78   :  { %v1178_v40 = vpop.f32.mrf.mxu0 }
 0xa79   :  { %v1179_v41 = vadd.f32 %v7766_v27, %v1178_v40 }
 0xa7a   :  { %v6513_v42 = vpop.f32.mrf.mxu0 }
 0xa7b   :  { %6534 = vmatmul.mubr.msk.f32.vlgmr.msra.gmra.mxu0 %vm392_vm2, %v1179_v41 }
 0xa7c   :  { %6548 = vmatpush3.msra.mxu0 %v7782_v49  ;;  %6555 = vmatprep.mubr.msk.f32.mxu0 %vm7545_vm0, %v7544_v0 }
 0xa7d   :  { %6549 = vmatprep.subr.mxu0 %v7544_v0 }
 0xa7e   :  { %6550 = vmatpush3.msra.mxu0 %v7788_v51 }
 0xa7f   :  { %6551 = vmatprep.subr.mxu0 %v7544_v0 }
 0xa80   :  { %6552 = vmatpush3.msra.mxu0 %v7794_v53 }
 0xa81   :  { %6553 = vmatprep.subr.mxu0 %v7544_v0 }
 0xa82   :  { %6554 = vmatpush3.msra.mxu0 %v7802_v55 }
 0xa83   :  { %6569 = vmatprep.subr.mxu0 %v7544_v0 }
 0xb3b   :  { %v1321_v56 = vpop.f32.mrf.mxu0 }
 0xb3c   :  { %v1322_v57 = vadd.f32 %v1321_v56, %v1248_v29 }
 0xb3d   :  { %v6535_v58 = vpop.f32.mrf.mxu0 }
 0xb3e   :  { %v1325_v59 = vadd.f32 %v7772_v33, %v1322_v57 }
 0xb40   :  { %7160 = vtanh.f32 %v1325_v59  ;;  %v5998_v3 = vmul.f32 -1.442695, %v1325_v59 }
 0xb42   :  { %7162 = vpow2.f32 %v5998_v3 }
 0xb4d   :  { %v7161_v60 = vpop.eup %7160 }
 0xb4e   :  { %1335 = vrot.lane.b32.xlu0 %v7161_v60, %s7546_s29 }
 0xb4f   :  { %v7163_v14 = vpop.eup %7162 }
 0xb50   :  { %v1329_v15 = vadd.f32 1.0, %v7163_v14 }
 0xb52   :  { %7164 = vrcp.f32 %v1329_v15 }
 0xb5f   :  { %v7165_v6 = vpop.eup %7164 }
 0xb60   :  { %v1333_v19 = vmul.f32 %v7165_v6, %v7777_v47 }
 0xbc0   :  { %v1336_v61 = vpop.permute.xlu0 %1335 }
 0xbc1   :  { %v1338_v18 = vmul.f32 %v7165_v6, %v1336_v61 }
 0xbc3   :  { %1340 = vrot.lane.b32.xlu1 %v1338_v18, %s7546_s29 }
 0xc35   :  { %v1341_v20 = vpop.permute.xlu1 %1340 }
 0xc36   :  { %v7998_v21 = vadd.f32 %v1341_v20, %v1333_v19 }
 0xc38   :  { %7166 = vtanh.f32 %v7998_v21 }
 0xc45   :  { %v7167_v28 = vpop.eup %7166 }
 0xc46   :  { %1346 = vrot.lane.b32.xlu0 %v7167_v28, %s7546_s29 }
 0xcb8   :  { %v1347_v29 = vpop.permute.xlu0 %1346 }
 0xcb9   :  { %v1349_v30 = vmul.f32 %v7165_v6, %v1347_v29 }
 0xcbb   :  { %1421 = vrot.lane.b32.xlu1 %v1349_v30, %s7547_s30 }
 0xd2d   :  { %v8003_v38 = vpop.permute.xlu1 %1421 }
 0xd2e   :  { %6556 = vmatmul.mubr.msk.f32.vlgmr.msra.gmra.mxu0 %vm392_vm2, %v8003_v38 }
 0xd2f   :  { %6570 = vmatpush3.msra.mxu0 %v7863_v39  ;;  %6577 = vmatprep.mubr.msk.f32.mxu0 %vm7545_vm0, %v7544_v0 }
 0xd30   :  { %6571 = vmatprep.subr.mxu0 %v7544_v0 }
 0xd31   :  { %6572 = vmatpush3.msra.mxu0 %v7881_v43 }
 0xd32   :  { %6573 = vmatprep.subr.mxu0 %v7544_v0 }
 0xd33   :  { %6574 = vmatpush3.msra.mxu0 %v7888_v44 }
 0xd34   :  { %6575 = vmatprep.subr.mxu0 %v7544_v0 }
 0xd35   :  { %6576 = vmatpush3.msra.mxu0 %v7895_v45 }
 0xd36   :  { %6594 = vmatprep.subr.mxu0 %v7544_v0 }
 0xdee   :  { %v1491_v47 = vpop.f32.mrf.mxu0 }
 0xdef   :  { %v1492_v40 = vadd.f32 %v1491_v47, %v1416_v31  ;;  %v1674_v47 = vld [vmem:[#allocation5 + $0x10] sm:$0xff] }
 0xdf0   :  { %v6557_v41 = vpop.f32.mrf.mxu0 }
 0xdf1   :  { %v1495_v42 = vadd.f32 %v7823_v62, %v1492_v40 }
 0xdf3   :  { %7168 = vtanh.f32 %v1495_v42  ;;  %v6001_v57 = vmul.f32 -1.442695, %v1495_v42 }
 0xdf5   :  { %7170 = vpow2.f32 %v6001_v57 }
 0xe00   :  { %v7169_v56 = vpop.eup %7168 }
 0xe01   :  { %1505 = vrot.lane.b32.xlu0 %v7169_v56, %s7546_s29 }
 0xe02   :  { %v7171_v58 = vpop.eup %7170 }
 0xe03   :  { %v1499_v59 = vadd.f32 1.0, %v7171_v58 }
 0xe05   :  { %7172 = vrcp.f32 %v1499_v59 }
 0xe12   :  { %v7173_v60 = vpop.eup %7172 }
 0xe13   :  { %v1503_v15 = vmul.f32 %v7173_v60, %v7828_v32 }
 0xe73   :  { %v1506_v3 = vpop.permute.xlu0 %1505 }
 0xe74   :  { %v1508_v14 = vmul.f32 %v7173_v60, %v1506_v3 }
 0xe76   :  { %1510 = vrot.lane.b32.xlu1 %v1508_v14, %s7546_s29 }
 0xee8   :  { %v1511_v31 = vpop.permute.xlu1 %1510 }
 0xee9   :  { %v8021_v6 = vadd.f32 %v1511_v31, %v1503_v15 }
 0xeeb   :  { %7174 = vtanh.f32 %v8021_v6 }
 0xef8   :  { %v7175_v61 = vpop.eup %7174 }
 0xef9   :  { %1516 = vrot.lane.b32.xlu0 %v7175_v61, %s7546_s29 }
 0xf6b   :  { %v1517_v18 = vpop.permute.xlu0 %1516 }
 0xf6c   :  { %v1519_v19 = vmul.f32 %v7173_v60, %v1517_v18 }
 0xf6e   :  { %1521 = vrot.lane.b32.xlu1 %v1519_v19, %s7547_s30 }
 0xfe0   :  { %v1522_v20 = vpop.permute.xlu1 %1521 }
 0xfe1   :  { %6567 = vmatmul.mubr.msk.f32.vlgmr.msra.gmra.mxu1 %vm392_vm2, %v1522_v20 }
 0xfe2   :  { %6581 = vmatpush3.msra.mxu1 %v7672_v1  ;;  %6584 = vmatprep.mubr.msk.f32.mxu1 %vm7545_vm0, %v7544_v0 }
 0xfe3   :  { %6582 = vmatprep.subr.mxu1 %v7544_v0 }
 0xfe4   :  { %6583 = vmatpush3.msra.mxu1 %v7674_v2 }
 0xfe5   :  { %6587 = vmatprep.subr.mxu1 %v7544_v0  ;;  %6585 = vmatmul.mubr.msk.f32.vlgmr.msra.gmra.mxu1 %vm243_vm1, %v1674_v47 }
 0xfe6   :  { %6588 = vmatpush3.msra.mxu1 %v7678_v4  ;;  %6591 = vmatprep.mubr.msk.f32.mxu1 %vm7545_vm0, %v7544_v0 }
 0xfe7   :  { %6589 = vmatprep.subr.mxu1 %v7544_v0 }
 0xfe8   :  { %6590 = vmatpush3.msra.mxu1 %v7683_v5 }
 0xfe9   :  { %6605 = vmatprep.subr.mxu1 %v7544_v0 }
0x10a1   :  { %v1591_v32 = vpop.f32.mrf.mxu1 }
0x10a2   :  { %v1592_v28 = vadd.f32 %v7902_v46, %v1591_v32 }
0x10a3   :  { %v6568_v29 = vpop.f32.mrf.mxu1 }
0x10a4   :  { %v1595_v30 = vmax.f32 %v1592_v28, 0.0 }
0x10a5   :  { %v1744_v4 = vpop.f32.mrf.mxu1 }
0x10a6   :  { %6578 = vmatmul.mubr.msk.f32.vlgmr.msra.gmra.mxu0 %vm392_vm2, %v1595_v30 }
0x10a7   :  { %6595 = vmatpush3.msra.mxu0 %v7700_v7  ;;  %6602 = vmatprep.mubr.msk.f32.mxu0 %vm7545_vm0, %v7544_v0  ;;  %v6586_v5 = vpop.f32.mrf.mxu1 }
0x10a8   :  { %6596 = vmatprep.subr.mxu0 %v7544_v0 }
0x10a9   :  { %6597 = vmatpush3.msra.mxu0 %v7707_v8 }
0x10aa   :  { %6598 = vmatprep.subr.mxu0 %v7544_v0 }
0x10ab   :  { %6599 = vmatpush3.msra.mxu0 %v7714_v9 }
0x10ac   :  { %6600 = vmatprep.subr.mxu0 %v7544_v0 }
0x10ad   :  { %6601 = vmatpush3.msra.mxu0 %v7721_v10 }
0x10ae   :  { %6616 = vmatprep.subr.mxu0 %v7544_v0 }
0x1166   :  { %v1665_v40 = vpop.f32.mrf.mxu0 }
0x1167   :  { %v1669_v41 = vadd.f32 %v1665_v40, %v7930_v17 }
0x1168   :  { %v6579_v42 = vpop.f32.mrf.mxu0 }
0x1169   :  { %v8054_v56 = vadd.f32 %v7926_v63, %v1669_v41 }
0x116b   :  { %1672 = vst.msk [vmem:[#allocation17 + $0x8] sm:$0xff] %vm243_vm1, %v8054_v56  ;;  %6592 = vmatmul.mubr.msk.f32.vlgmr.msra.gmra.mxu1 %vm243_vm1, %v8054_v56 }
0x116c   :  { %6606 = vmatpush3.msra.mxu1 %v7724_v11  ;;  %6613 = vmatprep.mubr.msk.f32.mxu1 %vm7545_vm0, %v7544_v0 }
0x116d   :  { %6607 = vmatprep.subr.mxu1 %v7544_v0 }
0x116e   :  { %6608 = vmatpush3.msra.mxu1 %v7728_v12 }
0x116f   :  { %6609 = vmatprep.subr.mxu1 %v7544_v0 }
0x1170   :  { %6610 = vmatpush3.msra.mxu1 %v7732_v13 }
0x1171   :  { %6611 = vmatprep.subr.mxu1 %v7544_v0 }
0x1172   :  { %6612 = vmatpush3.msra.mxu1 %v7753_v25 }
0x1173   :  { %6614 = vmatmul.mubr.msk.f32.vlgmr.msra.gmra.mxu1 %vm392_vm2, %v8003_v38  ;;  %6627 = vmatprep.subr.mxu1 %v7544_v0 }
0x1174   :  { %6628 = vmatpush3.msra.mxu1 %v7780_v48  ;;  %6635 = vmatprep.mubr.msk.f32.mxu1 %vm7545_vm0, %v7544_v0 }
0x1175   :  { %6629 = vmatprep.subr.mxu1 %v7544_v0 }
0x1176   :  { %6630 = vmatpush3.msra.mxu1 %v7784_v50 }
0x1177   :  { %6631 = vmatprep.subr.mxu1 %v7544_v0 }
0x1178   :  { %6632 = vmatpush3.msra.mxu1 %v7792_v52 }
0x1179   :  { %6633 = vmatprep.subr.mxu1 %v7544_v0 }
0x117a   :  { %6634 = vmatpush3.msra.mxu1 %v7800_v54 }
0x117b   :  { %6636 = vmatmul.mubr.msk.f32.vlgmr.msra.gmra.mxu1 %vm392_vm2, %v1522_v20  ;;  %6649 = vmatprep.subr.mxu1 %v7544_v0 }
0x117c   :  { %6650 = vmatpush3.msra.mxu1 %v7834_v34  ;;  %6657 = vmatprep.mubr.msk.f32.mxu1 %vm7545_vm0, %v7544_v0 }
0x117d   :  { %6651 = vmatprep.subr.mxu1 %v7544_v0 }
0x117e   :  { %6652 = vmatpush3.msra.mxu1 %v7839_v35 }
0x117f   :  { %6653 = vmatprep.subr.mxu1 %v7544_v0 }
0x1180   :  { %6654 = vmatpush3.msra.mxu1 %v7846_v36 }
0x1181   :  { %6655 = vmatprep.subr.mxu1 %v7544_v0 }
0x1182   :  { %6656 = vmatpush3.msra.mxu1 %v7853_v37 }
0x1183   :  { %6671 = vmatprep.subr.mxu1 %v7544_v0 }
0x122b   :  { %v1817_v17 = vpop.f32.mrf.mxu1 }
0x122c   :  { %v1818_v38 = vadd.f32 %v1817_v17, %v1744_v4 }
0x122d   :  { %v6593_v57 = vpop.f32.mrf.mxu1 }
0x122e   :  { %v1821_v58 = vadd.f32 %v7737_v16, %v1818_v38 }
0x1230   :  { %v1822_v59 = vmax.f32 %v1821_v58, 0.0 }
0x1232   :  { %6603 = vmatmul.mubr.msk.f32.vlgmr.msra.gmra.mxu0 %vm392_vm2, %v1822_v59 }
0x1233   :  { %v1962_v60 = vpop.f32.mrf.mxu1  ;;  %6617 = vmatpush3.msra.mxu0 %v7740_v22  ;;  %6624 = vmatprep.mubr.msk.f32.mxu0 %vm7545_vm0, %v7544_v0 }
0x1234   :  { %6618 = vmatprep.subr.mxu0 %v7544_v0 }
0x1235   :  { %v6615_v3 = vpop.f32.mrf.mxu1  ;;  %6619 = vmatpush3.msra.mxu0 %v7743_v23 }
0x1236   :  { %6620 = vmatprep.subr.mxu0 %v7544_v0 }
0x1237   :  { %6621 = vmatpush3.msra.mxu0 %v7751_v24 }
0x1238   :  { %6622 = vmatprep.subr.mxu0 %v7544_v0 }
0x1239   :  { %6623 = vmatpush3.msra.mxu0 %v7759_v26 }
0x123a   :  { %6638 = vmatprep.subr.mxu0 %v7544_v0 }
0x123b   :  { %v2130_v16 = vpop.f32.mrf.mxu1 }
0x123d   :  { %v6637_v22 = vpop.f32.mrf.mxu1 }
0x12f2   :  { %v1892_v14 = vpop.f32.mrf.mxu0 }
0x12f3   :  { %v1893_v15 = vadd.f32 %v7766_v27, %v1892_v14 }
0x12f4   :  { %v6604_v31 = vpop.f32.mrf.mxu0 }
0x12f5   :  { %6625 = vmatmul.mubr.msk.f32.vlgmr.msra.gmra.mxu0 %vm392_vm2, %v1893_v15 }
0x12f6   :  { %6639 = vmatpush3.msra.mxu0 %v7782_v49  ;;  %6646 = vmatprep.mubr.msk.f32.mxu0 %vm7545_vm0, %v7544_v0 }
0x12f7   :  { %6640 = vmatprep.subr.mxu0 %v7544_v0 }
0x12f8   :  { %6641 = vmatpush3.msra.mxu0 %v7788_v51 }
0x12f9   :  { %6642 = vmatprep.subr.mxu0 %v7544_v0 }
0x12fa   :  { %6643 = vmatpush3.msra.mxu0 %v7794_v53 }
0x12fb   :  { %6644 = vmatprep.subr.mxu0 %v7544_v0 }
0x12fc   :  { %6645 = vmatpush3.msra.mxu0 %v7802_v55 }
0x12fd   :  { %6660 = vmatprep.subr.mxu0 %v7544_v0 }
0x13b5   :  { %v2035_v23 = vpop.f32.mrf.mxu0 }
0x13b6   :  { %v2036_v24 = vadd.f32 %v2035_v23, %v1962_v60 }
0x13b7   :  { %v6626_v26 = vpop.f32.mrf.mxu0 }
0x13b8   :  { %v2039_v27 = vadd.f32 %v7772_v33, %v2036_v24 }
0x13ba   :  { %7176 = vtanh.f32 %v2039_v27  ;;  %v6009_v18 = vmul.f32 -1.442695, %v2039_v27 }
0x13bc   :  { %7178 = vpow2.f32 %v6009_v18 }
0x13c7   :  { %v7177_v61 = vpop.eup %7176 }
0x13c8   :  { %2049 = vrot.lane.b32.xlu0 %v7177_v61, %s7546_s29 }
0x13c9   :  { %v7179_v19 = vpop.eup %7178 }
0x13ca   :  { %v2043_v20 = vadd.f32 1.0, %v7179_v19 }
0x13cc   :  { %7180 = vrcp.f32 %v2043_v20 }
0x13d9   :  { %v7181_v32 = vpop.eup %7180 }
0x13da   :  { %v2047_v30 = vmul.f32 %v7181_v32, %v7998_v21 }
0x143a   :  { %v2050_v28 = vpop.permute.xlu0 %2049 }
0x143b   :  { %v2052_v29 = vmul.f32 %v7181_v32, %v2050_v28 }
0x143d   :  { %2054 = vrot.lane.b32.xlu1 %v2052_v29, %s7546_s29 }
0x14af   :  { %v2055_v47 = vpop.permute.xlu1 %2054 }
0x14b0   :  { %v8121_v40 = vadd.f32 %v2055_v47, %v2047_v30  ;;  %v8242_v47 = vld [vmem:[#allocation11] ss:$0 sm:$0xff] }
0x14b2   :  { %7182 = vtanh.f32 %v8121_v40 }
0x14bf   :  { %v7183_v33 = vpop.eup %7182 }
0x14c0   :  { %2060 = vrot.lane.b32.xlu0 %v7183_v33, %s7546_s29 }
0x1532   :  { %v2061_v41 = vpop.permute.xlu0 %2060 }
0x1533   :  { %v2063_v42 = vmul.f32 %v7181_v32, %v2061_v41  ;;  %v8238_v32 = vld [vmem:[#allocation13] sm:$0xff] }
0x1535   :  { %2135 = vrot.lane.b32.xlu1 %v2063_v42, %s7547_s30 }
0x15a7   :  { %v8126_v4 = vpop.permute.xlu1 %2135 }
0x15a8   :  { %6647 = vmatmul.mubr.msk.f32.vlgmr.msra.gmra.mxu0 %vm392_vm2, %v8126_v4 }
0x15a9   :  { %6661 = vmatpush3.msra.mxu0 %v7863_v39  ;;  %6668 = vmatprep.mubr.msk.f32.mxu0 %vm7545_vm0, %v7544_v0 }
0x15aa   :  { %6662 = vmatprep.subr.mxu0 %v7544_v0 }
0x15ab   :  { %6663 = vmatpush3.msra.mxu0 %v7881_v43 }
0x15ac   :  { %6664 = vmatprep.subr.mxu0 %v7544_v0 }
0x15ad   :  { %6665 = vmatpush3.msra.mxu0 %v7888_v44 }
0x15ae   :  { %6666 = vmatprep.subr.mxu0 %v7544_v0 }
0x15af   :  { %6667 = vmatpush3.msra.mxu0 %v7895_v45 }
0x15b0   :  { %6685 = vmatprep.subr.mxu0 %v7544_v0 }
0x1668   :  { %v2205_v21 = vpop.f32.mrf.mxu0 }
0x1669   :  { %v2206_v5 = vadd.f32 %v2205_v21, %v2130_v16  ;;  %v8256_v21 = vld [vmem:[#allocation16] ss:$0 sm:$0xff] }
0x166a   :  { %v6648_v17 = vpop.f32.mrf.mxu0 }
0x166b   :  { %v2209_v38 = vadd.f32 %v7823_v62, %v2206_v5 }
0x166d   :  { %7184 = vtanh.f32 %v2209_v38  ;;  %v6012_v58 = vmul.f32 -1.442695, %v2209_v38 }
0x166f   :  { %7186 = vpow2.f32 %v6012_v58 }
0x167a   :  { %v7185_v57 = vpop.eup %7184 }
0x167b   :  { %2219 = vrot.lane.b32.xlu0 %v7185_v57, %s7546_s29 }
0x167c   :  { %v7187_v59 = vpop.eup %7186 }
0x167d   :  { %v2213_v60 = vadd.f32 1.0, %v7187_v59 }
0x167f   :  { %7188 = vrcp.f32 %v2213_v60 }
0x168c   :  { %v7189_v3 = vpop.eup %7188 }
0x168d   :  { %v2217_v15 = vmul.f32 %v7189_v3, %v8021_v6 }
0x16ed   :  { %v2220_v22 = vpop.permute.xlu0 %2219 }
0x16ee   :  { %v2222_v14 = vmul.f32 %v7189_v3, %v2220_v22 }
0x16f0   :  { %2224 = vrot.lane.b32.xlu1 %v2222_v14, %s7546_s29 }
0x1762   :  { %v2225_v16 = vpop.permute.xlu1 %2224 }
0x1763   :  { %v8144_v31 = vadd.f32 %v2225_v16, %v2217_v15 }
0x1765   :  { %7190 = vtanh.f32 %v8144_v31 }
0x1772   :  { %v7191_v23 = vpop.eup %7190 }
0x1773   :  { %2230 = vrot.lane.b32.xlu0 %v7191_v23, %s7546_s29 }
0x17e5   :  { %v2231_v24 = vpop.permute.xlu0 %2230 }
0x17e6   :  { %v2233_v26 = vmul.f32 %v7189_v3, %v2231_v24 }
0x17e8   :  { %2235 = vrot.lane.b32.xlu1 %v2233_v26, %s7547_s30 }
0x185a   :  { %v2236_v27 = vpop.permute.xlu1 %2235 }
0x185b   :  { %6658 = vmatmul.mubr.msk.f32.vlgmr.msra.gmra.mxu1 %vm392_vm2, %v2236_v27 }
0x185c   :  { %6672 = vmatpush3.msra.mxu1 %v7672_v1  ;;  %6675 = vmatprep.mubr.msk.f32.mxu1 %vm7545_vm0, %v7544_v0  ;;  %v2388_v1 = vld [vmem:[#allocation5 + $0x18] sm:$0xff] }
0x185d   :  { %6673 = vmatprep.subr.mxu1 %v7544_v0 }
0x185e   :  { %6674 = vmatpush3.msra.mxu1 %v7674_v2  ;;  %v8169_v2 = vld [vmem:[#allocation7 + $0x8] sm:$0xff] }
0x185f   :  { %6678 = vmatprep.subr.mxu1 %v7544_v0  ;;  %6676 = vmatmul.mubr.msk.f32.vlgmr.msra.gmra.mxu1 %vm243_vm1, %v2388_v1 }
0x1860   :  { %6679 = vmatpush3.msra.mxu1 %v8169_v2  ;;  %6682 = vmatprep.mubr.msk.f32.mxu1 %vm7545_vm0, %v7544_v0 }
0x1861   :  { %6680 = vmatprep.subr.mxu1 %v7544_v0 }
0x191b   :  { %v2305_v6 = vpop.f32.mrf.mxu1 }
0x191c   :  { %v2306_v61 = vadd.f32 %v7902_v46, %v2305_v6 }
0x191d   :  { %v6659_v18 = vpop.f32.mrf.mxu1 }
0x191e   :  { %v2309_v19 = vmax.f32 %v2306_v61, 0.0 }
0x1920   :  { %6669 = vmatmul.mubr.msk.f32.vlgmr.msra.gmra.mxu0 %vm392_vm2, %v2309_v19 }
0x1921   :  { %6686 = vmatpush3.msra.mxu0 %v7700_v7  ;;  %6693 = vmatprep.mubr.msk.f32.mxu0 %vm7545_vm0, %v7544_v0  ;;  %v8175_v7 = vld [vmem:[#allocation7] sm:$0xff] }
0x1922   :  { %6687 = vmatprep.subr.mxu0 %v7544_v0  ;;  %6681 = vmatpush3.msra.mxu1 %v8175_v7 }
0x1923   :  { %6688 = vmatpush3.msra.mxu0 %v7707_v8  ;;  %6696 = vmatprep.subr.mxu1 %v7544_v0 }
0x1924   :  { %6689 = vmatprep.subr.mxu0 %v7544_v0 }
0x1925   :  { %6690 = vmatpush3.msra.mxu0 %v7714_v9 }
0x1926   :  { %6691 = vmatprep.subr.mxu0 %v7544_v0 }
0x1927   :  { %6692 = vmatpush3.msra.mxu0 %v7721_v10 }
0x1928   :  { %6707 = vmatprep.subr.mxu0 %v7544_v0 }
0x19e0   :  { %v2379_v8 = vpop.f32.mrf.mxu0 }
0x19e1   :  { %v2383_v9 = vadd.f32 %v2379_v8, %v8054_v56  ;;  %v8234_v56 = vld [vmem:[#allocation13 + $0x8] sm:$0xff] }
0x19e2   :  { %v6670_v10 = vpop.f32.mrf.mxu0 }
0x19e3   :  { %v8181_v20 = vadd.f32 %v7926_v63, %v2383_v9 }
0x19e5   :  { %2386 = vst.msk [vmem:[#allocation17 + $0x10] sm:$0xff] %vm243_vm1, %v8181_v20  ;;  %6683 = vmatmul.mubr.msk.f32.vlgmr.msra.gmra.mxu1 %vm243_vm1, %v8181_v20 }
0x19e6   :  { %6697 = vmatpush3.msra.mxu1 %v7724_v11  ;;  %6704 = vmatprep.mubr.msk.f32.mxu1 %vm7545_vm0, %v7544_v0  ;;  %v2458_v11 = vpop.f32.mrf.mxu1 }
0x19e7   :  { %6698 = vmatprep.subr.mxu1 %v7544_v0 }
0x19e8   :  { %6699 = vmatpush3.msra.mxu1 %v7728_v12  ;;  %v6677_v12 = vpop.f32.mrf.mxu1 }
0x19e9   :  { %6700 = vmatprep.subr.mxu1 %v7544_v0 }
0x19ea   :  { %6701 = vmatpush3.msra.mxu1 %v7732_v13 }
0x19eb   :  { %6702 = vmatprep.subr.mxu1 %v7544_v0 }
0x19ec   :  { %6703 = vmatpush3.msra.mxu1 %v7753_v25 }
0x19ed   :  { %6705 = vmatmul.mubr.msk.f32.vlgmr.msra.gmra.mxu1 %vm392_vm2, %v8126_v4  ;;  %6718 = vmatprep.subr.mxu1 %v7544_v0 }
0x19ee   :  { %6719 = vmatpush3.msra.mxu1 %v7780_v48  ;;  %6726 = vmatprep.mubr.msk.f32.mxu1 %vm7545_vm0, %v7544_v0 }
0x19ef   :  { %6720 = vmatprep.subr.mxu1 %v7544_v0 }
0x19f0   :  { %6721 = vmatpush3.msra.mxu1 %v7784_v50  ;;  %v8220_v50 = vld [vmem:[#allocation10] ss:$0 sm:$0xff] }
0x19f1   :  { %6722 = vmatprep.subr.mxu1 %v7544_v0 }
0x19f2   :  { %6723 = vmatpush3.msra.mxu1 %v7792_v52 }
0x19f3   :  { %6724 = vmatprep.subr.mxu1 %v7544_v0 }
0x19f4   :  { %6725 = vmatpush3.msra.mxu1 %v7800_v54 }
0x19f5   :  { %6727 = vmatmul.mubr.msk.f32.vlgmr.msra.gmra.mxu1 %vm392_vm2, %v2236_v27  ;;  %6740 = vmatprep.subr.mxu1 %v7544_v0 }
0x19f6   :  { %6741 = vmatpush3.msra.mxu1 %v7834_v34  ;;  %6748 = vmatprep.mubr.msk.f32.mxu1 %vm7545_vm0, %v7544_v0 }
0x19f7   :  { %6742 = vmatprep.subr.mxu1 %v7544_v0 }
0x19f8   :  { %6743 = vmatpush3.msra.mxu1 %v7839_v35  ;;  %v8224_v35 = vld [vmem:[#allocation13 + $0x18] sm:$0xff] }
0x19f9   :  { %6744 = vmatprep.subr.mxu1 %v7544_v0 }
0x19fa   :  { %6745 = vmatpush3.msra.mxu1 %v7846_v36 }
0x19fb   :  { %6746 = vmatprep.subr.mxu1 %v7544_v0 }
0x19fc   :  { %6747 = vmatpush3.msra.mxu1 %v7853_v37  ;;  %v8230_v37 = vld [vmem:[#allocation13 + $0x10] sm:$0xff] }
0x19fd   :  { %6762 = vmatprep.subr.mxu1 %v7544_v0 }
0x1aa5   :  { %v2531_v13 = vpop.f32.mrf.mxu1 }
0x1aa6   :  { %v2532_v25 = vadd.f32 %v2531_v13, %v2458_v11  ;;  %v8294_v11 = vld [vmem:[#allocation8 + $0x8] sm:$0xff] }
0x1aa7   :  { %v6684_v48 = vpop.f32.mrf.mxu1 }
0x1aa8   :  { %v2535_v52 = vadd.f32 %v8220_v50, %v2532_v25 }
0x1aaa   :  { %v2536_v54 = vmax.f32 %v2535_v52, 0.0  ;;  %v8309_v52 = vld [vmem:[%s8883_s5 + $0x18] sm:$0xff] }
0x1aac   :  { %6694 = vmatmul.mubr.msk.f32.vlgmr.msra.gmra.mxu0 %vm392_vm2, %v2536_v54  ;;  %v8325_v54 = vld [vmem:[%s8883_s5 + $0x8] sm:$0xff] }
0x1aad   :  { %v2676_v34 = vpop.f32.mrf.mxu1  ;;  %6708 = vmatpush3.msra.mxu0 %v8224_v35  ;;  %6715 = vmatprep.mubr.msk.f32.mxu0 %vm7545_vm0, %v7544_v0 }
0x1aae   :  { %6709 = vmatprep.subr.mxu0 %v7544_v0 }
0x1aaf   :  { %v6706_v36 = vpop.f32.mrf.mxu1  ;;  %6710 = vmatpush3.msra.mxu0 %v8230_v37 }
0x1ab0   :  { %6711 = vmatprep.subr.mxu0 %v7544_v0  ;;  %v3102_v36 = vld [vmem:[#allocation5 + $0x20] sm:$0xff] }
0x1ab1   :  { %6712 = vmatpush3.msra.mxu0 %v8234_v56 }
0x1ab2   :  { %6713 = vmatprep.subr.mxu0 %v7544_v0 }
0x1ab3   :  { %6714 = vmatpush3.msra.mxu0 %v8238_v32 }
0x1ab4   :  { %6729 = vmatprep.subr.mxu0 %v7544_v0 }
0x1ab5   :  { %v2844_v28 = vpop.f32.mrf.mxu1 }
0x1ab7   :  { %v6728_v29 = vpop.f32.mrf.mxu1 }
0x1b6c   :  { %v2606_v30 = vpop.f32.mrf.mxu0 }
0x1b6d   :  { %v2607_v33 = vadd.f32 %v8242_v47, %v2606_v30 }
0x1b6e   :  { %v6695_v41 = vpop.f32.mrf.mxu0 }
0x1b6f   :  { %6716 = vmatmul.mubr.msk.f32.vlgmr.msra.gmra.mxu0 %vm392_vm2, %v2607_v33  ;;  %v8351_v41 = vld [vmem:[#allocation14 + $0x18] sm:$0xff] }
0x1b70   :  { %6730 = vmatpush3.msra.mxu0 %v7782_v49  ;;  %6737 = vmatprep.mubr.msk.f32.mxu0 %vm7545_vm0, %v7544_v0 }
0x1b71   :  { %6731 = vmatprep.subr.mxu0 %v7544_v0 }
0x1b72   :  { %6732 = vmatpush3.msra.mxu0 %v7788_v51 }
0x1b73   :  { %6733 = vmatprep.subr.mxu0 %v7544_v0 }
0x1b74   :  { %6734 = vmatpush3.msra.mxu0 %v7794_v53 }
0x1b75   :  { %6735 = vmatprep.subr.mxu0 %v7544_v0 }
0x1b76   :  { %6736 = vmatpush3.msra.mxu0 %v7802_v55 }
0x1b77   :  { %6751 = vmatprep.subr.mxu0 %v7544_v0 }
0x1c2f   :  { %v2749_v42 = vpop.f32.mrf.mxu0 }
0x1c30   :  { %v2750_v4 = vadd.f32 %v2749_v42, %v2676_v34  ;;  %v8332_v34 = vld [vmem:[%s8883_s5] sm:$0xff]  ;;  %v8365_v42 = vld [vmem:[#allocation14] sm:$0xff] }
0x1c31   :  { %v6717_v49 = vpop.f32.mrf.mxu0 }
0x1c32   :  { %v2753_v5 = vadd.f32 %v8256_v21, %v2750_v4  ;;  %v8371_v4 = vld [vmem:[#allocation14 + $0x38] sm:$0xff]  ;;  %v8377_v49 = vld [vmem:[#allocation14 + $0x30] sm:$0xff] }
0x1c34   :  { %7192 = vtanh.f32 %v2753_v5  ;;  %v6020_v51 = vmul.f32 -1.442695, %v2753_v5  ;;  %v8381_v5 = vld [vmem:[#allocation14 + $0x28] sm:$0xff] }
0x1c36   :  { %7194 = vpow2.f32 %v6020_v51  ;;  %v8394_v51 = vld [vmem:[%s8888_s10 + $0x18] sm:$0xff] }
0x1c41   :  { %v7193_v17 = vpop.eup %7192 }
0x1c42   :  { %2763 = vrot.lane.b32.xlu0 %v7193_v17, %s7546_s29  ;;  %v8385_v17 = vld [vmem:[#allocation14 + $0x20] sm:$0xff] }
0x1c43   :  { %v7195_v53 = vpop.eup %7194 }
0x1c44   :  { %v2757_v38 = vadd.f32 1.0, %v7195_v53  ;;  %v8403_v53 = vld [vmem:[%s8888_s10 + $0x10] sm:$0xff] }
0x1c46   :  { %7196 = vrcp.f32 %v2757_v38  ;;  %v8410_v38 = vld [vmem:[%s8888_s10 + $0x8] sm:$0xff] }
0x1c53   :  { %v7197_v57 = vpop.eup %7196 }
0x1c54   :  { %v2761_v59 = vmul.f32 %v7197_v57, %v8121_v40 }
0x1cb4   :  { %v2764_v55 = vpop.permute.xlu0 %2763 }
0x1cb5   :  { %v2766_v58 = vmul.f32 %v7197_v57, %v2764_v55 }
0x1cb7   :  { %2768 = vrot.lane.b32.xlu1 %v2766_v58, %s7546_s29 }
0x1d29   :  { %v2769_v60 = vpop.permute.xlu1 %2768 }
0x1d2a   :  { %v8262_v3 = vadd.f32 %v2769_v60, %v2761_v59 }
0x1d2c   :  { %7198 = vtanh.f32 %v8262_v3 }
0x1d39   :  { %v7199_v22 = vpop.eup %7198 }
0x1d3a   :  { %2774 = vrot.lane.b32.xlu0 %v7199_v22, %s7546_s29 }
0x1dac   :  { %v2775_v14 = vpop.permute.xlu0 %2774 }
0x1dad   :  { %v2777_v15 = vmul.f32 %v7197_v57, %v2775_v14  ;;  %v8417_v57 = vld [vmem:[%s8888_s10] sm:$0xff] }
0x1daf   :  { %2849 = vrot.lane.b32.xlu1 %v2777_v15, %s7547_s30 }
0x1e21   :  { %v8267_v16 = vpop.permute.xlu1 %2849 }
0x1e22   :  { %6738 = vmatmul.mubr.msk.f32.vlgmr.msra.gmra.mxu0 %vm392_vm2, %v8267_v16 }
0x1e23   :  { %6752 = vmatpush3.msra.mxu0 %v7863_v39  ;;  %6759 = vmatprep.mubr.msk.f32.mxu0 %vm7545_vm0, %v7544_v0 }
0x1e24   :  { %6753 = vmatprep.subr.mxu0 %v7544_v0 }
0x1e25   :  { %6754 = vmatpush3.msra.mxu0 %v7881_v43 }
0x1e26   :  { %6755 = vmatprep.subr.mxu0 %v7544_v0 }
0x1e27   :  { %6756 = vmatpush3.msra.mxu0 %v7888_v44 }
0x1e28   :  { %6757 = vmatprep.subr.mxu0 %v7544_v0 }
0x1e29   :  { %6758 = vmatpush3.msra.mxu0 %v7895_v45 }
0x1e2a   :  { %6776 = vmatprep.subr.mxu0 %v7544_v0 }
0x1ee2   :  { %v2919_v40 = vpop.f32.mrf.mxu0 }
0x1ee3   :  { %v2920_v23 = vadd.f32 %v2919_v40, %v2844_v28 }
0x1ee4   :  { %v6739_v39 = vpop.f32.mrf.mxu0 }
0x1ee5   :  { %v2923_v24 = vadd.f32 %v7823_v62, %v2920_v23 }
0x1ee7   :  { %7200 = vtanh.f32 %v2923_v24  ;;  %v6023_v43 = vmul.f32 -1.442695, %v2923_v24 }
0x1ee9   :  { %7202 = vpow2.f32 %v6023_v43 }
0x1ef4   :  { %v7201_v26 = vpop.eup %7200 }
0x1ef5   :  { %2933 = vrot.lane.b32.xlu0 %v7201_v26, %s7546_s29 }
0x1ef6   :  { %v7203_v27 = vpop.eup %7202 }
0x1ef7   :  { %v2927_v6 = vadd.f32 1.0, %v7203_v27  ;;  %v8435_v27 = vld [vmem:[#allocation13 + $0x38] sm:$0xff] }
0x1ef9   :  { %7204 = vrcp.f32 %v2927_v6  ;;  %v8441_v6 = vld [vmem:[#allocation13 + $0x30] sm:$0xff] }
0x1f06   :  { %v7205_v44 = vpop.eup %7204 }
0x1f07   :  { %v2931_v45 = vmul.f32 %v7205_v44, %v8144_v31  ;;  %v8300_v31 = vld [vmem:[#allocation8] sm:$0xff] }
0x1f67   :  { %v2934_v61 = vpop.permute.xlu0 %2933 }
0x1f68   :  { %v2936_v18 = vmul.f32 %v7205_v44, %v2934_v61  ;;  %v8449_v61 = vld [vmem:[#allocation13 + $0x20] sm:$0xff] }
0x1f6a   :  { %2938 = vrot.lane.b32.xlu1 %v2936_v18, %s7546_s29 }
0x1fdc   :  { %v2939_v19 = vpop.permute.xlu1 %2938 }
0x1fdd   :  { %v8285_v1 = vadd.f32 %v2939_v19, %v2931_v45 }
0x1fdf   :  { %7206 = vtanh.f32 %v8285_v1 }
0x1fec   :  { %v7207_v62 = vpop.eup %7206 }
0x1fed   :  { %2944 = vrot.lane.b32.xlu0 %v7207_v62, %s7546_s29 }
0x205f   :  { %v2945_v8 = vpop.permute.xlu0 %2944 }
0x2060   :  { %v2947_v9 = vmul.f32 %v7205_v44, %v2945_v8  ;;  %v8445_v44 = vld [vmem:[#allocation13 + $0x28] sm:$0xff] }
0x2062   :  { %2949 = vrot.lane.b32.xlu1 %v2947_v9, %s7547_s30 }
0x20d4   :  { %v8290_v10 = vpop.permute.xlu1 %2949 }
0x20d5   :  { %6749 = vmatmul.mubr.msk.f32.vlgmr.msra.gmra.mxu1 %vm392_vm2, %v8290_v10 }
0x20d6   :  { %6763 = vmatpush3.msra.mxu1 %v8294_v11  ;;  %6766 = vmatprep.mubr.msk.f32.mxu1 %vm7545_vm0, %v7544_v0 }
0x20d7   :  { %6764 = vmatprep.subr.mxu1 %v7544_v0 }
0x20d8   :  { %6765 = vmatpush3.msra.mxu1 %v8300_v31 }
0x20d9   :  { %6769 = vmatprep.subr.mxu1 %v7544_v0  ;;  %6767 = vmatmul.mubr.msk.f32.vlgmr.msra.gmra.mxu1 %vm243_vm1, %v3102_v36 }
0x20da   :  { %6770 = vmatpush3.msra.mxu1 %v8169_v2  ;;  %6773 = vmatprep.mubr.msk.f32.mxu1 %vm7545_vm0, %v7544_v0 }
0x20db   :  { %6771 = vmatprep.subr.mxu1 %v7544_v0 }
0x20dc   :  { %6772 = vmatpush3.msra.mxu1 %v8175_v7 }
0x20dd   :  { %6787 = vmatprep.subr.mxu1 %v7544_v0 }
0x2195   :  { %v3019_v12 = vpop.f32.mrf.mxu1 }
0x2196   :  { %v3020_v13 = vadd.f32 %v7902_v46, %v3019_v12  ;;  %v8318_v46 = vld [vmem:[%s8883_s5 + $0x10] sm:$0xff] }
0x2197   :  { %v6750_v25 = vpop.f32.mrf.mxu1 }
0x2198   :  { %v3023_v48 = vmax.f32 %v3020_v13, 0.0 }
0x2199   :  { %v3172_v55 = vpop.f32.mrf.mxu1 }
0x219a   :  { %6760 = vmatmul.mubr.msk.f32.vlgmr.msra.gmra.mxu0 %vm392_vm2, %v3023_v48 }
0x219b   :  { %6777 = vmatpush3.msra.mxu0 %v8309_v52  ;;  %6784 = vmatprep.mubr.msk.f32.mxu0 %vm7545_vm0, %v7544_v0  ;;  %v6768_v58 = vpop.f32.mrf.mxu1 }
0x219c   :  { %6778 = vmatprep.subr.mxu0 %v7544_v0 }
0x219d   :  { %6779 = vmatpush3.msra.mxu0 %v8318_v46 }
0x219e   :  { %6780 = vmatprep.subr.mxu0 %v7544_v0 }
0x219f   :  { %6781 = vmatpush3.msra.mxu0 %v8325_v54 }
0x21a0   :  { %6782 = vmatprep.subr.mxu0 %v7544_v0 }
0x21a1   :  { %6783 = vmatpush3.msra.mxu0 %v8332_v34 }
0x21a2   :  { %6798 = vmatprep.subr.mxu0 %v7544_v0 }
0x225a   :  { %v3093_v28 = vpop.f32.mrf.mxu0 }
0x225b   :  { %v3097_v29 = vadd.f32 %v3093_v28, %v8181_v20  ;;  %v8357_v20 = vld [vmem:[#allocation14 + $0x10] sm:$0xff] }
0x225c   :  { %v6761_v30 = vpop.f32.mrf.mxu0 }
0x225d   :  { %v8345_v33 = vadd.f32 %v7926_v63, %v3097_v29  ;;  %v8361_v63 = vld [vmem:[#allocation14 + $0x8] sm:$0xff] }
0x225f   :  { %3100 = vst.msk [vmem:[#allocation17 + $0x18] sm:$0xff] %vm243_vm1, %v8345_v33  ;;  %6774 = vmatmul.mubr.msk.f32.vlgmr.msra.gmra.mxu1 %vm243_vm1, %v8345_v33 }
0x2260   :  { %6788 = vmatpush3.msra.mxu1 %v8351_v41  ;;  %6795 = vmatprep.mubr.msk.f32.mxu1 %vm7545_vm0, %v7544_v0 }
0x2261   :  { %6789 = vmatprep.subr.mxu1 %v7544_v0 }
0x2262   :  { %6790 = vmatpush3.msra.mxu1 %v8357_v20 }
0x2263   :  { %6791 = vmatprep.subr.mxu1 %v7544_v0 }
0x2264   :  { %6792 = vmatpush3.msra.mxu1 %v8361_v63 }
0x2265   :  { %6793 = vmatprep.subr.mxu1 %v7544_v0 }
0x2266   :  { %6794 = vmatpush3.msra.mxu1 %v8365_v42 }
0x2267   :  { %6796 = vmatmul.mubr.msk.f32.vlgmr.msra.gmra.mxu1 %vm392_vm2, %v8267_v16  ;;  %6809 = vmatprep.subr.mxu1 %v7544_v0 }
0x2268   :  { %6810 = vmatpush3.msra.mxu1 %v8371_v4  ;;  %6817 = vmatprep.mubr.msk.f32.mxu1 %vm7545_vm0, %v7544_v0 }
0x2269   :  { %6811 = vmatprep.subr.mxu1 %v7544_v0 }
0x226a   :  { %6812 = vmatpush3.msra.mxu1 %v8377_v49 }
0x226b   :  { %6813 = vmatprep.subr.mxu1 %v7544_v0 }
0x226c   :  { %6814 = vmatpush3.msra.mxu1 %v8381_v5 }
0x226d   :  { %6815 = vmatprep.subr.mxu1 %v7544_v0 }
0x226e   :  { %6816 = vmatpush3.msra.mxu1 %v8385_v17 }
0x226f   :  { %6818 = vmatmul.mubr.msk.f32.vlgmr.msra.gmra.mxu1 %vm392_vm2, %v8290_v10  ;;  %6831 = vmatprep.subr.mxu1 %v7544_v0 }
0x2270   :  { %6832 = vmatpush3.msra.mxu1 %v8394_v51  ;;  %6839 = vmatprep.mubr.msk.f32.mxu1 %vm7545_vm0, %v7544_v0 }
0x2271   :  { %6833 = vmatprep.subr.mxu1 %v7544_v0 }
0x2272   :  { %6834 = vmatpush3.msra.mxu1 %v8403_v53 }
0x2273   :  { %6835 = vmatprep.subr.mxu1 %v7544_v0 }
0x2274   :  { %6836 = vmatpush3.msra.mxu1 %v8410_v38 }
0x2275   :  { %6837 = vmatprep.subr.mxu1 %v7544_v0 }
0x2276   :  { %6838 = vmatpush3.msra.mxu1 %v8417_v57 }
0x2277   :  { %6853 = vmatprep.subr.mxu1 %v7544_v0 }
0x231f   :  { %v3245_v59 = vpop.f32.mrf.mxu1 }
0x2320   :  { %v3246_v60 = vadd.f32 %v3245_v59, %v3172_v55 }
0x2321   :  { %v6775_v22 = vpop.f32.mrf.mxu1 }
0x2322   :  { %v3249_v14 = vadd.f32 %v8220_v50, %v3246_v60  ;;  %v8478_v60 = vld [vmem:[%s8890_s12 + $0x10] sm:$0xff]  ;;  %v8485_v22 = vld [vmem:[%s8890_s12 + $0x8] sm:$0xff] }
0x2324   :  { %v3250_v15 = vmax.f32 %v3249_v14, 0.0  ;;  %v8492_v14 = vld [vmem:[%s8890_s12] sm:$0xff] }
0x2326   :  { %6785 = vmatmul.mubr.msk.f32.vlgmr.msra.gmra.mxu0 %vm392_vm2, %v3250_v15 }
0x2327   :  { %v3390_v16 = vpop.f32.mrf.mxu1  ;;  %6799 = vmatpush3.msra.mxu0 %v8224_v35  ;;  %6806 = vmatprep.mubr.msk.f32.mxu0 %vm7545_vm0, %v7544_v0 }
0x2328   :  { %6800 = vmatprep.subr.mxu0 %v7544_v0 }
0x2329   :  { %v6797_v40 = vpop.f32.mrf.mxu1  ;;  %6801 = vmatpush3.msra.mxu0 %v8230_v37 }
0x232a   :  { %6802 = vmatprep.subr.mxu0 %v7544_v0 }
0x232b   :  { %6803 = vmatpush3.msra.mxu0 %v8234_v56 }
0x232c   :  { %6804 = vmatprep.subr.mxu0 %v7544_v0 }
0x232d   :  { %6805 = vmatpush3.msra.mxu0 %v8238_v32 }
0x232e   :  { %6820 = vmatprep.subr.mxu0 %v7544_v0 }
0x232f   :  { %v3558_v23 = vpop.f32.mrf.mxu1 }
0x2331   :  { %v6819_v39 = vpop.f32.mrf.mxu1 }
0x2332   :  { %v8496_v39 = vld [vmem:[#allocation16 + $0x1] ss:$0 sm:$0xff] }
0x23e6   :  { %v3320_v24 = vpop.f32.mrf.mxu0 }
0x23e7   :  { %v3321_v26 = vadd.f32 %v8242_v47, %v3320_v24 }
0x23e8   :  { %v6786_v43 = vpop.f32.mrf.mxu0 }
0x23e9   :  { %6807 = vmatmul.mubr.msk.f32.vlgmr.msra.gmra.mxu0 %vm392_vm2, %v3321_v26 }
0x23ea   :  { %6821 = vmatpush3.msra.mxu0 %v8435_v27  ;;  %6828 = vmatprep.mubr.msk.f32.mxu0 %vm7545_vm0, %v7544_v0 }
0x23eb   :  { %6822 = vmatprep.subr.mxu0 %v7544_v0 }
0x23ec   :  { %6823 = vmatpush3.msra.mxu0 %v8441_v6 }
0x23ed   :  { %6824 = vmatprep.subr.mxu0 %v7544_v0 }
0x23ee   :  { %6825 = vmatpush3.msra.mxu0 %v8445_v44 }
0x23ef   :  { %6826 = vmatprep.subr.mxu0 %v7544_v0 }
0x23f0   :  { %6827 = vmatpush3.msra.mxu0 %v8449_v61 }
0x23f1   :  { %6842 = vmatprep.subr.mxu0 %v7544_v0 }
0x24a9   :  { %v3463_v18 = vpop.f32.mrf.mxu0 }
0x24aa   :  { %v3464_v45 = vadd.f32 %v3463_v18, %v3390_v16 }
0x24ab   :  { %v6808_v19 = vpop.f32.mrf.mxu0 }
0x24ac   :  { %v3467_v62 = vadd.f32 %v8256_v21, %v3464_v45 }
0x24ae   :  { %7208 = vtanh.f32 %v3467_v62  ;;  %v6031_v9 = vmul.f32 -1.442695, %v3467_v62 }
0x24b0   :  { %7210 = vpow2.f32 %v6031_v9 }
0x24bb   :  { %v7209_v8 = vpop.eup %7208 }
0x24bc   :  { %3477 = vrot.lane.b32.xlu0 %v7209_v8, %s7546_s29 }
0x24bd   :  { %v7211_v10 = vpop.eup %7210 }
0x24be   :  { %v3471_v12 = vadd.f32 1.0, %v7211_v10 }
0x24c0   :  { %7212 = vrcp.f32 %v3471_v12 }
0x24cd   :  { %v7213_v13 = vpop.eup %7212 }
0x24ce   :  { %v3475_v36 = vmul.f32 %v7213_v13, %v8262_v3  ;;  %v8469_v3 = vld [vmem:[%s8890_s12 + $0x18] sm:$0xff] }
0x252e   :  { %v3478_v25 = vpop.permute.xlu0 %3477 }
0x252f   :  { %v3480_v48 = vmul.f32 %v7213_v13, %v3478_v25 }
0x2531   :  { %3482 = vrot.lane.b32.xlu1 %v3480_v48, %s7546_s29 }
0x25a3   :  { %v3483_v28 = vpop.permute.xlu1 %3482 }
0x25a4   :  { %v8457_v29 = vadd.f32 %v3483_v28, %v3475_v36  ;;  %v8517_v36 = vld [vmem:[%s8889_s11] ss:$0 sm:$0xff] }
0x25a6   :  { %7214 = vtanh.f32 %v8457_v29 }
0x25b3   :  { %v7215_v30 = vpop.eup %7214 }
0x25b4   :  { %3488 = vrot.lane.b32.xlu0 %v7215_v30, %s7546_s29 }
0x2626   :  { %v3489_v55 = vpop.permute.xlu0 %3488 }
0x2627   :  { %v3491_v58 = vmul.f32 %v7213_v13, %v3489_v55 }
0x2629   :  { %3563 = vrot.lane.b32.xlu1 %v3491_v58, %s7547_s30  ;;  %v3816_v58 = vld [vmem:[#allocation5 + $0x28] sm:$0xff] }
0x269b   :  { %v8462_v59 = vpop.permute.xlu1 %3563 }
0x269c   :  { %6829 = vmatmul.mubr.msk.f32.vlgmr.msra.gmra.mxu0 %vm392_vm2, %v8462_v59 }
0x269d   :  { %6843 = vmatpush3.msra.mxu0 %v8469_v3  ;;  %6850 = vmatprep.mubr.msk.f32.mxu0 %vm7545_vm0, %v7544_v0 }
0x269e   :  { %6844 = vmatprep.subr.mxu0 %v7544_v0 }
0x269f   :  { %6845 = vmatpush3.msra.mxu0 %v8478_v60 }
0x26a0   :  { %6846 = vmatprep.subr.mxu0 %v7544_v0 }
0x26a1   :  { %6847 = vmatpush3.msra.mxu0 %v8485_v22 }
0x26a2   :  { %6848 = vmatprep.subr.mxu0 %v7544_v0 }
0x26a3   :  { %6849 = vmatpush3.msra.mxu0 %v8492_v14 }
0x26a4   :  { %6867 = vmatprep.subr.mxu0 %v7544_v0 }
0x275c   :  { %v3633_v15 = vpop.f32.mrf.mxu0 }
0x275d   :  { %v3634_v16 = vadd.f32 %v3633_v15, %v3558_v23 }
0x275e   :  { %v6830_v40 = vpop.f32.mrf.mxu0 }
0x275f   :  { %v3637_v24 = vadd.f32 %v8496_v39, %v3634_v16 }
0x2761   :  { %7216 = vtanh.f32 %v3637_v24  ;;  %v6034_v43 = vmul.f32 -1.442695, %v3637_v24  ;;  %v8542_v24 = vld [vmem:[%s8891_s13] ss:$0 sm:$0xff]  ;;  %s7548_s13 = smov [#allocation17]  }
0x2762   :  { %s5962_s19 = sshll.u32 %s7548_s13, 4  ;;  %s5963_s19 = int_to_ptr.vmem [resolvable:$true] %s5962_s19 }
0x2763   :  { %7218 = vpow2.f32 %v6034_v43  ;;  %p7504_p4 = scmp.lt.s32.totalorder %s5963_s19, %s5963_s19 }
0x276e   :  { %v7217_v26 = vpop.eup %7216 }
0x276f   :  { %3647 = vrot.lane.b32.xlu0 %v7217_v26, %s7546_s29 }
0x2770   :  { %v7219_v18 = vpop.eup %7218 }
0x2771   :  { %v3641_v45 = vadd.f32 1.0, %v7219_v18 }
0x2773   :  { %7220 = vrcp.f32 %v3641_v45 }
0x2780   :  { %v7221_v19 = vpop.eup %7220 }
0x2781   :  { %v3645_v23 = vmul.f32 %v7221_v19, %v8285_v1 }
0x27e1   :  { %v3648_v62 = vpop.permute.xlu0 %3647 }
0x27e2   :  { %v3650_v8 = vmul.f32 %v7221_v19, %v3648_v62 }
0x27e4   :  { %3652 = vrot.lane.b32.xlu1 %v3650_v8, %s7546_s29 }
0x2856   :  { %v3653_v9 = vpop.permute.xlu1 %3652 }
0x2857   :  { %v8502_v10 = vadd.f32 %v3653_v9, %v3645_v23 }
0x2859   :  { %7222 = vtanh.f32 %v8502_v10 }
0x2866   :  { %v7223_v12 = vpop.eup %7222 }
0x2867   :  { %3658 = vrot.lane.b32.xlu0 %v7223_v12, %s7546_s29 }
0x28d9   :  { %v3659_v13 = vpop.permute.xlu0 %3658 }
0x28da   :  { %v3661_v25 = vmul.f32 %v7221_v19, %v3659_v13 }
0x28dc   :  { %3663 = vrot.lane.b32.xlu1 %v3661_v25, %s7547_s30 }
0x294e   :  { %v3664_v48 = vpop.permute.xlu1 %3663 }
0x294f   :  { %6840 = vmatmul.mubr.msk.f32.vlgmr.msra.gmra.mxu1 %vm392_vm2, %v3664_v48 }
0x2950   :  { %6854 = vmatpush3.msra.mxu1 %v8294_v11  ;;  %6857 = vmatprep.mubr.msk.f32.mxu1 %vm7545_vm0, %v7544_v0 }
0x2951   :  { %6855 = vmatprep.subr.mxu1 %v7544_v0 }
0x2952   :  { %6856 = vmatpush3.msra.mxu1 %v8300_v31 }
0x2953   :  { %6860 = vmatprep.subr.mxu1 %v7544_v0  ;;  %6858 = vmatmul.mubr.msk.f32.vlgmr.msra.gmra.mxu1 %vm243_vm1, %v3816_v58 }
0x2954   :  { %6861 = vmatpush3.msra.mxu1 %v8169_v2  ;;  %6864 = vmatprep.mubr.msk.f32.mxu1 %vm7545_vm0, %v7544_v0 }
0x2955   :  { %6862 = vmatprep.subr.mxu1 %v7544_v0 }
0x2956   :  { %6863 = vmatpush3.msra.mxu1 %v8175_v7 }
0x2957   :  { %6878 = vmatprep.subr.mxu1 %v7544_v0 }
0x2a0f   :  { %v3733_v1 = vpop.f32.mrf.mxu1 }
0x2a10   :  { %v3734_v28 = vadd.f32 %v8517_v36, %v3733_v1 }
0x2a11   :  { %v6841_v30 = vpop.f32.mrf.mxu1 }
0x2a12   :  { %v3737_v55 = vmax.f32 %v3734_v28, 0.0 }
0x2a14   :  { %6851 = vmatmul.mubr.msk.f32.vlgmr.msra.gmra.mxu0 %vm392_vm2, %v3737_v55 }
0x2a15   :  { %6868 = vmatpush3.msra.mxu0 %v8309_v52  ;;  %6875 = vmatprep.mubr.msk.f32.mxu0 %vm7545_vm0, %v7544_v0 }
0x2a16   :  { %6869 = vmatprep.subr.mxu0 %v7544_v0 }
0x2a17   :  { %6870 = vmatpush3.msra.mxu0 %v8318_v46 }
0x2a18   :  { %6871 = vmatprep.subr.mxu0 %v7544_v0 }
0x2a19   :  { %6872 = vmatpush3.msra.mxu0 %v8325_v54 }
0x2a1a   :  { %6873 = vmatprep.subr.mxu0 %v7544_v0 }
0x2a1b   :  { %6874 = vmatpush3.msra.mxu0 %v8332_v34 }
0x2a1c   :  { %6889 = vmatprep.subr.mxu0 %v7544_v0 }
0x2ad4   :  { %v3807_v15 = vpop.f32.mrf.mxu0 }
0x2ad5   :  { %v3811_v16 = vadd.f32 %v3807_v15, %v8345_v33  ;;  %v3886_v33 = vpop.f32.mrf.mxu1 }
0x2ad6   :  { %v6852_v40 = vpop.f32.mrf.mxu0 }
0x2ad7   :  { %v8545_v26 = vadd.f32 %v8542_v24, %v3811_v16 }
0x2ad9   :  { %3814 = vst.msk [vmem:[#allocation17 + $0x20] sm:$0xff] %vm243_vm1, %v8545_v26  ;;  %6865 = vmatmul.mubr.msk.f32.vlgmr.msra.gmra.mxu1 %vm243_vm1, %v8545_v26 }
0x2ada   :  { %6879 = vmatpush3.msra.mxu1 %v8351_v41  ;;  %6886 = vmatprep.mubr.msk.f32.mxu1 %vm7545_vm0, %v7544_v0 }
0x2adb   :  { %6880 = vmatprep.subr.mxu1 %v7544_v0 }
0x2adc   :  { %6881 = vmatpush3.msra.mxu1 %v8357_v20 }
0x2add   :  { %6882 = vmatprep.subr.mxu1 %v7544_v0 }
0x2ade   :  { %6883 = vmatpush3.msra.mxu1 %v8361_v63 }
0x2adf   :  { %6884 = vmatprep.subr.mxu1 %v7544_v0 }
0x2ae0   :  { %6885 = vmatpush3.msra.mxu1 %v8365_v42 }
0x2ae1   :  { %6887 = vmatmul.mubr.msk.f32.vlgmr.msra.gmra.mxu1 %vm392_vm2, %v8462_v59  ;;  %6900 = vmatprep.subr.mxu1 %v7544_v0  ;;  %v6859_v59 = vpop.f32.mrf.mxu1 }
0x2ae2   :  { %6901 = vmatpush3.msra.mxu1 %v8371_v4  ;;  %6908 = vmatprep.mubr.msk.f32.mxu1 %vm7545_vm0, %v7544_v0 }
0x2ae3   :  { %6902 = vmatprep.subr.mxu1 %v7544_v0 }
0x2ae4   :  { %6903 = vmatpush3.msra.mxu1 %v8377_v49 }
0x2ae5   :  { %6904 = vmatprep.subr.mxu1 %v7544_v0 }
0x2ae6   :  { %6905 = vmatpush3.msra.mxu1 %v8381_v5 }
0x2ae7   :  { %6906 = vmatprep.subr.mxu1 %v7544_v0 }
0x2ae8   :  { %6907 = vmatpush3.msra.mxu1 %v8385_v17 }
0x2ae9   :  { %6909 = vmatmul.mubr.msk.f32.vlgmr.msra.gmra.mxu1 %vm392_vm2, %v3664_v48  ;;  %6922 = vmatprep.subr.mxu1 %v7544_v0 }
0x2aea   :  { %6923 = vmatpush3.msra.mxu1 %v8394_v51  ;;  %6930 = vmatprep.mubr.msk.f32.mxu1 %vm7545_vm0, %v7544_v0 }
0x2aeb   :  { %6924 = vmatprep.subr.mxu1 %v7544_v0 }
0x2aec   :  { %6925 = vmatpush3.msra.mxu1 %v8403_v53 }
0x2aed   :  { %6926 = vmatprep.subr.mxu1 %v7544_v0 }
0x2aee   :  { %6927 = vmatpush3.msra.mxu1 %v8410_v38 }
0x2aef   :  { %6928 = vmatprep.subr.mxu1 %v7544_v0 }
0x2af0   :  { %6929 = vmatpush3.msra.mxu1 %v8417_v57 }
0x2af1   :  { %6944 = vmatprep.subr.mxu1 %v7544_v0 }
0x2b99   :  { %v3959_v43 = vpop.f32.mrf.mxu1 }
0x2b9a   :  { %v3960_v18 = vadd.f32 %v3959_v43, %v3886_v33 }
0x2b9b   :  { %v6866_v45 = vpop.f32.mrf.mxu1 }
0x2b9c   :  { %v3963_v19 = vadd.f32 %v8220_v50, %v3960_v18 }
0x2b9e   :  { %v3964_v62 = vmax.f32 %v3963_v19, 0.0 }
0x2ba0   :  { %6876 = vmatmul.mubr.msk.f32.vlgmr.msra.gmra.mxu0 %vm392_vm2, %v3964_v62 }
0x2ba1   :  { %v4104_v8 = vpop.f32.mrf.mxu1  ;;  %6890 = vmatpush3.msra.mxu0 %v8224_v35  ;;  %6897 = vmatprep.mubr.msk.f32.mxu0 %vm7545_vm0, %v7544_v0 }
0x2ba2   :  { %6891 = vmatprep.subr.mxu0 %v7544_v0 }
0x2ba3   :  { %v6888_v23 = vpop.f32.mrf.mxu1  ;;  %6892 = vmatpush3.msra.mxu0 %v8230_v37 }
0x2ba4   :  { %6893 = vmatprep.subr.mxu0 %v7544_v0 }
0x2ba5   :  { %6894 = vmatpush3.msra.mxu0 %v8234_v56 }
0x2ba6   :  { %6895 = vmatprep.subr.mxu0 %v7544_v0 }
0x2ba7   :  { %6896 = vmatpush3.msra.mxu0 %v8238_v32 }
0x2ba8   :  { %6911 = vmatprep.subr.mxu0 %v7544_v0 }
0x2ba9   :  { %v4272_v9 = vpop.f32.mrf.mxu1 }
0x2bab   :  { %v6910_v12 = vpop.f32.mrf.mxu1 }
0x2c60   :  { %v4034_v13 = vpop.f32.mrf.mxu0 }
0x2c61   :  { %v4035_v25 = vadd.f32 %v8242_v47, %v4034_v13 }
0x2c62   :  { %v6877_v48 = vpop.f32.mrf.mxu0 }
0x2c63   :  { %6898 = vmatmul.mubr.msk.f32.vlgmr.msra.gmra.mxu0 %vm392_vm2, %v4035_v25 }
0x2c64   :  { %6912 = vmatpush3.msra.mxu0 %v8435_v27  ;;  %6919 = vmatprep.mubr.msk.f32.mxu0 %vm7545_vm0, %v7544_v0 }
0x2c65   :  { %6913 = vmatprep.subr.mxu0 %v7544_v0 }
0x2c66   :  { %6914 = vmatpush3.msra.mxu0 %v8441_v6 }
0x2c67   :  { %6915 = vmatprep.subr.mxu0 %v7544_v0 }
0x2c68   :  { %6916 = vmatpush3.msra.mxu0 %v8445_v44 }
0x2c69   :  { %6917 = vmatprep.subr.mxu0 %v7544_v0 }
0x2c6a   :  { %6918 = vmatpush3.msra.mxu0 %v8449_v61 }
0x2c6b   :  { %6933 = vmatprep.subr.mxu0 %v7544_v0 }
0x2d23   :  { %v4177_v1 = vpop.f32.mrf.mxu0 }
0x2d24   :  { %v4178_v28 = vadd.f32 %v4177_v1, %v4104_v8 }
0x2d25   :  { %v6899_v30 = vpop.f32.mrf.mxu0 }
0x2d26   :  { %v4181_v55 = vadd.f32 %v8256_v21, %v4178_v28 }
0x2d28   :  { %7224 = vtanh.f32 %v4181_v55  ;;  %v6042_v15 = vmul.f32 -1.442695, %v4181_v55 }
0x2d2a   :  { %7226 = vpow2.f32 %v6042_v15 }
0x2d35   :  { %v7225_v58 = vpop.eup %7224 }
0x2d36   :  { %4191 = vrot.lane.b32.xlu0 %v7225_v58, %s7546_s29 }
0x2d37   :  { %v7227_v16 = vpop.eup %7226 }
0x2d38   :  { %v4185_v40 = vadd.f32 1.0, %v7227_v16 }
0x2d3a   :  { %7228 = vrcp.f32 %v4185_v40 }
0x2d47   :  { %v7229_v33 = vpop.eup %7228 }
0x2d48   :  { %v4189_v18 = vmul.f32 %v7229_v33, %v8457_v29 }
0x2da8   :  { %v4192_v59 = vpop.permute.xlu0 %4191 }
0x2da9   :  { %v4194_v43 = vmul.f32 %v7229_v33, %v4192_v59 }
0x2dab   :  { %4196 = vrot.lane.b32.xlu1 %v4194_v43, %s7546_s29 }
0x2e1d   :  { %v4197_v45 = vpop.permute.xlu1 %4196 }
0x2e1e   :  { %v8612_v19 = vadd.f32 %v4197_v45, %v4189_v18 }
0x2e20   :  { %7230 = vtanh.f32 %v8612_v19 }
0x2e2d   :  { %v7231_v62 = vpop.eup %7230 }
0x2e2e   :  { %4202 = vrot.lane.b32.xlu0 %v7231_v62, %s7546_s29 }
0x2ea0   :  { %v4203_v8 = vpop.permute.xlu0 %4202 }
0x2ea1   :  { %v4205_v23 = vmul.f32 %v7229_v33, %v4203_v8 }
0x2ea3   :  { %4277 = vrot.lane.b32.xlu1 %v4205_v23, %s7547_s30 }
0x2f15   :  { %v8617_v12 = vpop.permute.xlu1 %4277 }
0x2f16   :  { %6920 = vmatmul.mubr.msk.f32.vlgmr.msra.gmra.mxu0 %vm392_vm2, %v8617_v12 }
0x2f17   :  { %6934 = vmatpush3.msra.mxu0 %v8469_v3  ;;  %6941 = vmatprep.mubr.msk.f32.mxu0 %vm7545_vm0, %v7544_v0 }
0x2f18   :  { %6935 = vmatprep.subr.mxu0 %v7544_v0 }
0x2f19   :  { %6936 = vmatpush3.msra.mxu0 %v8478_v60 }
0x2f1a   :  { %6937 = vmatprep.subr.mxu0 %v7544_v0 }
0x2f1b   :  { %6938 = vmatpush3.msra.mxu0 %v8485_v22 }
0x2f1c   :  { %6939 = vmatprep.subr.mxu0 %v7544_v0 }
0x2f1d   :  { %6940 = vmatpush3.msra.mxu0 %v8492_v14 }
0x2f1e   :  { %6958 = vmatprep.subr.mxu0 %v7544_v0 }
0x2fd6   :  { %v4347_v29 = vpop.f32.mrf.mxu0 }
0x2fd7   :  { %v4348_v13 = vadd.f32 %v4347_v29, %v4272_v9  ;;  %v4530_v29 = vld [vmem:[#allocation5 + $0x30] sm:$0xff] }
0x2fd8   :  { %v6921_v25 = vpop.f32.mrf.mxu0 }
0x2fd9   :  { %v4351_v48 = vadd.f32 %v8496_v39, %v4348_v13 }
0x2fdb   :  { %7232 = vtanh.f32 %v4351_v48  ;;  %v6045_v28 = vmul.f32 -1.442695, %v4351_v48 }
0x2fdd   :  { %7234 = vpow2.f32 %v6045_v28 }
0x2fe8   :  { %v7233_v1 = vpop.eup %7232 }
0x2fe9   :  { %4361 = vrot.lane.b32.xlu0 %v7233_v1, %s7546_s29 }
0x2fea   :  { %v7235_v30 = vpop.eup %7234 }
0x2feb   :  { %v4355_v55 = vadd.f32 1.0, %v7235_v30 }
0x2fed   :  { %7236 = vrcp.f32 %v4355_v55 }
0x2ffa   :  { %v7237_v58 = vpop.eup %7236 }
0x2ffb   :  { %v4359_v40 = vmul.f32 %v7237_v58, %v8502_v10 }
0x305b   :  { %v4362_v15 = vpop.permute.xlu0 %4361 }
0x305c   :  { %v4364_v16 = vmul.f32 %v7237_v58, %v4362_v15 }
0x305e   :  { %4366 = vrot.lane.b32.xlu1 %v4364_v16, %s7546_s29 }
0x30d0   :  { %v4367_v9 = vpop.permute.xlu1 %4366 }
0x30d1   :  { %v8635_v33 = vadd.f32 %v4367_v9, %v4359_v40 }
0x30d3   :  { %7238 = vtanh.f32 %v8635_v33 }
0x30e0   :  { %v7239_v59 = vpop.eup %7238 }
0x30e1   :  { %4372 = vrot.lane.b32.xlu0 %v7239_v59, %s7546_s29 }
0x3153   :  { %v4373_v43 = vpop.permute.xlu0 %4372 }
0x3154   :  { %v4375_v18 = vmul.f32 %v7237_v58, %v4373_v43 }
0x3156   :  { %4377 = vrot.lane.b32.xlu1 %v4375_v18, %s7547_s30 }
0x31c8   :  { %v4378_v45 = vpop.permute.xlu1 %4377 }
0x31c9   :  { %6931 = vmatmul.mubr.msk.f32.vlgmr.msra.gmra.mxu1 %vm392_vm2, %v4378_v45 }
0x31ca   :  { %6945 = vmatpush3.msra.mxu1 %v8294_v11  ;;  %6948 = vmatprep.mubr.msk.f32.mxu1 %vm7545_vm0, %v7544_v0 }
0x31cb   :  { %6946 = vmatprep.subr.mxu1 %v7544_v0 }
0x31cc   :  { %6947 = vmatpush3.msra.mxu1 %v8300_v31 }
0x31cd   :  { %6951 = vmatprep.subr.mxu1 %v7544_v0  ;;  %6949 = vmatmul.mubr.msk.f32.vlgmr.msra.gmra.mxu1 %vm243_vm1, %v4530_v29 }
0x31ce   :  { %6952 = vmatpush3.msra.mxu1 %v8169_v2  ;;  %6955 = vmatprep.mubr.msk.f32.mxu1 %vm7545_vm0, %v7544_v0 }
0x31cf   :  { %6953 = vmatprep.subr.mxu1 %v7544_v0 }
0x31d0   :  { %6954 = vmatpush3.msra.mxu1 %v8175_v7 }
0x31d1   :  { %6969 = vmatprep.subr.mxu1 %v7544_v0 }
0x3289   :  { %v4447_v10 = vpop.f32.mrf.mxu1 }
0x328a   :  { %v4448_v62 = vadd.f32 %v8517_v36, %v4447_v10 }
0x328b   :  { %v6932_v8 = vpop.f32.mrf.mxu1 }
0x328c   :  { %v4451_v23 = vmax.f32 %v4448_v62, 0.0 }
0x328d   :  { %v4600_v2 = vpop.f32.mrf.mxu1 }
0x328e   :  { %6942 = vmatmul.mubr.msk.f32.vlgmr.msra.gmra.mxu0 %vm392_vm2, %v4451_v23 }
0x328f   :  { %6959 = vmatpush3.msra.mxu0 %v8309_v52  ;;  %6966 = vmatprep.mubr.msk.f32.mxu0 %vm7545_vm0, %v7544_v0  ;;  %v6950_v7 = vpop.f32.mrf.mxu1 }
0x3290   :  { %6960 = vmatprep.subr.mxu0 %v7544_v0 }
0x3291   :  { %6961 = vmatpush3.msra.mxu0 %v8318_v46 }
0x3292   :  { %6962 = vmatprep.subr.mxu0 %v7544_v0 }
0x3293   :  { %6963 = vmatpush3.msra.mxu0 %v8325_v54 }
0x3294   :  { %6964 = vmatprep.subr.mxu0 %v7544_v0 }
0x3295   :  { %6965 = vmatpush3.msra.mxu0 %v8332_v34 }
0x3296   :  { %6980 = vmatprep.subr.mxu0 %v7544_v0 }
0x334e   :  { %v4521_v13 = vpop.f32.mrf.mxu0 }
0x334f   :  { %v4525_v25 = vadd.f32 %v4521_v13, %v8545_v26 }
0x3350   :  { %v6943_v48 = vpop.f32.mrf.mxu0 }
0x3351   :  { %v8668_v1 = vadd.f32 %v8542_v24, %v4525_v25 }
0x3353   :  { %4528 = vst.msk [vmem:[#allocation17 + $0x28] sm:$0xff] %vm243_vm1, %v8668_v1  ;;  %6956 = vmatmul.mubr.msk.f32.vlgmr.msra.gmra.mxu1 %vm243_vm1, %v8668_v1 }
0x3354   :  { %6970 = vmatpush3.msra.mxu1 %v8351_v41  ;;  %6977 = vmatprep.mubr.msk.f32.mxu1 %vm7545_vm0, %v7544_v0 }
0x3355   :  { %6971 = vmatprep.subr.mxu1 %v7544_v0 }
0x3356   :  { %6972 = vmatpush3.msra.mxu1 %v8357_v20 }
0x3357   :  { %6973 = vmatprep.subr.mxu1 %v7544_v0 }
0x3358   :  { %6974 = vmatpush3.msra.mxu1 %v8361_v63 }
0x3359   :  { %6975 = vmatprep.subr.mxu1 %v7544_v0 }
0x335a   :  { %6976 = vmatpush3.msra.mxu1 %v8365_v42 }
0x335b   :  { %6978 = vmatmul.mubr.msk.f32.vlgmr.msra.gmra.mxu1 %vm392_vm2, %v8617_v12  ;;  %6991 = vmatprep.subr.mxu1 %v7544_v0 }
0x335c   :  { %6992 = vmatpush3.msra.mxu1 %v8371_v4  ;;  %6999 = vmatprep.mubr.msk.f32.mxu1 %vm7545_vm0, %v7544_v0 }
0x335d   :  { %6993 = vmatprep.subr.mxu1 %v7544_v0 }
0x335e   :  { %6994 = vmatpush3.msra.mxu1 %v8377_v49 }
0x335f   :  { %6995 = vmatprep.subr.mxu1 %v7544_v0 }
0x3360   :  { %6996 = vmatpush3.msra.mxu1 %v8381_v5 }
0x3361   :  { %6997 = vmatprep.subr.mxu1 %v7544_v0 }
0x3362   :  { %6998 = vmatpush3.msra.mxu1 %v8385_v17 }
0x3363   :  { %7000 = vmatmul.mubr.msk.f32.vlgmr.msra.gmra.mxu1 %vm392_vm2, %v4378_v45  ;;  %7013 = vmatprep.subr.mxu1 %v7544_v0 }
0x3364   :  { %7014 = vmatpush3.msra.mxu1 %v8394_v51  ;;  %7021 = vmatprep.mubr.msk.f32.mxu1 %vm7545_vm0, %v7544_v0 }
0x3365   :  { %7015 = vmatprep.subr.mxu1 %v7544_v0 }
0x3366   :  { %7016 = vmatpush3.msra.mxu1 %v8403_v53 }
0x3367   :  { %7017 = vmatprep.subr.mxu1 %v7544_v0 }
0x3368   :  { %7018 = vmatpush3.msra.mxu1 %v8410_v38 }
0x3369   :  { %7019 = vmatprep.subr.mxu1 %v7544_v0 }
0x336a   :  { %7020 = vmatpush3.msra.mxu1 %v8417_v57 }
0x336b   :  { %7035 = vmatprep.subr.mxu1 %v7544_v0 }
0x3413   :  { %v4673_v26 = vpop.f32.mrf.mxu1 }
0x3414   :  { %v4674_v12 = vadd.f32 %v4673_v26, %v4600_v2 }
0x3415   :  { %v6957_v28 = vpop.f32.mrf.mxu1 }
0x3416   :  { %v4677_v30 = vadd.f32 %v8220_v50, %v4674_v12 }
0x3418   :  { %v4678_v55 = vmax.f32 %v4677_v30, 0.0 }
0x341a   :  { %6967 = vmatmul.mubr.msk.f32.vlgmr.msra.gmra.mxu0 %vm392_vm2, %v4678_v55 }
0x341b   :  { %v4818_v58 = vpop.f32.mrf.mxu1  ;;  %6981 = vmatpush3.msra.mxu0 %v8224_v35  ;;  %6988 = vmatprep.mubr.msk.f32.mxu0 %vm7545_vm0, %v7544_v0 }
0x341c   :  { %6982 = vmatprep.subr.mxu0 %v7544_v0 }
0x341d   :  { %v6979_v15 = vpop.f32.mrf.mxu1  ;;  %6983 = vmatpush3.msra.mxu0 %v8230_v37 }
0x341e   :  { %6984 = vmatprep.subr.mxu0 %v7544_v0 }
0x341f   :  { %6985 = vmatpush3.msra.mxu0 %v8234_v56 }
0x3420   :  { %6986 = vmatprep.subr.mxu0 %v7544_v0 }
0x3421   :  { %6987 = vmatpush3.msra.mxu0 %v8238_v32 }
0x3422   :  { %7002 = vmatprep.subr.mxu0 %v7544_v0 }
0x3423   :  { %v4986_v50 = vpop.f32.mrf.mxu1 }
0x3425   :  { %v7001_v35 = vpop.f32.mrf.mxu1 }
0x34da   :  { %v4748_v16 = vpop.f32.mrf.mxu0 }
0x34db   :  { %v4749_v40 = vadd.f32 %v8242_v47, %v4748_v16 }
0x34dc   :  { %v6968_v9 = vpop.f32.mrf.mxu0 }
0x34dd   :  { %6989 = vmatmul.mubr.msk.f32.vlgmr.msra.gmra.mxu0 %vm392_vm2, %v4749_v40 }
0x34de   :  { %7003 = vmatpush3.msra.mxu0 %v8435_v27  ;;  %7010 = vmatprep.mubr.msk.f32.mxu0 %vm7545_vm0, %v7544_v0 }
0x34df   :  { %7004 = vmatprep.subr.mxu0 %v7544_v0 }
0x34e0   :  { %7005 = vmatpush3.msra.mxu0 %v8441_v6 }
0x34e1   :  { %7006 = vmatprep.subr.mxu0 %v7544_v0 }
0x34e2   :  { %7007 = vmatpush3.msra.mxu0 %v8445_v44 }
0x34e3   :  { %7008 = vmatprep.subr.mxu0 %v7544_v0 }
0x34e4   :  { %7009 = vmatpush3.msra.mxu0 %v8449_v61 }
0x34e5   :  { %7024 = vmatprep.subr.mxu0 %v7544_v0 }
0x359d   :  { %v4891_v37 = vpop.f32.mrf.mxu0 }
0x359e   :  { %v4892_v56 = vadd.f32 %v4891_v37, %v4818_v58 }
0x359f   :  { %v6990_v32 = vpop.f32.mrf.mxu0 }
0x35a0   :  { %v4895_v47 = vadd.f32 %v8256_v21, %v4892_v56 }
0x35a2   :  { %7240 = vtanh.f32 %v4895_v47  ;;  %v6053_v43 = vmul.f32 -1.442695, %v4895_v47 }
0x35a4   :  { %7242 = vpow2.f32 %v6053_v43 }
0x35af   :  { %v7241_v59 = vpop.eup %7240 }
0x35b0   :  { %4905 = vrot.lane.b32.xlu0 %v7241_v59, %s7546_s29 }
0x35b1   :  { %v7243_v18 = vpop.eup %7242 }
0x35b2   :  { %v4899_v45 = vadd.f32 1.0, %v7243_v18 }
0x35b4   :  { %7244 = vrcp.f32 %v4899_v45 }
0x35c1   :  { %v7245_v10 = vpop.eup %7244 }
0x35c2   :  { %v4903_v23 = vmul.f32 %v7245_v10, %v8612_v19 }
0x3622   :  { %v4906_v62 = vpop.permute.xlu0 %4905 }
0x3623   :  { %v4908_v8 = vmul.f32 %v7245_v10, %v4906_v62 }
0x3625   :  { %4910 = vrot.lane.b32.xlu1 %v4908_v8, %s7546_s29 }
0x3697   :  { %v4911_v29 = vpop.permute.xlu1 %4910 }
0x3698   :  { %v8735_v13 = vadd.f32 %v4911_v29, %v4903_v23  ;;  %v7317_v29 = vld [vmem:[#allocation11] ss:$0 sm:$0xff] }
0x369a   :  { %7246 = vtanh.f32 %v8735_v13 }
0x36a7   :  { %v7247_v21 = vpop.eup %7246 }
0x36a8   :  { %4916 = vrot.lane.b32.xlu0 %v7247_v21, %s7546_s29 }
0x371a   :  { %v4917_v25 = vpop.permute.xlu0 %4916 }
0x371b   :  { %v4919_v48 = vmul.f32 %v7245_v10, %v4917_v25  ;;  %v7316_v10 = vld [vmem:[#allocation13] sm:$0xff] }
0x371d   :  { %4991 = vrot.lane.b32.xlu1 %v4919_v48, %s7547_s30 }
0x378f   :  { %v8740_v2 = vpop.permute.xlu1 %4991 }
0x3790   :  { %7011 = vmatmul.mubr.msk.f32.vlgmr.msra.gmra.mxu0 %vm392_vm2, %v8740_v2 }
0x3791   :  { %7025 = vmatpush3.msra.mxu0 %v8469_v3  ;;  %7032 = vmatprep.mubr.msk.f32.mxu0 %vm7545_vm0, %v7544_v0 }
0x3792   :  { %7026 = vmatprep.subr.mxu0 %v7544_v0 }
0x3793   :  { %7027 = vmatpush3.msra.mxu0 %v8478_v60 }
0x3794   :  { %7028 = vmatprep.subr.mxu0 %v7544_v0 }
0x3795   :  { %7029 = vmatpush3.msra.mxu0 %v8485_v22 }
0x3796   :  { %7030 = vmatprep.subr.mxu0 %v7544_v0 }
0x3797   :  { %7031 = vmatpush3.msra.mxu0 %v8492_v14 }
0x3798   :  { %7049 = vmatprep.subr.mxu0 %v7544_v0 }
0x3850   :  { %v5061_v19 = vpop.f32.mrf.mxu0 }
0x3851   :  { %v5062_v7 = vadd.f32 %v5061_v19, %v4986_v50  ;;  %v7318_v19 = vld [vmem:[#allocation16] ss:$0 sm:$0xff] }
0x3852   :  { %v7012_v26 = vpop.f32.mrf.mxu0 }
0x3853   :  { %v5065_v12 = vadd.f32 %v8496_v39, %v5062_v7 }
0x3855   :  { %7248 = vtanh.f32 %v5065_v12  ;;  %v6056_v30 = vmul.f32 -1.442695, %v5065_v12 }
0x3857   :  { %7250 = vpow2.f32 %v6056_v30 }
0x3862   :  { %v7249_v28 = vpop.eup %7248 }
0x3863   :  { %5075 = vrot.lane.b32.xlu0 %v7249_v28, %s7546_s29 }
0x3864   :  { %v7251_v55 = vpop.eup %7250 }
0x3865   :  { %v5069_v58 = vadd.f32 1.0, %v7251_v55 }
0x3867   :  { %7252 = vrcp.f32 %v5069_v58 }
0x3874   :  { %v7253_v15 = vpop.eup %7252 }
0x3875   :  { %v5073_v40 = vmul.f32 %v7253_v15, %v8635_v33 }
0x38d5   :  { %v5076_v35 = vpop.permute.xlu0 %5075 }
0x38d6   :  { %v5078_v16 = vmul.f32 %v7253_v15, %v5076_v35 }
0x38d8   :  { %5080 = vrot.lane.b32.xlu1 %v5078_v16, %s7546_s29 }
0x394a   :  { %v5081_v50 = vpop.permute.xlu1 %5080 }
0x394b   :  { %v8758_v9 = vadd.f32 %v5081_v50, %v5073_v40 }
0x394d   :  { %7254 = vtanh.f32 %v8758_v9 }
0x395a   :  { %v7255_v37 = vpop.eup %7254 }
0x395b   :  { %5086 = vrot.lane.b32.xlu0 %v7255_v37, %s7546_s29 }
0x39cd   :  { %v5087_v56 = vpop.permute.xlu0 %5086 }
0x39ce   :  { %v5089_v32 = vmul.f32 %v7253_v15, %v5087_v56 }
0x39d0   :  { %5091 = vrot.lane.b32.xlu1 %v5089_v32, %s7547_s30 }
0x3a42   :  { %v5092_v47 = vpop.permute.xlu1 %5091 }
0x3a43   :  { %7022 = vmatmul.mubr.msk.f32.vlgmr.msra.gmra.mxu1 %vm392_vm2, %v5092_v47 }
0x3a44   :  { %7036 = vmatpush3.msra.mxu1 %v8294_v11  ;;  %7039 = vmatprep.mubr.msk.f32.mxu1 %vm7545_vm0, %v7544_v0  ;;  %v5244_v11 = vld [vmem:[#allocation5 + $0x38] sm:$0xff] }
0x3a45   :  { %7037 = vmatprep.subr.mxu1 %v7544_v0 }
0x3a46   :  { %7038 = vmatpush3.msra.mxu1 %v8300_v31  ;;  %v7310_v31 = vld [vmem:[#allocation7 + $0x8] sm:$0xff] }
0x3a47   :  { %7042 = vmatprep.subr.mxu1 %v7544_v0  ;;  %7040 = vmatmul.mubr.msk.f32.vlgmr.msra.gmra.mxu1 %vm243_vm1, %v5244_v11 }
0x3a48   :  { %7043 = vmatpush3.msra.mxu1 %v7310_v31  ;;  %7046 = vmatprep.mubr.msk.f32.mxu1 %vm7545_vm0, %v7544_v0 }
0x3a49   :  { %7044 = vmatprep.subr.mxu1 %v7544_v0 }
0x3b03   :  { %v5161_v33 = vpop.f32.mrf.mxu1 }
0x3b04   :  { %v5162_v59 = vadd.f32 %v8517_v36, %v5161_v33 }
0x3b05   :  { %v7023_v43 = vpop.f32.mrf.mxu1 }
0x3b06   :  { %v5165_v18 = vmax.f32 %v5162_v59, 0.0 }
0x3b08   :  { %7033 = vmatmul.mubr.msk.f32.vlgmr.msra.gmra.mxu0 %vm392_vm2, %v5165_v18 }
0x3b09   :  { %7050 = vmatpush3.msra.mxu0 %v8309_v52  ;;  %7057 = vmatprep.mubr.msk.f32.mxu0 %vm7545_vm0, %v7544_v0  ;;  %v7311_v52 = vld [vmem:[#allocation7] sm:$0xff] }
0x3b0a   :  { %7051 = vmatprep.subr.mxu0 %v7544_v0  ;;  %7045 = vmatpush3.msra.mxu1 %v7311_v52 }
0x3b0b   :  { %7052 = vmatpush3.msra.mxu0 %v8318_v46  ;;  %7060 = vmatprep.subr.mxu1 %v7544_v0 }
0x3b0c   :  { %7053 = vmatprep.subr.mxu0 %v7544_v0 }
0x3b0d   :  { %7054 = vmatpush3.msra.mxu0 %v8325_v54 }
0x3b0e   :  { %7055 = vmatprep.subr.mxu0 %v7544_v0 }
0x3b0f   :  { %7056 = vmatpush3.msra.mxu0 %v8332_v34 }
0x3b10   :  { %7071 = vmatprep.subr.mxu0 %v7544_v0 }
0x3bc8   :  { %v5235_v46 = vpop.f32.mrf.mxu0 }
0x3bc9   :  { %v5239_v54 = vadd.f32 %v5235_v46, %v8668_v1  ;;  %v7315_v1 = vld [vmem:[#allocation13 + $0x8] sm:$0xff] }
0x3bca   :  { %v7034_v34 = vpop.f32.mrf.mxu0 }
0x3bcb   :  { %v8789_v45 = vadd.f32 %v8542_v24, %v5239_v54 }
0x3bcd   :  { %5242 = vst.msk [vmem:[#allocation17 + $0x30] sm:$0xff] %vm243_vm1, %v8789_v45  ;;  %7047 = vmatmul.mubr.msk.f32.vlgmr.msra.gmra.mxu1 %vm243_vm1, %v8789_v45 }
0x3bce   :  { %7061 = vmatpush3.msra.mxu1 %v8351_v41  ;;  %7068 = vmatprep.mubr.msk.f32.mxu1 %vm7545_vm0, %v7544_v0  ;;  %v5314_v41 = vpop.f32.mrf.mxu1 }
0x3bcf   :  { %7062 = vmatprep.subr.mxu1 %v7544_v0 }
0x3bd0   :  { %7063 = vmatpush3.msra.mxu1 %v8357_v20  ;;  %v7041_v20 = vpop.f32.mrf.mxu1 }
0x3bd1   :  { %7064 = vmatprep.subr.mxu1 %v7544_v0 }
0x3bd2   :  { %7065 = vmatpush3.msra.mxu1 %v8361_v63 }
0x3bd3   :  { %7066 = vmatprep.subr.mxu1 %v7544_v0 }
0x3bd4   :  { %7067 = vmatpush3.msra.mxu1 %v8365_v42 }
0x3bd5   :  { %7069 = vmatmul.mubr.msk.f32.vlgmr.msra.gmra.mxu1 %vm392_vm2, %v8740_v2  ;;  %7082 = vmatprep.subr.mxu1 %v7544_v0 }
0x3bd6   :  { %7083 = vmatpush3.msra.mxu1 %v8371_v4  ;;  %7090 = vmatprep.mubr.msk.f32.mxu1 %vm7545_vm0, %v7544_v0 }
0x3bd7   :  { %7084 = vmatprep.subr.mxu1 %v7544_v0 }
0x3bd8   :  { %7085 = vmatpush3.msra.mxu1 %v8377_v49  ;;  %v7312_v49 = vld [vmem:[#allocation10] ss:$0 sm:$0xff] }
0x3bd9   :  { %7086 = vmatprep.subr.mxu1 %v7544_v0 }
0x3bda   :  { %7087 = vmatpush3.msra.mxu1 %v8381_v5 }
0x3bdb   :  { %7088 = vmatprep.subr.mxu1 %v7544_v0 }
0x3bdc   :  { %7089 = vmatpush3.msra.mxu1 %v8385_v17 }
0x3bdd   :  { %7091 = vmatmul.mubr.msk.f32.vlgmr.msra.gmra.mxu1 %vm392_vm2, %v5092_v47  ;;  %7104 = vmatprep.subr.mxu1 %v7544_v0 }
0x3bde   :  { %7105 = vmatpush3.msra.mxu1 %v8394_v51  ;;  %7112 = vmatprep.mubr.msk.f32.mxu1 %vm7545_vm0, %v7544_v0 }
0x3bdf   :  { %7106 = vmatprep.subr.mxu1 %v7544_v0 }
0x3be0   :  { %7107 = vmatpush3.msra.mxu1 %v8403_v53  ;;  %v7313_v53 = vld [vmem:[#allocation13 + $0x18] sm:$0xff] }
0x3be1   :  { %7108 = vmatprep.subr.mxu1 %v7544_v0 }
0x3be2   :  { %7109 = vmatpush3.msra.mxu1 %v8410_v38 }
0x3be3   :  { %7110 = vmatprep.subr.mxu1 %v7544_v0 }
0x3be4   :  { %7111 = vmatpush3.msra.mxu1 %v8417_v57  ;;  %v7314_v57 = vld [vmem:[#allocation13 + $0x10] sm:$0xff] }
0x3c8d   :  { %v5387_v63 = vpop.f32.mrf.mxu1 }
0x3c8e   :  { %v5388_v42 = vadd.f32 %v5387_v63, %v5314_v41 }
0x3c8f   :  { %v7048_v4 = vpop.f32.mrf.mxu1 }
0x3c90   :  { %v5391_v5 = vadd.f32 %v7312_v49, %v5388_v42 }
0x3c92   :  { %v5392_v17 = vmax.f32 %v5391_v5, 0.0 }
0x3c94   :  { %7058 = vmatmul.mubr.msk.f32.vlgmr.msra.gmra.mxu0 %vm392_vm2, %v5392_v17 }
0x3c95   :  { %v5532_v51 = vpop.f32.mrf.mxu1  ;;  %7072 = vmatpush3.msra.mxu0 %v7313_v53  ;;  %7079 = vmatprep.mubr.msk.f32.mxu0 %vm7545_vm0, %v7544_v0 }
0x3c96   :  { %7073 = vmatprep.subr.mxu0 %v7544_v0 }
0x3c97   :  { %v7070_v38 = vpop.f32.mrf.mxu1  ;;  %7074 = vmatpush3.msra.mxu0 %v7314_v57 }
0x3c98   :  { %7075 = vmatprep.subr.mxu0 %v7544_v0 }
0x3c99   :  { %7076 = vmatpush3.msra.mxu0 %v7315_v1 }
0x3c9a   :  { %7077 = vmatprep.subr.mxu0 %v7544_v0 }
0x3c9b   :  { %7078 = vmatpush3.msra.mxu0 %v7316_v10 }
0x3c9c   :  { %7093 = vmatprep.subr.mxu0 %v7544_v0 }
0x3c9d   :  { %v5700_v62 = vpop.f32.mrf.mxu1 }
0x3c9f   :  { %v7092_v8 = vpop.f32.mrf.mxu1 }
0x3d54   :  { %v5462_v23 = vpop.f32.mrf.mxu0 }
0x3d55   :  { %v5463_v21 = vadd.f32 %v7317_v29, %v5462_v23 }
0x3d56   :  { %v7059_v25 = vpop.f32.mrf.mxu0 }
0x3d57   :  { %7080 = vmatmul.mubr.msk.f32.vlgmr.msra.gmra.mxu0 %vm392_vm2, %v5463_v21 }
0x3d58   :  { %7094 = vmatpush3.msra.mxu0 %v8435_v27  ;;  %7101 = vmatprep.mubr.msk.f32.mxu0 %vm7545_vm0, %v7544_v0 }
0x3d59   :  { %7095 = vmatprep.subr.mxu0 %v7544_v0 }
0x3d5a   :  { %7096 = vmatpush3.msra.mxu0 %v8441_v6 }
0x3d5b   :  { %7097 = vmatprep.subr.mxu0 %v7544_v0 }
0x3d5c   :  { %7098 = vmatpush3.msra.mxu0 %v8445_v44 }
0x3d5d   :  { %7099 = vmatprep.subr.mxu0 %v7544_v0 }
0x3d5e   :  { %7100 = vmatpush3.msra.mxu0 %v8449_v61 }
0x3d5f   :  { %7115 = vmatprep.subr.mxu0 %v7544_v0 }
0x3e17   :  { %v5605_v48 = vpop.f32.mrf.mxu0 }
0x3e18   :  { %v5606_v2 = vadd.f32 %v5605_v48, %v5532_v51 }
0x3e19   :  { %v7081_v27 = vpop.f32.mrf.mxu0 }
0x3e1a   :  { %v5609_v7 = vadd.f32 %v7318_v19, %v5606_v2 }
0x3e1c   :  { %7256 = vtanh.f32 %v5609_v7  ;;  %v6064_v6 = vmul.f32 -1.442695, %v5609_v7 }
0x3e1e   :  { %7258 = vpow2.f32 %v6064_v6 }
0x3e29   :  { %v7257_v26 = vpop.eup %7256 }
0x3e2a   :  { %5619 = vrot.lane.b32.xlu0 %v7257_v26, %s7546_s29 }
0x3e2b   :  { %v7259_v12 = vpop.eup %7258 }
0x3e2c   :  { %v5613_v28 = vadd.f32 1.0, %v7259_v12 }
0x3e2e   :  { %7260 = vrcp.f32 %v5613_v28 }
0x3e3b   :  { %v7261_v44 = vpop.eup %7260 }
0x3e3c   :  { %v5617_v61 = vmul.f32 %v7261_v44, %v8735_v13 }
0x3e9c   :  { %v5620_v30 = vpop.permute.xlu0 %5619 }
0x3e9d   :  { %v5622_v55 = vmul.f32 %v7261_v44, %v5620_v30 }
0x3e9f   :  { %5624 = vrot.lane.b32.xlu1 %v5622_v55, %s7546_s29 }
0x3f11   :  { %v5625_v58 = vpop.permute.xlu1 %5624 }
0x3f12   :  { %v5627_v15 = vadd.f32 %v5625_v58, %v5617_v61 }
0x3f14   :  { %7262 = vtanh.f32 %v5627_v15 }
0x3f21   :  { %v7263_v35 = vpop.eup %7262 }
0x3f22   :  { %5630 = vrot.lane.b32.xlu0 %v7263_v35, %s7546_s29 }
0x3f94   :  { %v5631_v16 = vpop.permute.xlu0 %5630 }
0x3f95   :  { %v5633_v40 = vmul.f32 %v7261_v44, %v5631_v16 }
0x3f97   :  { %5705 = vrot.lane.b32.xlu1 %v5633_v40, %s7547_s30 }
0x4009   :  { %v5706_v50 = vpop.permute.xlu1 %5705 }
0x400a   :  { %7102 = vmatmul.mubr.msk.f32.vlgmr.msra.gmra.mxu0 %vm392_vm2, %v5706_v50 }
0x400b   :  { %7116 = vmatpush3.msra.mxu0 %v8469_v3  ;;  %7123 = vmatprep.mubr.msk.f32.mxu0 %vm7545_vm0, %v7544_v0 }
0x400c   :  { %7117 = vmatprep.subr.mxu0 %v7544_v0 }
0x400d   :  { %7118 = vmatpush3.msra.mxu0 %v8478_v60 }
0x400e   :  { %7119 = vmatprep.subr.mxu0 %v7544_v0 }
0x400f   :  { %7120 = vmatpush3.msra.mxu0 %v8485_v22 }
0x4010   :  { %7121 = vmatprep.subr.mxu0 %v7544_v0 }
0x4011   :  { %7122 = vmatpush3.msra.mxu0 %v8492_v14 }
0x40ca   :  { %v5775_v13 = vpop.f32.mrf.mxu0 }
0x40cb   :  { %v5776_v37 = vadd.f32 %v5775_v13, %v5700_v62 }
0x40cc   :  { %v7103_v56 = vpop.f32.mrf.mxu0 }
0x40cd   :  { %v5779_v3 = vadd.f32 %v8496_v39, %v5776_v37 }
0x40cf   :  { %7264 = vtanh.f32 %v5779_v3  ;;  %v6067_v47 = vmul.f32 -1.442695, %v5779_v3 }
0x40d1   :  { %7266 = vpow2.f32 %v6067_v47 }
0x40dc   :  { %v7265_v32 = vpop.eup %7264 }
0x40dd   :  { %5789 = vrot.lane.b32.xlu0 %v7265_v32, %s7546_s29 }
0x40de   :  { %v7267_v60 = vpop.eup %7266 }
0x40df   :  { %v5783_v33 = vadd.f32 1.0, %v7267_v60 }
0x40e1   :  { %7268 = vrcp.f32 %v5783_v33 }
0x40ee   :  { %v7269_v59 = vpop.eup %7268 }
0x40ef   :  { %v5787_v0 = vmul.f32 %v7269_v59, %v8758_v9 }
0x414f   :  { %v5790_v22 = vpop.permute.xlu0 %5789 }
0x4150   :  { %v5792_v43 = vmul.f32 %v7269_v59, %v5790_v22 }
0x4152   :  { %5794 = vrot.lane.b32.xlu1 %v5792_v43, %s7546_s29 }
0x41c4   :  { %v5795_v14 = vpop.permute.xlu1 %5794 }
0x41c5   :  { %v5797_v18 = vadd.f32 %v5795_v14, %v5787_v0 }
0x41c7   :  { %7270 = vtanh.f32 %v5797_v18 }
0x41d4   :  { %v7271_v39 = vpop.eup %7270 }
0x41d5   :  { %5800 = vrot.lane.b32.xlu0 %v7271_v39, %s7546_s29  ;;  %s7499_s29 = scalar_lea.vmem %s5963_s19, 1024 }
0x41d6   :  { %p7500_p3 = scmp.ne.s32.totalorder %s5963_s19, %s7499_s29  ;;  %p7505_p5 = scmp.lt.s32.totalorder %s7499_s29, %s7499_s29 }
0x41d8   :  { %p7506_p6 = por %p7505_p5, %p7504_p4 }
0x41da   :  { %p7507_p7 = pnand %p7506_p6, %p7500_p3 }
0x4247   :  { %v5801_v11 = vpop.permute.xlu0 %5800 }
0x4248   :  { %v5803_v31 = vmul.f32 %v7269_v59, %v5801_v11 }
0x424a   :  { %5805 = vrot.lane.b32.xlu1 %v5803_v31, %s7547_s30 }
0x42bc   :  { %v5806_v52 = vpop.permute.xlu1 %5805 }
0x42bd   :  { %7113 = vmatmul.mubr.msk.f32.vlgmr.msra.gmra.mxu1 %vm392_vm2, %v5806_v52 }
0x437d   :  { %v5875_v46 = vpop.f32.mrf.mxu1 }
0x437e   :  { %v5876_v54 = vadd.f32 %v8517_v36, %v5875_v46 }
0x437f   :  { %v7114_v34 = vpop.f32.mrf.mxu1 }
0x4380   :  { %v5879_v41 = vmax.f32 %v5876_v54, 0.0 }
0x4382   :  { %7124 = vmatmul.mubr.msk.f32.vlgmr.msra.gmra.mxu0 %vm392_vm2, %v5879_v41 }
0x4442   :  { %v5949_v9 = vpop.f32.mrf.mxu0 }
0x4443   :  { %v5953_v20 = vadd.f32 %v5949_v9, %v8789_v45 }
0x4444   :  { %v7125_v63 = vpop.f32.mrf.mxu0 }
0x4445   :  { %v5954_v42 = vadd.f32 %v8542_v24, %v5953_v20 }
0x4447   :  { %5956 = vst.msk [vmem:[#allocation17 + $0x38] sm:$0xff] %vm243_vm1, %v5954_v42 }
0x4448   :  { %7510 = shalt.err (!%p7507_p7)
}
0x4449   :  { %5968 = dma.vmem_to_hbm [thread:$0]  %s5963_s19, 1024, %s8892_s14, [#allocation4], %s7532_s16, %s7532_s16, %s7533_s17  }
0x444a   :  { %7529 = dma.done.wait [#allocation4], 1024  }
0x444b   :  { %7530 = vsyncadd [#allocation4], 4294966272 }
0x444c   :  { %5972 = vsyncpa [#allocation3], 1 }
0x444d   :  { %5973 = vsyncpa [#allocation6], 1 }
0x444e   :  { %5974 = vsyncpa [#allocation9], 1 }
0x444f   :  { %5975 = vsyncpa [#allocation12], 1 }
0x4450   :  { %5976 = vsyncpa [#allocation15], 1 }
0x4451   :  { %5977 = vsyncpa [#allocation4], 1 }

</bundles_post_ra>
